<compile_context>
chip_gen: v6e
topology: v6e:2x2x1
jax: 0.10.0
libtpu: 0.0.40
codegen_flags: <defaults>
</compile_context>

<pallas_src>
import jax
import jax.numpy as jnp
from jax.experimental import pallas as pl
from jax.experimental.pallas import tpu as pltpu


def sae_forward_kernel(x_ref, enc_w_ref, enc_b_ref, inv_norm_ref, dec_w_ref,
                       dec_b_ref, recon_ref, hidden_ref, acc_ref):
    k = pl.program_id(1)

    x = x_ref[...]                      # (tb, D)  f32
    dec_b = dec_b_ref[...]              # (1, D)   f32

    # ---- encode (this H tile) -------------------------------------------
    x_c = x - dec_b                                              # f32 centering
    h_pre = jnp.dot(x_c.astype(enc_w_ref.dtype), enc_w_ref[...],
                    preferred_element_type=jnp.float32) + enc_b_ref[...]
    h_post = jnp.clip(h_pre, 0.0, 6.0)                           # relu+clamp fused
    hidden_ref[...] = h_post.astype(hidden_ref.dtype)

    # ---- decode partial sum over the H axis ------------------------------
    # Decoder-weight normalization folded onto activations (precomputed inv_norm).
    h_scaled = (h_post * inv_norm_ref[...]).astype(dec_w_ref.dtype)
    partial = jnp.dot(h_scaled, dec_w_ref[...],
                      preferred_element_type=jnp.float32)

    @pl.when(k == 0)
    def _init():
        acc_ref[...] = jnp.zeros_like(acc_ref)

    acc_ref[...] += partial

    @pl.when(k == pl.num_programs(1) - 1)
    def _finalize():
        recon_ref[...] = (acc_ref[...] + dec_b).astype(recon_ref.dtype)


def _pick_hidden_tile(H, requested, quantum=128):
    """Largest tile <= requested that divides H and is a multiple of `quantum`
    (H is the decode-contraction axis, so the tile must divide H exactly)."""
    if H <= requested:
        return H
    t = (min(requested, H) // quantum) * quantum
    while t >= quantum:
        if H % t == 0:
            return t
        t -= quantum
    return H


def sae_forward(x, enc_w, enc_b, dec_w, dec_b, *, tb=256, th=512,
                compute_dtype=jnp.bfloat16):
    """x: (B, D); enc_w: (D, H); enc_b: (H,); dec_w: (H, D); dec_b: (D,)."""
    B, D = x.shape
    H = enc_w.shape[1]

    # Batch tile: multiple of 8 (sublanes) unless it is the whole batch.
    tb = min(tb, B)
    if tb != B:
        tb = max(8, (tb // 8) * 8)
    # Hidden tile must divide H exactly (padded garbage would pollute the acc).
    th = _pick_hidden_tile(H, th)

    enc_b2 = enc_b.reshape(1, H).astype(jnp.float32)
    dec_b2 = dec_b.reshape(1, D).astype(jnp.float32)

    # Hoisted decoder-dictionary normalization (was recomputed every tile):
    # F.normalize(decoder.weight, dim=0) == per-row L2-normalize of dec_w (H, D).
    sumsq = jnp.sum(dec_w.astype(jnp.float32) ** 2, axis=1, keepdims=True)
    inv_norm = (1.0 / jnp.maximum(jnp.sqrt(sumsq), 1e-12)).reshape(1, H)

    enc_w_c = enc_w.astype(compute_dtype)     # (D, H)
    dec_w_c = dec_w.astype(compute_dtype)     # (H, D)

    grid = (pl.cdiv(B, tb), H // th)

    # Rough double-buffered VMEM estimate; raise the scoped limit only if needed
    # (keeps the default on small problems and on v7x's smaller VMEM).
    wb = jnp.dtype(compute_dtype).itemsize
    per_step = (tb * D * 4            # x tile
                + D * th * wb         # enc_w tile
                + 2 * th * 4          # enc_b + inv_norm tiles
                + th * D * wb         # dec_w tile
                + D * 4               # dec_b
                + tb * th * 4         # hidden out tile
                + tb * D * 4)         # recon out tile
    est = 2 * per_step + tb * D * 4   # double-buffering + acc scratch
    cp_kwargs = dict(dimension_semantics=("parallel", "arbitrary"))
    if est > 30 * 1024 * 1024:
        cp_kwargs["vmem_limit_bytes"] = int(est * 1.25)

    recon, hidden = pl.pallas_call(
        sae_forward_kernel,
        out_shape=(
            jax.ShapeDtypeStruct((B, D), x.dtype),
            jax.ShapeDtypeStruct((B, H), x.dtype),
        ),
        grid_spec=pltpu.PrefetchScalarGridSpec(
            num_scalar_prefetch=0,
            grid=grid,
            in_specs=[
                pl.BlockSpec((tb, D), lambda i, k: (i, 0)),   # x tile (k-invariant)
                pl.BlockSpec((D, th), lambda i, k: (0, k)),   # enc_w H-tile
                pl.BlockSpec((1, th), lambda i, k: (0, k)),   # enc_b H-tile
                pl.BlockSpec((1, th), lambda i, k: (0, k)),   # inv_norm H-tile
                pl.BlockSpec((th, D), lambda i, k: (k, 0)),   # dec_w H-tile
                pl.BlockSpec((1, D), lambda i, k: (0, 0)),    # dec_b (resident)
            ],
            out_specs=[
                pl.BlockSpec((tb, D), lambda i, k: (i, 0)),   # recon (acc across k)
                pl.BlockSpec((tb, th), lambda i, k: (i, k)),  # hidden
            ],
            scratch_shapes=[pltpu.VMEM((tb, D), jnp.float32)],
        ),
        compiler_params=pltpu.CompilerParams(**cp_kwargs),
    )(x, enc_w_c, enc_b2, inv_norm, dec_w_c, dec_b2)
    return recon, hidden


def init_params(key, input_dim, expansion_factor=8):
    """Deterministic synthetic init mirroring SparseAutoencoder.__init__ shapes."""
    hidden_dim = int(input_dim * expansion_factor)
    k_enc, k_dec = jax.random.split(key)

    # kaiming_uniform_(fan_in, relu): bound = sqrt(6 / fan_in)
    enc_bound = (6.0 / input_dim) ** 0.5
    enc_w_pt = jax.random.uniform(k_enc, (hidden_dim, input_dim),
                                  minval=-enc_bound, maxval=enc_bound,
                                  dtype=jnp.float32)      # PyTorch layout [H, D]
    dec_bound = (6.0 / hidden_dim) ** 0.5
    dec_w_pt = jax.random.uniform(k_dec, (input_dim, hidden_dim),
                                  minval=-dec_bound, maxval=dec_bound,
                                  dtype=jnp.float32)      # PyTorch layout [D, H]
    # __init__ normalizes decoder weight along dim=0 (over input_dim)
    dec_w_pt = dec_w_pt / jnp.maximum(
        jnp.sqrt(jnp.sum(dec_w_pt * dec_w_pt, axis=0, keepdims=True)), 1e-12)

    enc_b = jnp.zeros((hidden_dim,), jnp.float32)
    dec_b = jnp.zeros((input_dim,), jnp.float32)

    # kernel layouts (transposed)
    enc_w = enc_w_pt.T          # (D, H)
    dec_w = dec_w_pt.T          # (H, D)
    return enc_w, enc_b, dec_w, dec_b


def sae_forward_ref(x, enc_w, enc_b, dec_w, dec_b, compute_dtype=jnp.float32):
    """Plain-JAX reference mirroring the PyTorch forward.  `compute_dtype`
    selects the matmul operand precision (f32 == exact PyTorch math, bf16 ==
    the kernel's MXU recipe)."""
    sumsq = jnp.sum(dec_w.astype(jnp.float32) ** 2, axis=1)
    inv_norm = 1.0 / jnp.maximum(jnp.sqrt(sumsq), 1e-12)          # (H,)
    x_c = x - dec_b[None, :]
    h_pre = jnp.dot(x_c.astype(compute_dtype), enc_w.astype(compute_dtype),
                    preferred_element_type=jnp.float32) + enc_b[None, :]
    h_post = jnp.clip(h_pre, 0.0, 6.0)
    h_scaled = (h_post * inv_norm[None, :]).astype(compute_dtype)
    recon = jnp.dot(h_scaled, dec_w.astype(compute_dtype),
                    preferred_element_type=jnp.float32) + dec_b[None, :]
    return recon, h_post


if __name__ == "__main__":
    key = jax.random.PRNGKey(0)
    k_x, k_p = jax.random.split(key)

    B, D = 512, 128                    # batch (or batch*seq flattened), input_dim
    expansion = 8                      # hidden_dim = 1024
    H = int(D * expansion)
    x = jax.random.normal(k_x, (B, D), dtype=jnp.float32)

    enc_w, enc_b, dec_w, dec_b = init_params(k_p, D, expansion)

    recon, hidden = sae_forward(x, enc_w, enc_b, dec_w, dec_b, tb=256, th=512)
    jax.block_until_ready((recon, hidden))

    assert recon.shape == (B, D) and hidden.shape == (B, H)

    # Tight check against a reference using the same bf16-operand / f32-acc recipe.
    recon_m, hidden_m = sae_forward_ref(x, enc_w, enc_b, dec_w, dec_b,
                                        compute_dtype=jnp.bfloat16)
    assert jnp.allclose(recon, recon_m, atol=2e-3, rtol=2e-3)
    assert jnp.allclose(hidden, hidden_m, atol=2e-3, rtol=2e-3)

    # Loose sanity check against the exact f32 PyTorch-equivalent forward
    # (bounds the bf16 drift relative to overall output scale).
    recon_f, hidden_f = sae_forward_ref(x, enc_w, enc_b, dec_w, dec_b,
                                        compute_dtype=jnp.float32)
    recon_err = jnp.max(jnp.abs(recon - recon_f)) / (jnp.max(jnp.abs(recon_f)) + 1e-6)
    hidden_err = jnp.max(jnp.abs(hidden - hidden_f)) / (jnp.max(jnp.abs(hidden_f)) + 1e-6)
    assert float(recon_err) < 5e-2
    assert float(hidden_err) < 5e-2

    print("KERNEL_OK")
</pallas_src>

<mosaic_0001>
module attributes {stable_mosaic.version = 11 : i64} {
  func.func @sae_forward_kernel(%arg0: i32, %arg1: i32, %arg2: memref<256x128xf32, #tpu.memory_space<vmem>>, %arg3: memref<128x512xbf16, #tpu.memory_space<vmem>>, %arg4: memref<1x512xf32, #tpu.memory_space<vmem>>, %arg5: memref<1x512xf32, #tpu.memory_space<vmem>>, %arg6: memref<512x128xbf16, #tpu.memory_space<vmem>>, %arg7: memref<1x128xf32, #tpu.memory_space<vmem>>, %arg8: memref<256x128xf32, #tpu.memory_space<vmem>>, %arg9: memref<256x512xf32, #tpu.memory_space<vmem>>, %arg10: memref<256x128xf32, #tpu.memory_space<vmem>>) attributes {dimension_semantics = [#tpu.dimension_semantics<parallel>, #tpu.dimension_semantics<arbitrary>], iteration_bounds = array<i64: 2, 2>, scalar_prefetch = 0 : i64, scratch_operands = 1 : i64, tpu.core_type = #tpu.core_type<tc>, window_params = [{transform_indices = @transform_0, window_bounds = array<i64: 256, 128>}, {transform_indices = @transform_1, window_bounds = array<i64: 128, 512>}, {transform_indices = @transform_2, window_bounds = array<i64: 1, 512>}, {transform_indices = @transform_3, window_bounds = array<i64: 1, 512>}, {transform_indices = @transform_4, window_bounds = array<i64: 512, 128>}, {pipeline_mode = #tpu.pipeline_mode<synchronous>, transform_indices = @transform_5, window_bounds = array<i64: 1, 128>}, {transform_indices = @transform_6, window_bounds = array<i64: 256, 128>}, {transform_indices = @transform_7, window_bounds = array<i64: 256, 512>}]} {
    %c0 = arith.constant 0 : index
    %c0_0 = arith.constant 0 : index
    %0 = vector.load %arg2[%c0, %c0_0] : memref<256x128xf32, #tpu.memory_space<vmem>>, vector<256x128xf32>
    %c0_1 = arith.constant 0 : index
    %c0_2 = arith.constant 0 : index
    %1 = vector.load %arg7[%c0_1, %c0_2] : memref<1x128xf32, #tpu.memory_space<vmem>>, vector<1x128xf32>
    %2 = vector.broadcast %1 : vector<1x128xf32> to vector<256x128xf32>
    %3 = arith.subf %0, %2 : vector<256x128xf32>
    %4 = arith.truncf %3 : vector<256x128xf32> to vector<256x128xbf16>
    %c0_3 = arith.constant 0 : index
    %c0_4 = arith.constant 0 : index
    %5 = vector.load %arg3[%c0_3, %c0_4] : memref<128x512xbf16, #tpu.memory_space<vmem>>, vector<128x512xbf16>
    %cst = arith.constant dense<0.000000e+00> : vector<256x512xf32>
    %6 = tpu.matmul %4, %5, %cst {dimension_numbers = #tpu.dot_dimension_numbers<[1], [0], [0], [1], [0, 0, 1, 1], [], []>} : vector<256x128xbf16>, vector<128x512xbf16>, vector<256x512xf32> -> vector<256x512xf32>
    %c0_5 = arith.constant 0 : index
    %c0_6 = arith.constant 0 : index
    %7 = vector.load %arg4[%c0_5, %c0_6] : memref<1x512xf32, #tpu.memory_space<vmem>>, vector<1x512xf32>
    %8 = vector.broadcast %7 : vector<1x512xf32> to vector<256x512xf32>
    %9 = arith.addf %6, %8 : vector<256x512xf32>
    %cst_7 = arith.constant 0.000000e+00 : f32
    %cst_8 = arith.constant 6.000000e+00 : f32
    %10 = vector.broadcast %cst_7 : f32 to vector<256x512xf32>
    %11 = arith.maximumf %10, %9 : vector<256x512xf32>
    %12 = vector.broadcast %cst_8 : f32 to vector<256x512xf32>
    %13 = arith.minimumf %12, %11 : vector<256x512xf32>
    %c0_9 = arith.constant 0 : index
    %c0_10 = arith.constant 0 : index
    %14 = vector.load %arg9[%c0_9, %c0_10] : memref<256x512xf32, #tpu.memory_space<vmem>>, vector<256x512xf32>
    tpu.vector_store %arg9[%c0_9, %c0_10], %13 {strides = array<i32>} : memref<256x512xf32, #tpu.memory_space<vmem>>, vector<256x512xf32>,
    %c0_11 = arith.constant 0 : index
    %c0_12 = arith.constant 0 : index
    %15 = vector.load %arg5[%c0_11, %c0_12] : memref<1x512xf32, #tpu.memory_space<vmem>>, vector<1x512xf32>
    %16 = vector.broadcast %15 : vector<1x512xf32> to vector<256x512xf32>
    %17 = arith.mulf %13, %16 : vector<256x512xf32>
    %18 = arith.truncf %17 : vector<256x512xf32> to vector<256x512xbf16>
    %c0_13 = arith.constant 0 : index
    %c0_14 = arith.constant 0 : index
    %19 = vector.load %arg6[%c0_13, %c0_14] : memref<512x128xbf16, #tpu.memory_space<vmem>>, vector<512x128xbf16>
    %cst_15 = arith.constant dense<0.000000e+00> : vector<256x128xf32>
    %20 = tpu.matmul %18, %19, %cst_15 {dimension_numbers = #tpu.dot_dimension_numbers<[1], [0], [0], [1], [0, 0, 1, 1], [], []>} : vector<256x512xbf16>, vector<512x128xbf16>, vector<256x128xf32> -> vector<256x128xf32>
    %c0_i32 = arith.constant 0 : i32
    %21 = arith.cmpi eq, %arg1, %c0_i32 : i32
    %22 = arith.extui %21 : i1 to i32
    %c0_i32_16 = arith.constant 0 : i32
    %23 = arith.cmpi ne, %22, %c0_i32_16 : i32
    scf.if %23 {
      %cst_22 = arith.constant 0.000000e+00 : f32
      %30 = vector.broadcast %cst_22 : f32 to vector<256x128xf32>
      %c0_23 = arith.constant 0 : index
      %c0_24 = arith.constant 0 : index
      %31 = vector.load %arg10[%c0_23, %c0_24] : memref<256x128xf32, #tpu.memory_space<vmem>>, vector<256x128xf32>
      tpu.vector_store %arg10[%c0_23, %c0_24], %30 {strides = array<i32>} : memref<256x128xf32, #tpu.memory_space<vmem>>, vector<256x128xf32>,
    } else {
    }
    %c0_17 = arith.constant 0 : index
    %c0_18 = arith.constant 0 : index
    %24 = vector.load %arg10[%c0_17, %c0_18] : memref<256x128xf32, #tpu.memory_space<vmem>>, vector<256x128xf32>
    %25 = arith.addf %24, %20 : vector<256x128xf32>
    %c0_19 = arith.constant 0 : index
    %c0_20 = arith.constant 0 : index
    %26 = vector.load %arg10[%c0_19, %c0_20] : memref<256x128xf32, #tpu.memory_space<vmem>>, vector<256x128xf32>
    tpu.vector_store %arg10[%c0_19, %c0_20], %25 {strides = array<i32>} : memref<256x128xf32, #tpu.memory_space<vmem>>, vector<256x128xf32>,
    %c1_i32 = arith.constant 1 : i32
    %27 = arith.cmpi eq, %arg1, %c1_i32 : i32
    %28 = arith.extui %27 : i1 to i32
    %c0_i32_21 = arith.constant 0 : i32
    %29 = arith.cmpi ne, %28, %c0_i32_21 : i32
    scf.if %29 {
      %c0_22 = arith.constant 0 : index
      %c0_23 = arith.constant 0 : index
      %30 = vector.load %arg10[%c0_22, %c0_23] : memref<256x128xf32, #tpu.memory_space<vmem>>, vector<256x128xf32>
      %31 = vector.broadcast %1 : vector<1x128xf32> to vector<256x128xf32>
      %32 = arith.addf %30, %31 : vector<256x128xf32>
      %c0_24 = arith.constant 0 : index
      %c0_25 = arith.constant 0 : index
      %33 = vector.load %arg8[%c0_24, %c0_25] : memref<256x128xf32, #tpu.memory_space<vmem>>, vector<256x128xf32>
      tpu.vector_store %arg8[%c0_24, %c0_25], %32 {strides = array<i32>} : memref<256x128xf32, #tpu.memory_space<vmem>>, vector<256x128xf32>,
    } else {
    }
    return
  }
  func.func @transform_0(%arg0: i32, %arg1: i32) -> (i32, i32) {
    %c0_i32 = arith.constant 0 : i32
    %c0_i32_0 = arith.constant 0 : i32
    return %arg0, %c0_i32 : i32, i32
  }
  func.func @transform_1(%arg0: i32, %arg1: i32) -> (i32, i32) {
    %c0_i32 = arith.constant 0 : i32
    %c0_i32_0 = arith.constant 0 : i32
    return %c0_i32, %arg1 : i32, i32
  }
  func.func @transform_2(%arg0: i32, %arg1: i32) -> (i32, i32) {
    %c0_i32 = arith.constant 0 : i32
    %c0_i32_0 = arith.constant 0 : i32
    return %c0_i32, %arg1 : i32, i32
  }
  func.func @transform_3(%arg0: i32, %arg1: i32) -> (i32, i32) {
    %c0_i32 = arith.constant 0 : i32
    %c0_i32_0 = arith.constant 0 : i32
    return %c0_i32, %arg1 : i32, i32
  }
  func.func @transform_4(%arg0: i32, %arg1: i32) -> (i32, i32) {
    %c0_i32 = arith.constant 0 : i32
    %c0_i32_0 = arith.constant 0 : i32
    return %arg1, %c0_i32 : i32, i32
  }
  func.func @transform_5(%arg0: i32, %arg1: i32) -> (i32, i32) {
    %c0_i32 = arith.constant 0 : i32
    %c0_i32_0 = arith.constant 0 : i32
    %c0_i32_1 = arith.constant 0 : i32
    return %c0_i32, %c0_i32_0 : i32, i32
  }
  func.func @transform_6(%arg0: i32, %arg1: i32) -> (i32, i32) {
    %c0_i32 = arith.constant 0 : i32
    %c0_i32_0 = arith.constant 0 : i32
    return %arg0, %c0_i32 : i32, i32
  }
  func.func @transform_7(%arg0: i32, %arg1: i32) -> (i32, i32) {
    %c0_i32 = arith.constant 0 : i32
    return %arg0, %arg1 : i32, i32
  }
}

</mosaic_0001>

<bundles_post_ra>
// kernel: tpu_custom_call.1
= control target key start
LH: loop header
LB: loop body
LE: loop exit
PB: predicated region body
PF: predicated region fallthrough
CT: control target
= control target key end

     0   :  { %s5433_s0 = inlined_call_operand.hbm [shape: f32[512,128], index: 0, kind: input, shape index: {}]   ;;  %s5434_s1 = inlined_call_operand.hbm [shape: bf16[128,1024], index: 1, kind: input, shape index: {}]   ;;  %s5435_s2 = inlined_call_operand.hbm [shape: f32[1,1024], index: 2, kind: input, shape index: {}]   ;;  %s5436_s3 = inlined_call_operand.hbm [shape: f32[1,1024], index: 3, kind: input, shape index: {}]   ;;  %s5437_s4 = inlined_call_operand.hbm [shape: bf16[1024,128], index: 4, kind: input, shape index: {}]   ;;  %s5438_s5 = inlined_call_operand.hbm [shape: f32[1,128], index: 5, kind: input, shape index: {}]   ;;  %s5439_s6 = inlined_call_operand.hbm [shape: f32[512,128], index: 6, kind: output, shape index: {0}]   ;;  %s5440_s7 = inlined_call_operand.hbm [shape: f32[512,1024], index: 7, kind: output, shape index: {1}]  }
   0x1   :  { %5473 = sst [smem:[#allocation40_spill]] %s5433_s0 }
   0x2   :  { %5474 = sst [smem:[#allocation41_spill]] %s5434_s1 }
   0x3   :  { %5475 = sst [smem:[#allocation42_spill]] %s5435_s2 }
   0x4   :  { %5476 = sst [smem:[#allocation43_spill]] %s5436_s3 }
   0x5   :  { %5477 = sst [smem:[#allocation44_spill]] %s5437_s4 }
   0x6   :  { %5478 = sst [smem:[#allocation45_spill]] %s5438_s5 }
   0x7   :  { %5479 = sst [smem:[#allocation46_spill]] %s5439_s6 }
   0x8   :  { %5480 = sst [smem:[#allocation47_spill]] %s5440_s7 }
   0x9   :  { %13 = vsyncpa [#allocation4], 0 }
   0xa   :  { %15 = vsyncpa [#allocation4 + $0x1], 0 }
   0xb   :  { %16 = vsyncpa [#allocation7], 0 }
   0xc   :  { %18 = vsyncpa [#allocation7 + $0x1], 0 }
   0xd   :  { %19 = vsyncpa [#allocation10], 0 }
   0xe   :  { %21 = vsyncpa [#allocation10 + $0x1], 0 }
   0xf   :  { %22 = vsyncpa [#allocation13], 0 }
  0x10   :  { %23 = vsyncpa [#allocation5], 0 }
  0x11   :  { %25 = vsyncpa [#allocation5 + $0x1], 0 }
  0x12   :  { %26 = vsyncpa [#allocation16], 0 }
  0x13   :  { %28 = vsyncpa [#allocation16 + $0x1], 0  ;;  %s3851_s24 = smov 0   ;;  %s3853_s25 = smov 0  }
  0x14   :  { %s3855_s26 = smov 0   ;;  %s3857_s27 = smov 0  }
  0x15   :  { %s3859_s28 = smov 0   ;;  %s3861_s29 = smov 0  }
  0x16   :  { %s3863_s30 = smov 0   ;;  %s3865_s8 = smov 0  }
  0x17   :  { %s3867_s9 = smov 0   ;;  %s3869_s10 = smov 0  }
  0x18   :  { %s3871_s11 = smov 0   ;;  %s3873_s12 = smov 0  }
  0x19   :  { %s3875_s13 = smov 0   ;;  %s3877_s14 = smov 0  }
  0x1a LB: > { %5481 = sst [smem:[#allocation23_spill]] %s3735_s24  ;;  %p61_p0 = scmp.eq.s32.totalorder %s3787_s14, 0  ;;  %s3787_s14 = sphi %s3877_s14, %s34_s14   ;;  %s3783_s13 = sphi %s3875_s13, %s5562_s13   ;;  %s3779_s12 = sphi %s3873_s12, %s5571_s12   ;;  %s3775_s11 = sphi %s3871_s11, %s5560_s11   ;;  %s3771_s10 = sphi %s3869_s10, %s5559_s10   ;;  %s3767_s9 = sphi %s3867_s9, %s5570_s9   ;;  %s3763_s8 = sphi %s3865_s8, %s5569_s8   ;;  %s3759_s30 = sphi %s3863_s30, %s5568_s30   ;;  %s3755_s29 = sphi %s3861_s29, %s5567_s29   ;;  %s3751_s28 = sphi %s3859_s28, %s5566_s28   ;;  %s3747_s27 = sphi %s3857_s27, %s5558_s27   ;;  %s3743_s26 = sphi %s3855_s26, %s5565_s26   ;;  %s3739_s25 = sphi %s3853_s25, %s5564_s25   ;;  %s3735_s24 = sphi %s3851_s24, %s5557_s24  }
  0x1b   : > { %5482 = sst [smem:[#allocation24_spill]] %s3739_s25  ;;  %p86_p1 = scmp.ne.s32.totalorder %s3755_s29, %s3751_s28 }
  0x1c   : > { %5483 = sst [smem:[#allocation25_spill]] %s3751_s28  ;;  %p5450_p2 = scmp.lt.s32.totalorder %s3787_s14, 4 }
  0x1d   : > { %5484 = sst [smem:[#allocation26_spill]] %s3759_s30  ;;  %p88_p3 = por %p86_p1, %p61_p0 }
  0x1e   : > { %5485 = sst [smem:[#allocation27_spill]] %s3771_s10  ;;  %s5443_s17 = sand.u32 1, %s3755_s29  }
  0x1f   : > { %5486 = sst [smem:[#allocation28_spill]] %s3775_s11  ;;  %s2949_s18 = sshll.u32 %s3779_s12, 8 }
  0x20   : > { %5487 = sst [smem:[#allocation29_spill]] %s3779_s12  ;;  %s3933_s19 = sshll.u32 %s5443_s17, 8 }
  0x21   : > { %5488 = sst [smem:[#allocation30_spill]] %s3783_s13  ;;  %p3940_p4 = pnand %p5450_p2, %p88_p3 }
  0x22   : > { %5489 = sst [smem:[#allocation31_spill]] %s3933_s19  ;;  %s305_s15 = scalar_lea.vmem [#allocation6], %s3933_s19 }
  0x23   : > { %s5490_s1 = sld [smem:[#allocation41_spill]]  ;;  %s312_s16 = sshll.u32 %s305_s15, 4  ;;  %s313_s16 = int_to_ptr.vmem [resolvable:$true] %s312_s16 }
  0x24   : > { %s5492_s7 = sand.u32 1, %s3787_s14   ;;  %p5449_p5 = pneg %p3940_p4 }
  0x25   : > { %s3947_s6 = scalar_lea.sflag [#allocation7], %s5492_s7  ;;  %s3448_s17 = scalar_lea.vmem %s313_s16, 4096 }
  0x26   : > { %p3449_p6 = scmp.ne.s32.totalorder %s313_s16, %s3448_s17 }
  0x28   : > { %p3451_p7 = pnand %p3449_p6, %p5449_p5 }
  0x29   : > { %s311_s22 = scalar_lea.hbm %s5490_s1, %s2949_s18  ;;  %s3789_s18 = smov [#allocation6]  }
  0x2a   : > { %p3452_p8 = pneg %p3451_p7  ;;  %s3453_s20 = sshll.u32 %s3789_s18, 4  ;;  %s3454_s20 = int_to_ptr.vmem [resolvable:$false] %s3453_s20 }
  0x2b   : > { %s3455_s21 = scalar_lea.vmem %s3454_s20, 8192  ;;  %p3456_p9 = scmp.lt.s32.totalorder %s313_s16, %s3454_s20 }
  0x2c   : > { %p3457_p10 = scmp.lt.s32.totalorder %s3455_s21, %s3448_s17 }
  0x2e   : > { %p3458_p11 = por %p3457_p10, %p3456_p9 }
  0x30   : > { %p3459_p12 = pnand %p3458_p11, %p3452_p8 }
  0x32   : > { %3462 = shalt.err (!%p3459_p12)
}
  0x33   : > { %s3790_s15 = smov 512   ;;  %s3791_s7 = smov 256  }
  0x34   : > { %s3792_s1 = smov 16   ;;  %s5493_s11 = sand.u32 1, %s3755_s29  }
  0x35   : > { %3207 = dma.hbm_to_vmem [thread:$0]  (!%p3940_p4), %s311_s22, 4096, %s313_s16, %s3947_s6, %s3790_s15, %s3791_s7, %s3792_s1  }
  0x36   : > { %s3959_s18 = sshll.u32 %s5493_s11, 2  ;;  %s2950_s20 = sshll.u32 %s3779_s12, 6 }
  0x37   : > { %s5494_s2 = sld [smem:[#allocation42_spill]]  ;;  %s345_s5 = scalar_lea.vmem [#allocation9], %s3959_s18 }
  0x38   : > { %s5495_s3 = sld [smem:[#allocation43_spill]]  ;;  %s353_s13 = sshll.u32 %s345_s5, 4  ;;  %s354_s13 = int_to_ptr.vmem [resolvable:$true] %s353_s13 }
  0x39   : > { %s5496_s24 = sand.u32 1, %s3787_s14   ;;  %s3476_s1 = scalar_lea.vmem %s354_s13, 64 }
  0x3a   : > { %s3973_s25 = scalar_lea.sflag [#allocation10], %s5496_s24  ;;  %p3477_p13 = scmp.ne.s32.totalorder %s354_s13, %s3476_s1 }
  0x3b   : > { %s3793_s11 = smov [#allocation9]  }
  0x3c   : > { %p3479_p1 = pnand %p3477_p13, %p5449_p5  ;;  %s3481_s16 = sshll.u32 %s3793_s11, 4  ;;  %s3482_s16 = int_to_ptr.vmem [resolvable:$false] %s3481_s16 }
  0x3d   : > { %s3965_s10 = scalar_lea.hbm %s5494_s2, %s2950_s20  ;;  %s3483_s22 = scalar_lea.vmem %s3482_s16, 128 }
  0x3e   : > { %s351_s0 = scalar_lea.hbm %s5495_s3, %s2950_s20  ;;  %p3480_p3 = pneg %p3479_p1 }
  0x3f   : > { %p3484_p6 = scmp.lt.s32.totalorder %s354_s13, %s3482_s16  ;;  %p3485_p7 = scmp.lt.s32.totalorder %s3483_s22, %s3476_s1 }
  0x41   : > { %p3486_p8 = por %p3485_p7, %p3484_p6 }
  0x43   : > { %p3487_p9 = pnand %p3486_p8, %p3480_p3 }
  0x45   : > { %3490 = shalt.err (!%p3487_p9)
}
  0x46   : > { %s5497_s4 = sld [smem:[#allocation24_spill]]  ;;  %s3982_s5 = sadd.s32 4294967295, %s3787_s14  }
  0x47   : > { %3213 = dma.hbm_to_vmem [thread:$0]  (!%p3940_p4), %s351_s0, 64, %s354_s13, %s3973_s25  }
  0x48   : > { %5498 = sst [smem:[#allocation32_spill]] %s3982_s5  ;;  %s2843_s19 = sadd.s32 4294967294, %s3787_s14  }
  0x49   : > { %s5499_s24 = sld [smem:[#allocation23_spill]]  ;;  %p60_p10 = scmp.ne.s32.totalorder %s3767_s9, %s3763_s8 }
  0x4a   : > { %p66_p11 = scmp.ne.s32.totalorder %s3763_s8, %s3759_s30  ;;  %p5451_p12 = scmp.eq.s32.totalorder %s3982_s5, 0 }
  0x4b   : > { %p92_p13 = scmp.ne.s32.totalorder %s3751_s28, %s3747_s27  ;;  %p3995_p1 = por %p61_p0, %p60_p10 }
  0x4c   : > { %p215_p3 = scmp.eq.s32.totalorder %s3982_s5, 3  ;;  %p4002_p6 = por %p5451_p12, %p66_p11 }
  0x4d   : > { %p4008_p7 = por %p92_p13, %p5451_p12  ;;  %s5506_s27 = sld [smem:[#allocation30_spill]] }
  0x4e   : > { %p4012_p8 = por %p215_p3, %p60_p10  ;;  %p221_p0 = scmp.eq.s32.totalorder %s2843_s19, 3 }
  0x4f   : > { %s5502_s13 = scalar_select %p4008_p7, 1, 0 }
  0x50   : > { %s5504_s20 = scalar_select %p4012_p8, 1, 0 }
  0x51   : > { %5503 = sst [smem:[#allocation33_spill]] %s5502_s13  ;;  %p242_p9 = scmp.ne.s32.totalorder %s3743_s26, %s5497_s4 }
  0x52   : > { %5505 = sst [smem:[#allocation34_spill]] %s5504_s20  ;;  %p4019_p5 = por %p221_p0, %p66_p11 }
  0x53   : > { %p248_p13 = scmp.ne.s32.totalorder %s5497_s4, %s5499_s24  ;;  %p4025_p2 = por %p242_p9, %p215_p3 }
  0x54   : > { %s5507_s21 = scalar_select %p4019_p5, 1, 0 }
  0x55   : > { %s5509_s1 = scalar_select %p4025_p2, 1, 0 }
  0x56   : > { %5508 = sst [smem:[#allocation35_spill]] %s5507_s21  ;;  %p2844_p10 = scmp.ge.s32.totalorder %s3787_s14, 1 }
  0x57   : > { %5510 = sst [smem:[#allocation36_spill]] %s5509_s1  ;;  %p4030_p12 = por %p248_p13, %p221_p0 }
  0x58   : > { %p256_p8 = scmp.lt.s32.totalorder %s3787_s14, 5  ;;  %s3794_s22 = smov [#allocation12]  }
  0x59   : > { %s5511_s11 = scalar_select %p4030_p12, 1, 0 }
  0x5a   : > { %p4035_p7 = pnand %p2844_p10, %p256_p8  ;;  %s269_s19 = sshll.u32 %s3794_s22, 4  ;;  %s270_s19 = int_to_ptr.vmem [resolvable:$true] %s269_s19 }
  0x5b   : > { %5512 = sst [smem:[#allocation37_spill]] %s5511_s11  ;;  %s43_s4 = sadd.s32 1, %s3779_s12 }
  0x5c   : > { %p3197_p11 = pneg %p4035_p7  ;;  %s46_s24 = sadd.s32 1, %s5506_s27 }
  0x5d   : > { %p5514_p3 = scmp.eq.s32.totalorder %s3982_s5, 0  ;;  %p4049_p0 = scmp.ge.s32.totalorder %s43_s4, 2 }
  0x5e   : > { %s5465_s2 = sand.u32 1, %s3767_s9   ;;  %s2948_s3 = sshll.u32 %s5506_s27, 12 }
  0x5f   : > { %p4045_p9 = pnand %p3197_p11, %p5514_p3  ;;  %s3502_s22 = scalar_lea.vmem %s270_s19, 16 }
  0x60   : > { %p3503_p13 = scmp.ne.s32.totalorder %s270_s19, %s3502_s22  ;;  %s3509_s11 = scalar_lea.vmem %s270_s19, 32 }
  0x61   : > { %p3493_p8 = pneg %p4045_p9  ;;  %p3510_p5 = scmp.lt.s32.totalorder %s270_s19, %s270_s19 }
  0x62   : > { %p3511_p2 = scmp.lt.s32.totalorder %s3509_s11, %s3502_s22 }
  0x63   : > { %p3505_p10 = pnand %p3503_p13, %p3493_p8 }
  0x64   : > { %p3512_p11 = por %p3511_p2, %p3510_p5 }
  0x65   : > { %p3506_p12 = pneg %p3505_p10 }
  0x67   : > { %p3513_p3 = pnand %p3512_p11, %p3506_p12 }
  0x69   : > { %3516 = shalt.err (!%p3513_p3)
}
  0x6a   : > { %s5517_s1 = sld [smem:[#allocation45_spill]]  ;;  %s5573_s4 = smov (%p4049_p0, %s43_s4), 0 }
  0x6b   : > { %5518 = sst [smem:[#allocation38_spill]] %s5573_s4  ;;  %s5575_s24 = smov (!%p4049_p0, %s46_s24), %s5506_s27 }
  0x6c   : > { %s76_s30 = ssub.s32 %s3779_s12, %s5573_s4  ;;  %s2847_s17 = sshll.u32 %s5465_s2, 8 }
  0x6d   : > { %p48_p2 = scmp.ge.s32.totalorder %s5575_s24, 2  ;;  %p77_p5 = scmp.eq.s32.totalorder %s76_s30, 0 }
  0x6e   : > { %s5519_s11 = sld [smem:[#allocation40_spill]]  ;;  %s5521_s15 = sadd.s32 1, %s3755_s29 }
  0x6f   : > { %s5577_s24 = smov (%p48_p2, %s5575_s24), 0  ;;  %s284_s20 = scalar_lea.vmem [#allocation3], %s2847_s17 }
  0x70   : > { %3200 = dma.hbm_to_vmem [thread:$0]  (!%p4045_p9), %s5517_s1, 16, %s270_s19, [#allocation13]  }
  0x71   : > { %5520 = sst [smem:[#allocation39_spill]] %s5577_s24  ;;  %s50_s4 = ssub.s32 %s5506_s27, %s5577_s24 }
  0x72   : > { %s4083_s22 = scalar_select %p77_p5, %s3755_s29, %s5521_s15  }
  0x73   : > { %s291_s13 = sshll.u32 %s284_s20, 4  ;;  %p51_p12 = scmp.eq.s32.totalorder %s50_s4, 0  ;;  %s292_s13 = int_to_ptr.vmem [resolvable:$true] %s291_s13 }
  0x74   : > { %s4076_s19 = scalar_lea.hbm %s5519_s11, %s2948_s3  ;;  %s229_s2 = sor.u32 %s76_s30, %s50_s4 }
  0x75   : > { %p230_p9 = scmp.eq.s32.totalorder %s229_s2, 0  ;;  %s5522_s28 = sadd.s32 1, %s3767_s9 }
  0x76   : > { %s4090_s5 = scalar_select %p51_p12, %s3767_s9, %s5522_s28  }
  0x77   : > { %s5523_s21 = sadd.s32 1, %s3743_s26  ;;  %p5524_p0 = scmp.lt.s32.totalorder %s3787_s14, 4 }
  0x78   : > { %s4095_s3 = scalar_select %p230_p9, %s3743_s26, %s5523_s21  }
  0x79   : > { %p4101_p8 = pnand %p5524_p0, %p3995_p1  ;;  %s326_s27 = scalar_lea.vmem [#allocation8], %s3959_s18 }
  0x7a   : > { %s334_s17 = sshll.u32 %s326_s27, 4  ;;  %s5526_s20 = sand.u32 1, %s3767_s9   ;;  %s4106_s17 = int_to_ptr.vmem [resolvable:$true] %s334_s17 }
  0x7b   : > { %s281_s2 = scalar_lea.sflag [#allocation4], %s5526_s20  ;;  %p3519_p13 = pneg %p4101_p8 }
  0x7c   : > { %s3530_s28 = scalar_lea.vmem %s292_s13, 4096  ;;  %s3795_s4 = smov [#allocation3]  }
  0x7d   : > { %p3531_p10 = scmp.ne.s32.totalorder %s292_s13, %s3530_s28  ;;  %s3535_s7 = sshll.u32 %s3795_s4, 4  ;;  %s3536_s7 = int_to_ptr.vmem [resolvable:$false] %s3535_s7 }
  0x7e   : > { %s3537_s30 = scalar_lea.vmem %s3536_s7, 8192  ;;  %p3538_p1 = scmp.lt.s32.totalorder %s292_s13, %s3536_s7 }
  0x7f   : > { %p3533_p11 = pnand %p3531_p10, %p3519_p13  ;;  %p3539_p2 = scmp.lt.s32.totalorder %s3537_s30, %s3530_s28 }
  0x81   : > { %p3534_p3 = pneg %p3533_p11  ;;  %p3540_p5 = por %p3539_p2, %p3538_p1 }
  0x83   : > { %p3541_p12 = pnand %p3540_p5, %p3534_p3 }
  0x85   : > { %3544 = shalt.err (!%p3541_p12)
}
  0x86   : > { %s3796_s18 = smov 128   ;;  %s3797_s11 = smov 8  }
  0x87   : > { %3204 = dma.hbm_to_vmem [thread:$0]  (!%p4101_p8), %s4076_s19, 4096, %s292_s13, %s281_s2, %s3796_s18, %s3796_s18, %s3797_s11  }
  0x88   : > { %s3558_s15 = scalar_lea.vmem %s4106_s17, 64  ;;  %p5527_p0 = pneg %p3940_p4 }
  0x89   : > { %p3559_p9 = scmp.ne.s32.totalorder %s4106_s17, %s3558_s15  ;;  %s3798_s21 = smov [#allocation8]  }
  0x8a   : > { %s3563_s27 = sshll.u32 %s3798_s21, 4  ;;  %s3564_s27 = int_to_ptr.vmem [resolvable:$false] %s3563_s27 }
  0x8b   : > { %p3561_p13 = pnand %p3559_p9, %p5527_p0  ;;  %s3565_s20 = scalar_lea.vmem %s3564_s27, 128 }
  0x8c   : > { %p3566_p11 = scmp.lt.s32.totalorder %s4106_s17, %s3564_s27  ;;  %p3567_p3 = scmp.lt.s32.totalorder %s3565_s20, %s3558_s15 }
  0x8d   : > { %p3562_p10 = pneg %p3561_p13 }
  0x8e   : > { %p3568_p1 = por %p3567_p3, %p3566_p11 }
  0x90   : > { %p3569_p2 = pnand %p3568_p1, %p3562_p10 }
  0x92   : > { %3572 = shalt.err (!%p3569_p2)
}
  0x93   : > { %s5528_s13 = sld [smem:[#allocation31_spill]]  ;;  %s2952_s19 = sshll.u32 %s3779_s12, 12 }
  0x94   : > { %3210 = dma.hbm_to_vmem [thread:$0]  (!%p3940_p4), %s3965_s10, 64, %s4106_s17, %s3947_s6  }
  0x95   : > { %s5529_s28 = sld [smem:[#allocation44_spill]]  ;;  %p5530_p5 = pmov %p5527_p0 }
  0x96   : > { %s3799_s11 = smov [#allocation11]  }
  0x97   : > { %s3591_s15 = sshll.u32 %s3799_s11, 4  ;;  %s3592_s15 = int_to_ptr.vmem [resolvable:$false] %s3591_s15 }
  0x98   : > { %s3593_s21 = scalar_lea.vmem %s3592_s15, 8192 }
  0x99   : > { %s364_s7 = scalar_lea.vmem [#allocation11], %s5528_s13 }
  0x9a   : > { %s371_s30 = sshll.u32 %s364_s7, 4  ;;  %s372_s30 = int_to_ptr.vmem [resolvable:$true] %s371_s30 }
  0x9b   : > { %s370_s4 = scalar_lea.hbm %s5529_s28, %s2952_s19  ;;  %s3586_s18 = scalar_lea.vmem %s372_s30, 4096 }
  0x9c   : > { %p3587_p8 = scmp.ne.s32.totalorder %s372_s30, %s3586_s18  ;;  %p3594_p0 = scmp.lt.s32.totalorder %s372_s30, %s3592_s15 }
  0x9d   : > { %p3595_p13 = scmp.lt.s32.totalorder %s3593_s21, %s3586_s18 }
  0x9e   : > { %p3589_p12 = pnand %p3587_p8, %p5530_p5 }
  0x9f   : > { %p3596_p10 = por %p3595_p13, %p3594_p0 }
  0xa0   : > { %p3590_p9 = pneg %p3589_p12 }
  0xa2   : > { %p3597_p11 = pnand %p3596_p10, %p3590_p9 }
  0xa4   : > { %3600 = shalt.err (!%p3597_p11)
}
  0xa5   : > { %s3800_s6 = smov 64   ;;  %s3801_s10 = smov 4  }
  0xa6   : > { %3216 = dma.hbm_to_vmem [thread:$0]  (!%p3940_p4), %s370_s4, 4096, %s372_s30, %s3973_s25, %s3800_s6, %s3800_s6, %s3801_s10  }
  0xa7   : > { %383 = sbr.rel (%p4035_p7) target bundleno = 896 (0x380), region = 44  ;;  %s4140_s17 = sand.u32 (!%p4035_p7), 1, %s3763_s8  }
  0xa8   : > { %s2863_s27 = sshll.u32 (!%p4035_p7), %s4140_s17, 8  ;;  %s386_s20 = scalar_lea.sflag (!%p4035_p7), [#allocation4], %s4140_s17 }
  0xa9   : > { %s4146_s13 = scalar_lea.vmem (!%p4035_p7), [#allocation3], %s2863_s27 }
  0xac   : > { %3710 = dma.done.wait (%p4002_p6), %s386_s20, 4096  }
  0xad   : > { %3712 = vsyncadd (%p4002_p6), %s386_s20, 4294963200  ;;  %s5531_s25 = sld [smem:[#allocation32_spill]] }
  0xae   : > { %s5532_s23 = sld [smem:[#allocation25_spill]] }
  0xaf   : > { %s5533_s16 = sld [smem:[#allocation33_spill]] }
  0xb3   : > { %s394_s19 = sand.u32 1, %s5531_s25  }
  0xb4   : > { %s396_s1 = sand.u32 1, %s5532_s23   ;;  %s395_s28 = scalar_lea.sflag [#allocation7], %s394_s19 }
  0xb5   : > { %s2864_s2 = sshll.u32 %s396_s1, 8  ;;  %p5534_p4 = scmp.ne.s32.totalorder %s5533_s16, 0 }
  0xb6   : > { %s4154_s4 = scalar_lea.vmem [#allocation6], %s2864_s2 }
  0xb7   : > { %3714 = dma.done.wait (%p5534_p4), %s395_s28, 4160  }
  0xb8   : > { %3716 = vsyncadd (%p5534_p4), %s395_s28, 4294963136  ;;  %s4160_s7 = sshll.u32 %s396_s1, 2  ;;  %s413_s30 = scalar_lea.sflag [#allocation10], %s394_s19 }
  0xb9   : > { %s407_s0 = scalar_lea.vmem [#allocation8], %s4160_s7  ;;  %s416_s18 = scalar_lea.vmem [#allocation9], %s4160_s7 }
  0xba   : > { %3718 = dma.done.wait (%p5534_p4), %s413_s30, 4160  }
  0xbb   : > { %3720 = vsyncadd (%p5534_p4), %s413_s30, 4294963136  ;;  %s4168_s11 = scalar_lea.vmem [#allocation11], %s2864_s2  ;;  %p5535_p6 = scmp.eq.s32.totalorder %s5531_s25, 0 }
  0xbd   : > { %3722 = dma.done.wait (%p5535_p6), [#allocation13], 16   ;;  %p5536_p7 = pmov %p5535_p6 }
  0xbe   : > { %v3802_v0 = vmov 0   ;;  %v3355_v1 = vld [vmem:[%s4154_s4 + $0xe4] ss:$16 sps:$4 sm:$0xff]   ;;  %v3357_v2 = vld [vmem:[%s4154_s4 + $0xec] ss:$16 sps:$4 sm:$0xff]   ;;  %s5537_s15 = sld [smem:[#allocation24_spill]] }
  0xbf   : > { %3724 = vsyncadd (%p5536_p7), [#allocation13], 4294967280  ;;  %827 = vmatprep.mubr.bf16.mxu0 %v3802_v0  ;;  %1020 = vmatprep.mubr.bf16.mxu1 %v3802_v0  ;;  %v3359_v3 = vld [vmem:[%s4154_s4 + $0xe0] ss:$16 sps:$4 sm:$0xff]   ;;  %v3360_v4 = vld [vmem:[%s4154_s4 + $0xe8] ss:$16 sps:$4 sm:$0xff]  }
  0xc0   : > { %795 = vmatprep.subr.bf16.mxu0 %v3355_v1  ;;  %988 = vmatprep.subr.bf16.mxu1 %v3357_v2  ;;  %v3361_v5 = vld [vmem:[%s4154_s4 + $0xc4] ss:$16 sps:$4 sm:$0xff]   ;;  %v3363_v6 = vld [vmem:[%s4154_s4 + $0xcc] ss:$16 sps:$4 sm:$0xff]   ;;  %v3365_v7 = vld [vmem:[%s4154_s4 + $0xc0] ss:$16 sps:$4 sm:$0xff]  }
  0xc1   : > { %796 = vmatpush1.bf16.msra.mxu0 %v3359_v3  ;;  %989 = vmatpush1.bf16.msra.mxu1 %v3360_v4  ;;  %v3366_v8 = vld [vmem:[%s4154_s4 + $0xc8] ss:$16 sps:$4 sm:$0xff]   ;;  %v3367_v9 = vld [vmem:[%s4154_s4 + $0xa4] ss:$16 sps:$4 sm:$0xff]   ;;  %v3369_v10 = vld [vmem:[%s4154_s4 + $0xac] ss:$16 sps:$4 sm:$0xff]  }
  0xc2   : > { %797 = vmatprep.subr.bf16.mxu0 %v3361_v5  ;;  %990 = vmatprep.subr.bf16.mxu1 %v3363_v6  ;;  %v3371_v11 = vld [vmem:[%s4154_s4 + $0xa0] ss:$16 sps:$4 sm:$0xff]   ;;  %v3372_v12 = vld [vmem:[%s4154_s4 + $0xa8] ss:$16 sps:$4 sm:$0xff]   ;;  %v3373_v13 = vld [vmem:[%s4154_s4 + $0x84] ss:$16 sps:$4 sm:$0xff]  }
  0xc3   : > { %v3375_v14 = vld [vmem:[%s4154_s4 + $0x8c] ss:$16 sps:$4 sm:$0xff]   ;;  %v3377_v15 = vld [vmem:[%s4154_s4 + $0x80] ss:$16 sps:$4 sm:$0xff]   ;;  %v3378_v16 = vld [vmem:[%s4154_s4 + $0x88] ss:$16 sps:$4 sm:$0xff]  }
  0xc4   : > { %v3379_v17 = vld [vmem:[%s4154_s4 + $0x64] ss:$16 sps:$4 sm:$0xff]   ;;  %v3381_v18 = vld [vmem:[%s4154_s4 + $0x6c] ss:$16 sps:$4 sm:$0xff]   ;;  %v3383_v19 = vld [vmem:[%s4154_s4 + $0x60] ss:$16 sps:$4 sm:$0xff]  }
  0xc5   : > { %798 = vmatpush1.bf16.msra.mxu0 %v3365_v7  ;;  %991 = vmatpush1.bf16.msra.mxu1 %v3366_v8  ;;  %v3384_v20 = vld [vmem:[%s4154_s4 + $0x68] ss:$16 sps:$4 sm:$0xff]   ;;  %v3385_v21 = vld [vmem:[%s4154_s4 + $0x44] ss:$16 sps:$4 sm:$0xff]   ;;  %v3387_v22 = vld [vmem:[%s4154_s4 + $0x4c] ss:$16 sps:$4 sm:$0xff]  }
  0xc6   : > { %799 = vmatprep.subr.bf16.mxu0 %v3367_v9  ;;  %992 = vmatprep.subr.bf16.mxu1 %v3369_v10  ;;  %v3389_v23 = vld [vmem:[%s4154_s4 + $0x40] ss:$16 sps:$4 sm:$0xff]   ;;  %v3390_v24 = vld [vmem:[%s4154_s4 + $0x48] ss:$16 sps:$4 sm:$0xff]   ;;  %v3391_v25 = vld [vmem:[%s4154_s4 + $0x24] ss:$16 sps:$4 sm:$0xff]  }
  0xc7   : > { %v3393_v26 = vld [vmem:[%s4154_s4 + $0x2c] ss:$16 sps:$4 sm:$0xff]   ;;  %v3395_v27 = vld [vmem:[%s4154_s4 + $0x20] ss:$16 sps:$4 sm:$0xff]   ;;  %v3396_v28 = vld [vmem:[%s4154_s4 + $0x28] ss:$16 sps:$4 sm:$0xff]  }
  0xc8   : > { %v494_v29 = vld [vmem:[%s4146_s13] sm:$0xff]  ;;  %v495_v30 = vld [vmem:[%s4146_s13 + $0x8] sm:$0xff]  ;;  %v4206_v31 = vld [vmem:[#allocation12] ss:$0 sm:$0xff]  ;;  %s5469_s21 = sand.u32 1, %s5537_s15   ;;  %s5211_s20 = scalar_lea.vmem [#allocation14], %s2863_s27 }
  0xc9   : > { %800 = vmatpush1.bf16.msra.mxu0 %v3371_v11  ;;  %993 = vmatpush1.bf16.msra.mxu1 %v3372_v12  ;;  %v3397_v32 = vld [vmem:[%s4154_s4 + $0x4] ss:$16 sps:$4 sm:$0xff]   ;;  %v3399_v33 = vld [vmem:[%s4154_s4 + $0xc] ss:$16 sps:$4 sm:$0xff]   ;;  %v533_v34 = vsub.f32 %v494_v29, %v4206_v31  ;;  %v534_v35 = vsub.f32 %v495_v30, %v4206_v31  ;;  %v3401_v36 = vld [vmem:[%s4154_s4] ss:$16 sps:$4 sm:$0xff]  }
  0xca   : > { %801 = vmatprep.subr.bf16.mxu0 %v3373_v13  ;;  %994 = vmatprep.subr.bf16.mxu1 %v3375_v14  ;;  %v3402_v37 = vld [vmem:[%s4154_s4 + $0x8] ss:$16 sps:$4 sm:$0xff]   ;;  %v496_v41 = vld [vmem:[%s4146_s13 + $0x10] sm:$0xff]  ;;  %v3407_v47 = vld [vmem:[%s4168_s11 + $0x70] sm:$0xff]   ;;  %s2870_s6 = sshll.u32 %s5469_s21, 10 }
  0xcb   : > { %v3403_v38 = vld [vmem:[%s4168_s11 + $0x78] sm:$0xff]   ;;  %v565_v40 = vpack.c.bf16 %v534_v35, %v533_v34  ;;  %v497_v42 = vld [vmem:[%s4146_s13 + $0x18] sm:$0xff]  ;;  %v535_v45 = vsub.f32 %v496_v41, %v4206_v31  ;;  %v3408_v48 = vld [vmem:[%s4168_s11 + $0xf0] sm:$0xff]   ;;  %s4357_s10 = scalar_lea.vmem [#allocation15], %s2870_s6 }
  0xcc   : > { %v3404_v39 = vld [vmem:[%s4168_s11 + $0xf8] sm:$0xff]   ;;  %v536_v46 = vsub.f32 %v497_v42, %v4206_v31  ;;  %v3409_v49 = vld [vmem:[%s4168_s11 + $0x30] sm:$0xff]   ;;  %v3411_v54 = vld [vmem:[%s4168_s11 + $0x68] sm:$0xff]  }
  0xcd   : > { %802 = vmatpush1.bf16.msra.mxu0 %v3377_v15  ;;  %995 = vmatpush1.bf16.msra.mxu1 %v3378_v16  ;;  %v3405_v43 = vld [vmem:[%s4168_s11 + $0x38] sm:$0xff]   ;;  %v3410_v50 = vld [vmem:[%s4168_s11 + $0xb0] sm:$0xff]   ;;  %v3412_v55 = vld [vmem:[%s4168_s11 + $0xe8] sm:$0xff]  }
  0xce   : > { %803 = vmatprep.subr.bf16.mxu0 %v3379_v17  ;;  %996 = vmatprep.subr.bf16.mxu1 %v3381_v18  ;;  %v3406_v44 = vld [vmem:[%s4168_s11 + $0xb8] sm:$0xff]   ;;  %v566_v51 = vpack.c.bf16 %v536_v46, %v535_v45  ;;  %v498_v52 = vld [vmem:[%s4146_s13 + $0x20] sm:$0xff]  ;;  %v3413_v56 = vld [vmem:[%s4168_s11 + $0x28] sm:$0xff]  }
  0xcf   : > { %v499_v53 = vld [vmem:[%s4146_s13 + $0x28] sm:$0xff]  ;;  %v537_v57 = vsub.f32 %v498_v52, %v4206_v31  ;;  %v3414_v59 = vld [vmem:[%s4168_s11 + $0xa8] sm:$0xff]   ;;  %v3415_v60 = vld [vmem:[%s4168_s11 + $0x60] sm:$0xff]  }
  0xd0   : > { %v538_v58 = vsub.f32 %v499_v53, %v4206_v31  ;;  %v500_v61 = vld [vmem:[%s4146_s13 + $0x30] sm:$0xff]  ;;  %v501_v62 = vld [vmem:[%s4146_s13 + $0x38] sm:$0xff]  ;;  %v3419_v4 = vld [vmem:[%s4168_s11 + $0x58] sm:$0xff]  }
  0xd1   : > { %804 = vmatpush1.bf16.msra.mxu0 %v3383_v19  ;;  %997 = vmatpush1.bf16.msra.mxu1 %v3384_v20  ;;  %v3416_v63 = vld [vmem:[%s4168_s11 + $0xe0] sm:$0xff]   ;;  %v3420_v5 = vld [vmem:[%s4168_s11 + $0xd8] sm:$0xff]   ;;  %v539_v6 = vsub.f32 %v500_v61, %v4206_v31  ;;  %v540_v7 = vsub.f32 %v501_v62, %v4206_v31  ;;  %v3423_v10 = vld [vmem:[%s4168_s11 + $0x50] sm:$0xff]  }
  0xd2   : > { %805 = vmatprep.subr.bf16.mxu0 %v3385_v21  ;;  %998 = vmatprep.subr.bf16.mxu1 %v3387_v22  ;;  %v567_v1 = vpack.c.bf16 %v538_v58, %v537_v57  ;;  %v3417_v2 = vld [vmem:[%s4168_s11 + $0x20] sm:$0xff]   ;;  %v3421_v8 = vld [vmem:[%s4168_s11 + $0x18] sm:$0xff]   ;;  %v502_v11 = vld [vmem:[%s4146_s13 + $0x40] sm:$0xff] }
  0xd3   : > { %v3418_v3 = vld [vmem:[%s4168_s11 + $0xa0] sm:$0xff]   ;;  %v3422_v9 = vld [vmem:[%s4168_s11 + $0x98] sm:$0xff]   ;;  %v3424_v13 = vld [vmem:[%s4168_s11 + $0xd0] sm:$0xff]   ;;  %v568_v14 = vpack.c.bf16 %v540_v7, %v539_v6  ;;  %v541_v19 = vsub.f32 %v502_v11, %v4206_v31 }
  0xd4   : > { %v503_v12 = vld [vmem:[%s4146_s13 + $0x48] sm:$0xff]  ;;  %v3425_v15 = vld [vmem:[%s4168_s11 + $0x10] sm:$0xff]   ;;  %v3427_v17 = vld [vmem:[%s4168_s11 + $0x48] sm:$0xff]  }
  0xd5   : > { %806 = vmatpush1.bf16.msra.mxu0 %v3389_v23  ;;  %999 = vmatpush1.bf16.msra.mxu1 %v3390_v24  ;;  %v3426_v16 = vld [vmem:[%s4168_s11 + $0x90] sm:$0xff]   ;;  %v3428_v18 = vld [vmem:[%s4168_s11 + $0xc8] sm:$0xff]   ;;  %v542_v20 = vsub.f32 %v503_v12, %v4206_v31  ;;  %v504_v24 = vld [vmem:[%s4146_s13 + $0x50] sm:$0xff] }
  0xd6   : > { %807 = vmatprep.subr.bf16.mxu0 %v3391_v25  ;;  %1000 = vmatprep.subr.bf16.mxu1 %v3393_v26  ;;  %v3429_v21 = vld [vmem:[%s4168_s11 + $0x8] sm:$0xff]   ;;  %v543_v26 = vsub.f32 %v504_v24, %v4206_v31  ;;  %v506_v29 = vld [vmem:[%s4146_s13 + $0x60] sm:$0xff]  ;;  %v507_v30 = vld [vmem:[%s4146_s13 + $0x68] sm:$0xff] }
  0xd7   : > { %v3430_v22 = vld [vmem:[%s4168_s11 + $0x88] sm:$0xff]   ;;  %v569_v23 = vpack.c.bf16 %v542_v20, %v541_v19  ;;  %v508_v35 = vld [vmem:[%s4146_s13 + $0x70] sm:$0xff]  ;;  %v511_v41 = vld [vmem:[%s4146_s13 + $0x88] sm:$0xff] }
  0xd8   : > { %v505_v25 = vld [vmem:[%s4146_s13 + $0x58] sm:$0xff]  ;;  %v512_v45 = vld [vmem:[%s4146_s13 + $0x90] sm:$0xff]  ;;  %v522_v11 = vld [vmem:[%s4146_s13 + $0xe0] sm:$0xff] }
  0xd9   : > { %808 = vmatpush1.bf16.msra.mxu0 %v3395_v27  ;;  %1001 = vmatpush1.bf16.msra.mxu1 %v3396_v28  ;;  %v544_v27 = vsub.f32 %v505_v25, %v4206_v31  ;;  %v513_v46 = vld [vmem:[%s4146_s13 + $0x98] sm:$0xff]  ;;  %v3431_v52 = vld [vmem:[%s4168_s11 + $0x40] sm:$0xff]   ;;  %v523_v12 = vld [vmem:[%s4146_s13 + $0xe8] sm:$0xff] }
  0xda   : > { %809 = vmatprep.subr.bf16.mxu0 %v3397_v32  ;;  %1002 = vmatprep.subr.bf16.mxu1 %v3399_v33  ;;  %v545_v32 = vsub.f32 %v506_v29, %v4206_v31  ;;  %v546_v33 = vsub.f32 %v507_v30, %v4206_v31  ;;  %v3432_v53 = vld [vmem:[%s4168_s11 + $0xc0] sm:$0xff]   ;;  %v521_v7 = vld [vmem:[%s4146_s13 + $0xd8] sm:$0xff]  ;;  %v613_v25 = vld [vmem:[%s407_s0] sm:$0xf] }
  0xdb   : > { %v570_v28 = vpack.c.bf16 %v544_v27, %v543_v26  ;;  %v3434_v57 = vld [vmem:[%s4168_s11 + $0x80] sm:$0xff]  }
  0xdc   : > { %v571_v34 = vpack.c.bf16 %v546_v33, %v545_v32  ;;  %v520_v6 = vld [vmem:[%s4146_s13 + $0xd0] sm:$0xff] }
  0xdd   : > { %810 = vmatpush1.bf16.msra.mxu0 %v3401_v36  ;;  %1003 = vmatpush1.bf16.msra.mxu1 %v3402_v37  ;;  %v509_v36 = vld [vmem:[%s4146_s13 + $0x78] sm:$0xff]  ;;  %v547_v37 = vsub.f32 %v508_v35, %v4206_v31 }
  0xde   : > { %2955 = vmatprep.subr.bf16.mxu0 %v3403_v38  ;;  %3067 = vmatprep.subr.bf16.mxu1 %v3404_v39  ;;  %v548_v38 = vsub.f32 %v509_v36, %v4206_v31 }
  0xe0   : > { %828 = vmatmul.mubr.bf16.vlgmr.msra.gmra.mxu0 %v565_v40  ;;  %1021 = vmatmul.mubr.bf16.vlgmr.msra.gmra.mxu1 %v565_v40  ;;  %v572_v39 = vpack.c.bf16 %v548_v38, %v547_v37  ;;  %v510_v40 = vld [vmem:[%s4146_s13 + $0x80] sm:$0xff] }
  0xe1   : > { %837 = vmatprep.mubr.bf16.mxu0 %v3802_v0  ;;  %1030 = vmatprep.mubr.bf16.mxu1 %v3802_v0  ;;  %v549_v42 = vsub.f32 %v510_v40, %v4206_v31 }
  0xe2   : > { %2956 = vmatpush3.bf16.msra.mxu0 %v3405_v43  ;;  %3068 = vmatpush3.bf16.msra.mxu1 %v3406_v44  ;;  %v550_v43 = vsub.f32 %v511_v41, %v4206_v31 }
  0xe3   : > { %2957 = vmatprep.subr.bf16.mxu0 %v3407_v47  ;;  %3069 = vmatprep.subr.bf16.mxu1 %v3408_v48  ;;  %v551_v47 = vsub.f32 %v512_v45, %v4206_v31  ;;  %v552_v48 = vsub.f32 %v513_v46, %v4206_v31 }
  0xe4   : > { %v573_v44 = vpack.c.bf16 %v550_v43, %v549_v42  ;;  %v1565_v42 = vld [vmem:[%s416_s18] sm:$0xf] }
  0xe6   : > { %2958 = vmatpush3.bf16.msra.mxu0 %v3409_v49  ;;  %3070 = vmatpush3.bf16.msra.mxu1 %v3410_v50  ;;  %v574_v49 = vpack.c.bf16 %v552_v48, %v551_v47  ;;  %v514_v50 = vld [vmem:[%s4146_s13 + $0xa0] sm:$0xff] }
  0xe7   : > { %2959 = vmatprep.subr.bf16.mxu0 %v3411_v54  ;;  %3071 = vmatprep.subr.bf16.mxu1 %v3412_v55  ;;  %v553_v54 = vsub.f32 %v514_v50, %v4206_v31 }
  0xe8   : > { %838 = vmatmul.mubr.bf16.gmra.mxu0 %v566_v51  ;;  %1031 = vmatmul.mubr.bf16.gmra.mxu1 %v566_v51  ;;  %v515_v51 = vld [vmem:[%s4146_s13 + $0xa8] sm:$0xff] }
  0xe9   : > { %847 = vmatprep.mubr.bf16.mxu0 %v3802_v0  ;;  %1040 = vmatprep.mubr.bf16.mxu1 %v3802_v0  ;;  %v554_v55 = vsub.f32 %v515_v51, %v4206_v31 }
  0xea   : > { %2960 = vmatpush3.bf16.msra.mxu0 %v3413_v56  ;;  %3072 = vmatpush3.bf16.msra.mxu1 %v3414_v59  ;;  %v3433_v56 = vld [vmem:[%s4168_s11] sm:$0xff]  }
  0xeb   : > { %2961 = vmatprep.subr.bf16.mxu0 %v3415_v60  ;;  %3073 = vmatprep.subr.bf16.mxu1 %v3416_v63  ;;  %v575_v58 = vpack.c.bf16 %v554_v55, %v553_v54  ;;  %v516_v59 = vld [vmem:[%s4146_s13 + $0xb0] sm:$0xff]  ;;  %v517_v60 = vld [vmem:[%s4146_s13 + $0xb8] sm:$0xff] }
  0xec   : > { %v555_v61 = vsub.f32 %v516_v59, %v4206_v31  ;;  %v556_v62 = vsub.f32 %v517_v60, %v4206_v31 }
  0xee   : > { %2962 = vmatpush3.bf16.msra.mxu0 %v3417_v2  ;;  %3074 = vmatpush3.bf16.msra.mxu1 %v3418_v3  ;;  %v576_v63 = vpack.c.bf16 %v556_v62, %v555_v61  ;;  %v519_v2 = vld [vmem:[%s4146_s13 + $0xc8] sm:$0xff] }
  0xef   : > { %2963 = vmatprep.subr.bf16.mxu0 %v3419_v4  ;;  %3075 = vmatprep.subr.bf16.mxu1 %v3420_v5  ;;  %v558_v4 = vsub.f32 %v519_v2, %v4206_v31 }
  0xf0   : > { %848 = vmatmul.mubr.bf16.gmra.mxu0 %v567_v1  ;;  %1041 = vmatmul.mubr.bf16.gmra.mxu1 %v567_v1  ;;  %v518_v1 = vld [vmem:[%s4146_s13 + $0xc0] sm:$0xff] }
  0xf1   : > { %857 = vmatprep.mubr.bf16.mxu0 %v3802_v0  ;;  %1050 = vmatprep.mubr.bf16.mxu1 %v3802_v0  ;;  %v557_v3 = vsub.f32 %v518_v1, %v4206_v31 }
  0xf2   : > { %2964 = vmatpush3.bf16.msra.mxu0 %v3421_v8  ;;  %3076 = vmatpush3.bf16.msra.mxu1 %v3422_v9  ;;  %v559_v8 = vsub.f32 %v520_v6, %v4206_v31  ;;  %v560_v9 = vsub.f32 %v521_v7, %v4206_v31 }
  0xf3   : > { %2965 = vmatprep.subr.bf16.mxu0 %v3423_v10  ;;  %3077 = vmatprep.subr.bf16.mxu1 %v3424_v13  ;;  %v577_v5 = vpack.c.bf16 %v558_v4, %v557_v3  ;;  %v561_v13 = vsub.f32 %v522_v11, %v4206_v31 }
  0xf4   : > { %v578_v10 = vpack.c.bf16 %v560_v9, %v559_v8 }
  0xf6   : > { %2966 = vmatpush3.bf16.msra.mxu0 %v3425_v15  ;;  %3078 = vmatpush3.bf16.msra.mxu1 %v3426_v16  ;;  %v524_v16 = vld [vmem:[%s4146_s13 + $0xf0] sm:$0xff] }
  0xf7   : > { %2967 = vmatprep.subr.bf16.mxu0 %v3427_v17  ;;  %3079 = vmatprep.subr.bf16.mxu1 %v3428_v18  ;;  %v525_v17 = vld [vmem:[%s4146_s13 + $0xf8] sm:$0xff]  ;;  %v563_v18 = vsub.f32 %v524_v16, %v4206_v31  ;;  %s5538_s13 = sld [smem:[#allocation27_spill]] }
  0xf8   : > { %858 = vmatmul.mubr.bf16.gmra.mxu0 %v568_v14  ;;  %1051 = vmatmul.mubr.bf16.gmra.mxu1 %v568_v14  ;;  %v562_v14 = vsub.f32 %v523_v12, %v4206_v31  ;;  %v564_v19 = vsub.f32 %v525_v17, %v4206_v31 }
  0xf9   : > { %867 = vmatprep.mubr.bf16.mxu0 %v3802_v0  ;;  %1060 = vmatprep.mubr.bf16.mxu1 %v3802_v0 }
  0xfa   : > { %2968 = vmatpush3.bf16.msra.mxu0 %v3429_v21  ;;  %3080 = vmatpush3.bf16.msra.mxu1 %v3430_v22  ;;  %v579_v15 = vpack.c.bf16 %v562_v14, %v561_v13  ;;  %v580_v20 = vpack.c.bf16 %v564_v19, %v563_v18  ;;  %v615_v21 = vlaneseq }
  0xfb   : > { %2969 = vmatprep.subr.bf16.mxu0 %v3431_v52  ;;  %3081 = vmatprep.subr.bf16.mxu1 %v3432_v53 }
  0xfc   : > { %v616_v22 = vshrl.u32 %v615_v21, 7 }
  0xfd   : > { %p2936_p3 = scmp.ne.s32.totalorder %s5538_s13, 0 }
  0xfe   : > { %2970 = vmatpush3.bf16.msra.mxu0 %v3433_v56  ;;  %3082 = vmatpush3.bf16.msra.mxu1 %v3434_v57  ;;  %v625_v24 = vsub.s32 2, %v616_v22  ;;  %v621_v26 = vsub.s32 1, %v616_v22  ;;  %v629_v27 = vsub.s32 3, %v616_v22 }
 0x100   : > { %868 = vmatmul.mubr.bf16.gmra.mxu0 %v569_v23  ;;  %1061 = vmatmul.mubr.bf16.gmra.mxu1 %v569_v23  ;;  %v617_v23 = vsub.s32 0, %v616_v22  ;;  %v4340_v29 = vrot.slane %v613_v25, %v625_v24  ;;  %v4343_v30 = vrot.slane %v613_v25, %v621_v26  ;;  %v4363_v54 = vrot.slane %v1565_v42, %v625_v24 }
 0x101   : > { %877 = vmatprep.mubr.bf16.mxu0 %v3802_v0  ;;  %1070 = vmatprep.mubr.bf16.mxu1 %v3802_v0  ;;  %v4371_v1 = vrot.slane %v1565_v42, %v629_v27 }
 0x102   : > { %v4360_v53 = vrot.slane %v1565_v42, %v617_v23 }
 0x108   : > { %878 = vmatmul.mubr.bf16.gmra.mxu0 %v570_v28  ;;  %1071 = vmatmul.mubr.bf16.gmra.mxu1 %v570_v28  ;;  %v4338_v28 = vrot.slane %v613_v25, %v617_v23 }
 0x109   : > { %887 = vmatprep.mubr.bf16.mxu0 %v3802_v0  ;;  %1080 = vmatprep.mubr.bf16.mxu1 %v3802_v0 }
 0x110   : > { %888 = vmatmul.mubr.bf16.gmra.mxu0 %v571_v34  ;;  %1081 = vmatmul.mubr.bf16.gmra.mxu1 %v571_v34 }
 0x111   : > { %897 = vmatprep.mubr.bf16.mxu0 %v3802_v0  ;;  %1090 = vmatprep.mubr.bf16.mxu1 %v3802_v0 }
 0x118   : > { %898 = vmatmul.mubr.bf16.gmra.mxu0 %v572_v39  ;;  %1091 = vmatmul.mubr.bf16.gmra.mxu1 %v572_v39 }
 0x119   : > { %907 = vmatprep.mubr.bf16.mxu0 %v3802_v0  ;;  %1100 = vmatprep.mubr.bf16.mxu1 %v3802_v0 }
 0x120   : > { %908 = vmatmul.mubr.bf16.gmra.mxu0 %v573_v44  ;;  %1101 = vmatmul.mubr.bf16.gmra.mxu1 %v573_v44 }
 0x121   : > { %917 = vmatprep.mubr.bf16.mxu0 %v3802_v0  ;;  %1110 = vmatprep.mubr.bf16.mxu1 %v3802_v0 }
 0x128   : > { %918 = vmatmul.mubr.bf16.gmra.mxu0 %v574_v49  ;;  %1111 = vmatmul.mubr.bf16.gmra.mxu1 %v574_v49 }
 0x129   : > { %927 = vmatprep.mubr.bf16.mxu0 %v3802_v0  ;;  %1120 = vmatprep.mubr.bf16.mxu1 %v3802_v0 }
 0x130   : > { %928 = vmatmul.mubr.bf16.gmra.mxu0 %v575_v58  ;;  %1121 = vmatmul.mubr.bf16.gmra.mxu1 %v575_v58 }
 0x131   : > { %937 = vmatprep.mubr.bf16.mxu0 %v3802_v0  ;;  %1130 = vmatprep.mubr.bf16.mxu1 %v3802_v0 }
 0x138   : > { %938 = vmatmul.mubr.bf16.gmra.mxu0 %v576_v63  ;;  %1131 = vmatmul.mubr.bf16.gmra.mxu1 %v576_v63  ;;  %v4368_v63 = vrot.slane %v1565_v42, %v621_v26 }
 0x139   : > { %947 = vmatprep.mubr.bf16.mxu0 %v3802_v0  ;;  %1140 = vmatprep.mubr.bf16.mxu1 %v3802_v0 }
 0x140   : > { %948 = vmatmul.mubr.bf16.gmra.mxu0 %v577_v5  ;;  %1141 = vmatmul.mubr.bf16.gmra.mxu1 %v577_v5 }
 0x141   : > { %957 = vmatprep.mubr.bf16.mxu0 %v3802_v0  ;;  %1150 = vmatprep.mubr.bf16.mxu1 %v3802_v0 }
 0x148   : > { %958 = vmatmul.mubr.bf16.gmra.mxu0 %v578_v10  ;;  %1151 = vmatmul.mubr.bf16.gmra.mxu1 %v578_v10 }
 0x149   : > { %967 = vmatprep.mubr.bf16.mxu0 %v3802_v0  ;;  %1160 = vmatprep.mubr.bf16.mxu1 %v3802_v0 }
 0x150   : > { %968 = vmatmul.mubr.bf16.gmra.mxu0 %v579_v15  ;;  %1161 = vmatmul.mubr.bf16.gmra.mxu1 %v579_v15 }
 0x151   : > { %977 = vmatprep.mubr.bf16.mxu0 %v3802_v0  ;;  %1170 = vmatprep.mubr.bf16.mxu1 %v3802_v0  ;;  %v4345_v0 = vrot.slane %v613_v25, %v629_v27 }
 0x158   : > { %978 = vmatmul.mubr.bf16.gmra.mxu0 %v580_v20  ;;  %1171 = vmatmul.mubr.bf16.gmra.mxu1 %v580_v20 }
 0x1a0   : > { %v829_v32 = vpop.f32.mrf.mxu0  ;;  %v1022_v33 = vpop.f32.mrf.mxu1 }
 0x1a1   : > { %v830_v34 = vadd.f32 %v829_v32, %v4338_v28  ;;  %v1023_v35 = vadd.f32 %v1022_v33, %v4340_v29 }
 0x1a2   : > { %v831_v36 = vpop.f32.mrf.mxu0  ;;  %v1024_v37 = vpop.f32.mrf.mxu1 }
 0x1a3   : > { %v1181_v38 = vmax.f32 %v830_v34, 0.0  ;;  %v1183_v39 = vmax.f32 %v1023_v35, 0.0  ;;  %v832_v40 = vadd.f32 %v831_v36, %v4343_v30  ;;  %v1025_v41 = vadd.f32 %v1024_v37, %v4345_v0 }
 0x1a4   : > { %v833_v43 = vpop.f32.mrf.mxu0  ;;  %v1026_v44 = vpop.f32.mrf.mxu1 }
 0x1a5   : > { %v1309_v45 = vmin.f32 %v1181_v38, 6.0  ;;  %v1311_v46 = vmin.f32 %v1183_v39, 6.0  ;;  %v1182_v47 = vmax.f32 %v832_v40, 0.0  ;;  %v1184_v48 = vmax.f32 %v1025_v41, 0.0 }
 0x1a6   : > { %v834_v49 = vadd.f32 %v833_v43, %v4338_v28  ;;  %v1027_v50 = vadd.f32 %v1026_v44, %v4340_v29  ;;  %v835_v51 = vpop.f32.mrf.mxu0  ;;  %v1028_v52 = vpop.f32.mrf.mxu1 }
 0x1a7   : > { %1437 = vst [vmem:[%s4357_s10] sm:$0xff] %v1309_v45  ;;  %1439 = vst [vmem:[%s4357_s10 + $0x10] sm:$0xff] %v1311_v46  ;;  %v1310_v55 = vmin.f32 %v1182_v47, 6.0  ;;  %v1312_v56 = vmin.f32 %v1184_v48, 6.0  ;;  %v836_v59 = vadd.f32 %v835_v51, %v4343_v30  ;;  %v1029_v60 = vadd.f32 %v1028_v52, %v4345_v0 }
 0x1a8   : > { %v1185_v57 = vmax.f32 %v834_v49, 0.0  ;;  %v1187_v58 = vmax.f32 %v1027_v50, 0.0  ;;  %v839_v61 = vpop.f32.mrf.mxu0  ;;  %v1032_v62 = vpop.f32.mrf.mxu1  ;;  %v1587_v24 = vmul.f32 %v4360_v53, %v1309_v45  ;;  %v1589_v25 = vmul.f32 %v4363_v54, %v1311_v46 }
 0x1a9   : > { %1438 = vst [vmem:[%s4357_s10 + $0x8] sm:$0xff] %v1310_v55  ;;  %1440 = vst [vmem:[%s4357_s10 + $0x18] sm:$0xff] %v1312_v56  ;;  %v840_v2 = vadd.f32 %v839_v61, %v4338_v28  ;;  %v1033_v3 = vadd.f32 %v1032_v62, %v4340_v29  ;;  %v1186_v6 = vmax.f32 %v836_v59, 0.0  ;;  %v1188_v7 = vmax.f32 %v1029_v60, 0.0 }
 0x1aa   : > { %v1313_v4 = vmin.f32 %v1185_v57, 6.0  ;;  %v1315_v5 = vmin.f32 %v1187_v58, 6.0  ;;  %v841_v8 = vpop.f32.mrf.mxu0  ;;  %v1034_v9 = vpop.f32.mrf.mxu1  ;;  %v1588_v26 = vmul.f32 %v4368_v63, %v1310_v55  ;;  %v1590_v27 = vmul.f32 %v4371_v1, %v1312_v56 }
 0x1ab   : > { %v1189_v10 = vmax.f32 %v840_v2, 0.0  ;;  %v1191_v11 = vmax.f32 %v1033_v3, 0.0  ;;  %v842_v12 = vadd.f32 %v841_v8, %v4343_v30  ;;  %v1035_v13 = vadd.f32 %v1034_v9, %v4345_v0 }
 0x1ac   : > { %1441 = vst [vmem:[%s4357_s10 + $0x20] sm:$0xff] %v1313_v4  ;;  %v4379_v14 = vmul.f32 %v4360_v53, %v1313_v4  ;;  %1443 = vst [vmem:[%s4357_s10 + $0x30] sm:$0xff] %v1315_v5  ;;  %v4383_v15 = vmul.f32 %v4363_v54, %v1315_v5  ;;  %v1314_v16 = vmin.f32 %v1186_v6, 6.0  ;;  %v1316_v17 = vmin.f32 %v1188_v7, 6.0  ;;  %v843_v18 = vpop.f32.mrf.mxu0  ;;  %v1036_v19 = vpop.f32.mrf.mxu1 }
 0x1ad   : > { %v4385_v20 = vmin.f32 %v1189_v10, 6.0  ;;  %v4387_v21 = vmin.f32 %v1191_v11, 6.0  ;;  %v1190_v22 = vmax.f32 %v842_v12, 0.0  ;;  %v1192_v23 = vmax.f32 %v1035_v13, 0.0 }
 0x1ae   : > { %1442 = vst [vmem:[%s4357_s10 + $0x28] sm:$0xff] %v1314_v16  ;;  %1444 = vst [vmem:[%s4357_s10 + $0x38] sm:$0xff] %v1316_v17  ;;  %v845_v32 = vpop.f32.mrf.mxu0  ;;  %v1038_v33 = vpop.f32.mrf.mxu1  ;;  %v1592_v34 = vmul.f32 %v4368_v63, %v1314_v16  ;;  %v1594_v35 = vmul.f32 %v4371_v1, %v1316_v17  ;;  %v844_v38 = vadd.f32 %v843_v18, %v4338_v28 }
 0x1af   : > { %1445 = vst [vmem:[%s4357_s10 + $0x40] sm:$0xff] %v4385_v20  ;;  %1447 = vst [vmem:[%s4357_s10 + $0x50] sm:$0xff] %v4387_v21  ;;  %v1318_v36 = vmin.f32 %v1190_v22, 6.0  ;;  %v1320_v37 = vmin.f32 %v1192_v23, 6.0  ;;  %v1037_v39 = vadd.f32 %v1036_v19, %v4340_v29  ;;  %v846_v40 = vadd.f32 %v845_v32, %v4343_v30 }
 0x1b0   : > { %v1039_v41 = vadd.f32 %v1038_v33, %v4345_v0  ;;  %v849_v42 = vpop.f32.mrf.mxu0  ;;  %v1042_v43 = vpop.f32.mrf.mxu1  ;;  %v1715_v44 = vpack.c.bf16 %v4379_v14, %v1587_v24  ;;  %v1717_v45 = vpack.c.bf16 %v4383_v15, %v1589_v25  ;;  %v1193_v48 = vmax.f32 %v844_v38, 0.0 }
 0x1b1   : > { %1446 = vst [vmem:[%s4357_s10 + $0x48] sm:$0xff] %v1318_v36  ;;  %1448 = vst [vmem:[%s4357_s10 + $0x58] sm:$0xff] %v1320_v37  ;;  %v850_v46 = vadd.f32 %v849_v42, %v4338_v28  ;;  %v1043_v47 = vadd.f32 %v1042_v43, %v4340_v29  ;;  %v1195_v49 = vmax.f32 %v1037_v39, 0.0  ;;  %v1194_v50 = vmax.f32 %v846_v40, 0.0 }
 0x1b2   : > { %v1196_v51 = vmax.f32 %v1039_v41, 0.0  ;;  %v851_v52 = vpop.f32.mrf.mxu0  ;;  %v1044_v55 = vpop.f32.mrf.mxu1  ;;  %v1716_v58 = vpack.c.bf16 %v1592_v34, %v1588_v26  ;;  %v1718_v59 = vpack.c.bf16 %v1594_v35, %v1590_v27  ;;  %v1321_v60 = vmin.f32 %v1193_v48, 6.0 }
 0x1b3   : > { %v1197_v56 = vmax.f32 %v850_v46, 0.0  ;;  %v1199_v57 = vmax.f32 %v1043_v47, 0.0  ;;  %v1323_v61 = vmin.f32 %v1195_v49, 6.0  ;;  %v1322_v62 = vmin.f32 %v1194_v50, 6.0 }
 0x1b4   : > { %v1324_v2 = vmin.f32 %v1196_v51, 6.0  ;;  %v853_v3 = vpop.f32.mrf.mxu0  ;;  %v1046_v4 = vpop.f32.mrf.mxu1  ;;  %2067 = vmatprep.mubr.bf16.mxu0 %v1716_v58  ;;  %2228 = vmatprep.mubr.bf16.mxu1 %v1718_v59  ;;  %v852_v7 = vadd.f32 %v851_v52, %v4343_v30  ;;  %v1045_v8 = vadd.f32 %v1044_v55, %v4345_v0  ;;  %v1596_v9 = vmul.f32 %v4368_v63, %v1318_v36 }
 0x1b5   : > { %v4411_v5 = vmin.f32 %v1197_v56, 6.0  ;;  %v4413_v6 = vmin.f32 %v1199_v57, 6.0  ;;  %v1598_v10 = vmul.f32 %v4371_v1, %v1320_v37  ;;  %1449 = vst [vmem:[%s4357_s10 + $0x60] sm:$0xff] %v1321_v60  ;;  %1451 = vst [vmem:[%s4357_s10 + $0x70] sm:$0xff] %v1323_v61  ;;  %2068 = vmatmul.mubr.bf16.vlgmr.msra.gmra.mxu0 %v1715_v44  ;;  %v1600_v13 = vmul.f32 %v4368_v63, %v1322_v62 }
 0x1b6   : > { %1450 = vst [vmem:[%s4357_s10 + $0x68] sm:$0xff] %v1322_v62  ;;  %1452 = vst [vmem:[%s4357_s10 + $0x78] sm:$0xff] %v1324_v2  ;;  %v855_v11 = vpop.f32.mrf.mxu0  ;;  %v1048_v12 = vpop.f32.mrf.mxu1  ;;  %v1602_v14 = vmul.f32 %v4371_v1, %v1324_v2  ;;  %v1198_v15 = vmax.f32 %v852_v7, 0.0  ;;  %v1200_v16 = vmax.f32 %v1045_v8, 0.0  ;;  %2229 = vmatmul.mubr.bf16.vlgmr.msra.gmra.mxu1 %v1717_v45  ;;  %v854_v17 = vadd.f32 %v853_v3, %v4338_v28 }
 0x1b7   : > { %1453 = vst [vmem:[%s4357_s10 + $0x80] sm:$0xff] %v4411_v5  ;;  %1455 = vst [vmem:[%s4357_s10 + $0x90] sm:$0xff] %v4413_v6  ;;  %v1047_v18 = vadd.f32 %v1046_v4, %v4340_v29  ;;  %v856_v19 = vadd.f32 %v855_v11, %v4343_v30  ;;  %v1049_v22 = vadd.f32 %v1048_v12, %v4345_v0 }
 0x1b8   : > { %v859_v23 = vpop.f32.mrf.mxu0  ;;  %v1052_v24 = vpop.f32.mrf.mxu1  ;;  %v1326_v25 = vmin.f32 %v1198_v15, 6.0  ;;  %v4433_v26 = vmin.f32 %v1200_v16, 6.0  ;;  %v1201_v33 = vmax.f32 %v854_v17, 0.0  ;;  %v1599_v39 = vmul.f32 %v4360_v53, %v1321_v60 }
 0x1b9   : > { %v860_v27 = vadd.f32 %v859_v23, %v4338_v28  ;;  %v1053_v32 = vadd.f32 %v1052_v24, %v4340_v29  ;;  %v1203_v34 = vmax.f32 %v1047_v18, 0.0  ;;  %v1202_v35 = vmax.f32 %v856_v19, 0.0 }
 0x1ba   : > { %v1204_v36 = vmax.f32 %v1049_v22, 0.0  ;;  %v861_v37 = vpop.f32.mrf.mxu0  ;;  %v1054_v38 = vpop.f32.mrf.mxu1  ;;  %v1601_v40 = vmul.f32 %v4363_v54, %v1323_v61  ;;  %1454 = vst [vmem:[%s4357_s10 + $0x88] sm:$0xff] %v1326_v25  ;;  %1456 = vst [vmem:[%s4357_s10 + $0x98] sm:$0xff] %v4433_v26  ;;  %v1329_v43 = vmin.f32 %v1201_v33, 6.0  ;;  %v1720_v51 = vpack.c.bf16 %v1600_v13, %v1596_v9 }
 0x1bb   : > { %v1205_v41 = vmax.f32 %v860_v27, 0.0  ;;  %v1207_v42 = vmax.f32 %v1053_v32, 0.0  ;;  %v1331_v44 = vmin.f32 %v1203_v34, 6.0  ;;  %v1330_v45 = vmin.f32 %v1202_v35, 6.0 }
 0x1bc   : > { %v1332_v46 = vmin.f32 %v1204_v36, 6.0  ;;  %v863_v47 = vpop.f32.mrf.mxu0  ;;  %v1056_v48 = vpop.f32.mrf.mxu1  ;;  %v1722_v52 = vpack.c.bf16 %v1602_v14, %v1598_v10  ;;  %v1595_v55 = vmul.f32 %v4360_v53, %v4385_v20  ;;  %v1597_v56 = vmul.f32 %v4363_v54, %v4387_v21  ;;  %1457 = vst [vmem:[%s4357_s10 + $0xa0] sm:$0xff] %v1329_v43  ;;  %2075 = vmatprep.mubr.bf16.mxu0 %v1720_v51 }
 0x1bd   : > { %v4442_v49 = vmin.f32 %v1205_v41, 6.0  ;;  %v4444_v50 = vmin.f32 %v1207_v42, 6.0  ;;  %v4451_v57 = vmul.f32 %v4368_v63, %v1326_v25  ;;  %v4455_v58 = vmul.f32 %v4360_v53, %v1329_v43  ;;  %1459 = vst [vmem:[%s4357_s10 + $0xb0] sm:$0xff] %v1331_v44  ;;  %1458 = vst [vmem:[%s4357_s10 + $0xa8] sm:$0xff] %v1330_v45 }
 0x1be   : > { %1460 = vst [vmem:[%s4357_s10 + $0xb8] sm:$0xff] %v1332_v46  ;;  %v865_v59 = vpop.f32.mrf.mxu0  ;;  %v1058_v60 = vpop.f32.mrf.mxu1  ;;  %v4461_v61 = vmul.f32 %v4368_v63, %v1330_v45  ;;  %v4464_v20 = vmul.f32 %v4371_v1, %v1332_v46  ;;  %2236 = vmatprep.mubr.bf16.mxu1 %v1722_v52  ;;  %v862_v21 = vadd.f32 %v861_v37, %v4343_v30 }
 0x1bf   : > { %1461 = vst [vmem:[%s4357_s10 + $0xc0] sm:$0xff] %v4442_v49  ;;  %1463 = vst [vmem:[%s4357_s10 + $0xd0] sm:$0xff] %v4444_v50  ;;  %v1055_v62 = vadd.f32 %v1054_v38, %v4345_v0  ;;  %v1719_v2 = vpack.c.bf16 %v1599_v39, %v1595_v55  ;;  %v1721_v3 = vpack.c.bf16 %v1601_v40, %v1597_v56 }
 0x1c0   : > { %v864_v4 = vadd.f32 %v863_v47, %v4338_v28  ;;  %v869_v7 = vpop.f32.mrf.mxu0  ;;  %v1062_v8 = vpop.f32.mrf.mxu1  ;;  %v1206_v9 = vmax.f32 %v862_v21, 0.0  ;;  %v1057_v10 = vadd.f32 %v1056_v48, %v4340_v29  ;;  %v866_v11 = vadd.f32 %v865_v59, %v4343_v30 }
 0x1c1   : > { %v1059_v12 = vadd.f32 %v1058_v60, %v4345_v0  ;;  %v1208_v13 = vmax.f32 %v1055_v62, 0.0  ;;  %2076 = vmatmul.mubr.bf16.gmra.mxu0 %v1719_v2  ;;  %2237 = vmatmul.mubr.bf16.gmra.mxu1 %v1721_v3  ;;  %v870_v15 = vadd.f32 %v869_v7, %v4338_v28  ;;  %v1063_v16 = vadd.f32 %v1062_v8, %v4340_v29 }
 0x1c2   : > { %v1209_v14 = vmax.f32 %v864_v4, 0.0  ;;  %v871_v17 = vpop.f32.mrf.mxu0  ;;  %v1064_v18 = vpop.f32.mrf.mxu1  ;;  %v1334_v19 = vmin.f32 %v1206_v9, 6.0  ;;  %v1211_v22 = vmax.f32 %v1057_v10, 0.0  ;;  %v1210_v23 = vmax.f32 %v866_v11, 0.0 }
 0x1c3   : > { %v1212_v24 = vmax.f32 %v1059_v12, 0.0  ;;  %v4478_v25 = vmin.f32 %v1208_v13, 6.0  ;;  %v1213_v32 = vmax.f32 %v870_v15, 0.0  ;;  %v1215_v33 = vmax.f32 %v1063_v16, 0.0 }
 0x1c4   : > { %v1337_v27 = vmin.f32 %v1209_v14, 6.0  ;;  %v873_v34 = vpop.f32.mrf.mxu0  ;;  %v1066_v35 = vpop.f32.mrf.mxu1  ;;  %v1609_v36 = vmul.f32 %v4363_v54, %v1331_v44  ;;  %1462 = vst [vmem:[%s4357_s10 + $0xc8] sm:$0xff] %v1334_v19  ;;  %v1339_v37 = vmin.f32 %v1211_v22, 6.0  ;;  %v1338_v38 = vmin.f32 %v1210_v23, 6.0 }
 0x1c5   : > { %v1340_v39 = vmin.f32 %v1212_v24, 6.0  ;;  %v1603_v40 = vmul.f32 %v4360_v53, %v4411_v5  ;;  %v1606_v41 = vmul.f32 %v4371_v1, %v4433_v26  ;;  %1464 = vst [vmem:[%s4357_s10 + $0xd8] sm:$0xff] %v4478_v25  ;;  %v4489_v42 = vmin.f32 %v1213_v32, 6.0 }
 0x1c6   : > { %1465 = vst [vmem:[%s4357_s10 + $0xe0] sm:$0xff] %v1337_v27  ;;  %v4491_v43 = vmin.f32 %v1215_v33, 6.0  ;;  %v875_v44 = vpop.f32.mrf.mxu0  ;;  %v1068_v45 = vpop.f32.mrf.mxu1  ;;  %v1605_v46 = vmul.f32 %v4363_v54, %v4413_v6  ;;  %v4496_v47 = vmul.f32 %v4368_v63, %v1334_v19  ;;  %v4499_v5 = vmul.f32 %v4360_v53, %v1337_v27  ;;  %1467 = vst [vmem:[%s4357_s10 + $0xf0] sm:$0xff] %v1339_v37 }
 0x1c7   : > { %1466 = vst [vmem:[%s4357_s10 + $0xe8] sm:$0xff] %v1338_v38  ;;  %1468 = vst [vmem:[%s4357_s10 + $0xf8] sm:$0xff] %v1340_v39  ;;  %v1724_v26 = vpack.c.bf16 %v4461_v61, %v4451_v57  ;;  %v4507_v48 = vmul.f32 %v4368_v63, %v1338_v38  ;;  %v4510_v51 = vmul.f32 %v4371_v1, %v1340_v39 }
 0x1c8   : > { %1469 = vst [vmem:[%s4357_s10 + $0x100] sm:$0xff] %v4489_v42  ;;  %1471 = vst [vmem:[%s4357_s10 + $0x110] sm:$0xff] %v4491_v43  ;;  %v1726_v6 = vpack.c.bf16 %v4464_v20, %v1606_v41  ;;  %v872_v52 = vadd.f32 %v871_v17, %v4343_v30  ;;  %v879_v55 = vpop.f32.mrf.mxu0  ;;  %v1072_v56 = vpop.f32.mrf.mxu1  ;;  %v1065_v59 = vadd.f32 %v1064_v18, %v4345_v0 }
 0x1c9   : > { %2083 = vmatprep.mubr.bf16.mxu0 %v1724_v26  ;;  %v1723_v57 = vpack.c.bf16 %v4455_v58, %v1603_v40  ;;  %v1725_v60 = vpack.c.bf16 %v1609_v36, %v1605_v46  ;;  %v874_v61 = vadd.f32 %v873_v34, %v4338_v28  ;;  %v1067_v62 = vadd.f32 %v1066_v35, %v4340_v29 }
 0x1ca   : > { %2244 = vmatprep.mubr.bf16.mxu1 %v1726_v6  ;;  %v1214_v21 = vmax.f32 %v872_v52, 0.0  ;;  %v876_v2 = vadd.f32 %v875_v44, %v4343_v30  ;;  %v1069_v20 = vadd.f32 %v1068_v45, %v4345_v0  ;;  %v881_v3 = vpop.f32.mrf.mxu0  ;;  %v1074_v4 = vpop.f32.mrf.mxu1  ;;  %v1216_v7 = vmax.f32 %v1065_v59, 0.0 }
 0x1cb   : > { %2084 = vmatmul.mubr.bf16.gmra.mxu0 %v1723_v57  ;;  %2245 = vmatmul.mubr.bf16.gmra.mxu1 %v1725_v60  ;;  %v1217_v8 = vmax.f32 %v874_v61, 0.0  ;;  %v880_v58 = vadd.f32 %v879_v55, %v4338_v28  ;;  %v1073_v9 = vadd.f32 %v1072_v56, %v4340_v29  ;;  %v1219_v11 = vmax.f32 %v1067_v62, 0.0 }
 0x1cc   : > { %v1342_v10 = vmin.f32 %v1214_v21, 6.0  ;;  %v1218_v12 = vmax.f32 %v876_v2, 0.0  ;;  %v1220_v13 = vmax.f32 %v1069_v20, 0.0  ;;  %v883_v14 = vpop.f32.mrf.mxu0  ;;  %v1076_v15 = vpop.f32.mrf.mxu1  ;;  %v4526_v16 = vmin.f32 %v1216_v7, 6.0 }
 0x1cd   : > { %v1345_v17 = vmin.f32 %v1217_v8, 6.0  ;;  %v1221_v18 = vmax.f32 %v880_v58, 0.0  ;;  %v1223_v19 = vmax.f32 %v1073_v9, 0.0  ;;  %v1617_v22 = vmul.f32 %v4363_v54, %v1339_v37 }
 0x1ce   : > { %1470 = vst [vmem:[%s4357_s10 + $0x108] sm:$0xff] %v1342_v10  ;;  %v1347_v23 = vmin.f32 %v1219_v11, 6.0  ;;  %v1346_v24 = vmin.f32 %v1218_v12, 6.0  ;;  %v1348_v27 = vmin.f32 %v1220_v13, 6.0  ;;  %v885_v32 = vpop.f32.mrf.mxu0  ;;  %v1078_v33 = vpop.f32.mrf.mxu1  ;;  %v1611_v34 = vmul.f32 %v4360_v53, %v4442_v49  ;;  %1472 = vst [vmem:[%s4357_s10 + $0x118] sm:$0xff] %v4526_v16 }
 0x1cf   : > { %v1614_v35 = vmul.f32 %v4371_v1, %v4478_v25  ;;  %1473 = vst [vmem:[%s4357_s10 + $0x120] sm:$0xff] %v1345_v17  ;;  %v4537_v36 = vmin.f32 %v1221_v18, 6.0  ;;  %v4539_v37 = vmin.f32 %v1223_v19, 6.0  ;;  %v1613_v38 = vmul.f32 %v4363_v54, %v4444_v50 }
 0x1d0   : > { %v4544_v39 = vmul.f32 %v4368_v63, %v1342_v10  ;;  %v4547_v49 = vmul.f32 %v4360_v53, %v1345_v17  ;;  %1475 = vst [vmem:[%s4357_s10 + $0x130] sm:$0xff] %v1347_v23  ;;  %1474 = vst [vmem:[%s4357_s10 + $0x128] sm:$0xff] %v1346_v24  ;;  %v1728_v25 = vpack.c.bf16 %v4507_v48, %v4496_v47  ;;  %v889_v40 = vpop.f32.mrf.mxu0  ;;  %v1082_v41 = vpop.f32.mrf.mxu1 }
 0x1d1   : > { %1476 = vst [vmem:[%s4357_s10 + $0x138] sm:$0xff] %v1348_v27  ;;  %v4555_v44 = vmul.f32 %v4368_v63, %v1346_v24  ;;  %v4558_v45 = vmul.f32 %v4371_v1, %v1348_v27  ;;  %1477 = vst [vmem:[%s4357_s10 + $0x140] sm:$0xff] %v4537_v36  ;;  %v1730_v50 = vpack.c.bf16 %v4510_v51, %v1614_v35 }
 0x1d2   : > { %1479 = vst [vmem:[%s4357_s10 + $0x150] sm:$0xff] %v4539_v37  ;;  %v882_v46 = vadd.f32 %v881_v3, %v4343_v30  ;;  %2091 = vmatprep.mubr.bf16.mxu0 %v1728_v25  ;;  %v1075_v26 = vadd.f32 %v1074_v4, %v4345_v0  ;;  %v1727_v47 = vpack.c.bf16 %v4499_v5, %v1611_v34  ;;  %v891_v52 = vpop.f32.mrf.mxu0  ;;  %v1084_v55 = vpop.f32.mrf.mxu1 }
 0x1d3   : > { %v1729_v48 = vpack.c.bf16 %v1617_v22, %v1613_v38  ;;  %v884_v6 = vadd.f32 %v883_v14, %v4338_v28  ;;  %2252 = vmatprep.mubr.bf16.mxu1 %v1730_v50  ;;  %v1077_v59 = vadd.f32 %v1076_v15, %v4340_v29  ;;  %v886_v57 = vadd.f32 %v885_v32, %v4343_v30 }
 0x1d4   : > { %v1222_v56 = vmax.f32 %v882_v46, 0.0  ;;  %v1079_v51 = vadd.f32 %v1078_v33, %v4345_v0  ;;  %v1224_v60 = vmax.f32 %v1075_v26, 0.0  ;;  %2092 = vmatmul.mubr.bf16.gmra.mxu0 %v1727_v47  ;;  %v890_v5 = vadd.f32 %v889_v40, %v4338_v28  ;;  %v893_v62 = vpop.f32.mrf.mxu0  ;;  %v1086_v2 = vpop.f32.mrf.mxu1 }
 0x1d5   : > { %2253 = vmatmul.mubr.bf16.gmra.mxu1 %v1729_v48  ;;  %v1225_v61 = vmax.f32 %v884_v6, 0.0  ;;  %v1083_v21 = vadd.f32 %v1082_v41, %v4340_v29  ;;  %v1227_v3 = vmax.f32 %v1077_v59, 0.0  ;;  %v1226_v4 = vmax.f32 %v886_v57, 0.0 }
 0x1d6   : > { %v1350_v20 = vmin.f32 %v1222_v56, 6.0  ;;  %v1228_v7 = vmax.f32 %v1079_v51, 0.0  ;;  %v4574_v8 = vmin.f32 %v1224_v60, 6.0  ;;  %v1229_v9 = vmax.f32 %v890_v5, 0.0  ;;  %v895_v11 = vpop.f32.mrf.mxu0  ;;  %v1088_v12 = vpop.f32.mrf.mxu1 }
 0x1d7   : > { %v1353_v58 = vmin.f32 %v1225_v61, 6.0  ;;  %v1231_v10 = vmax.f32 %v1083_v21, 0.0  ;;  %v1625_v13 = vmul.f32 %v4363_v54, %v1347_v23  ;;  %v1355_v14 = vmin.f32 %v1227_v3, 6.0 }
 0x1d8   : > { %1478 = vst [vmem:[%s4357_s10 + $0x148] sm:$0xff] %v1350_v20  ;;  %v1354_v15 = vmin.f32 %v1226_v4, 6.0  ;;  %v1356_v17 = vmin.f32 %v1228_v7, 6.0  ;;  %v1619_v18 = vmul.f32 %v4360_v53, %v4489_v42  ;;  %v1622_v19 = vmul.f32 %v4371_v1, %v4526_v16  ;;  %1480 = vst [vmem:[%s4357_s10 + $0x158] sm:$0xff] %v4574_v8  ;;  %v899_v24 = vpop.f32.mrf.mxu0  ;;  %v1092_v27 = vpop.f32.mrf.mxu1 }
 0x1d9   : > { %1481 = vst [vmem:[%s4357_s10 + $0x160] sm:$0xff] %v1353_v58  ;;  %v4585_v22 = vmin.f32 %v1229_v9, 6.0  ;;  %v4587_v23 = vmin.f32 %v1231_v10, 6.0  ;;  %v1621_v32 = vmul.f32 %v4363_v54, %v4491_v43  ;;  %v4592_v33 = vmul.f32 %v4368_v63, %v1350_v20  ;;  %1483 = vst [vmem:[%s4357_s10 + $0x170] sm:$0xff] %v1355_v14 }
 0x1da   : > { %v4595_v42 = vmul.f32 %v4360_v53, %v1353_v58  ;;  %1482 = vst [vmem:[%s4357_s10 + $0x168] sm:$0xff] %v1354_v15  ;;  %1484 = vst [vmem:[%s4357_s10 + $0x178] sm:$0xff] %v1356_v17  ;;  %v1732_v16 = vpack.c.bf16 %v4555_v44, %v4544_v39  ;;  %v4603_v34 = vmul.f32 %v4368_v63, %v1354_v15  ;;  %v901_v25 = vpop.f32.mrf.mxu0  ;;  %v1094_v40 = vpop.f32.mrf.mxu1 }
 0x1db   : > { %v4606_v35 = vmul.f32 %v4371_v1, %v1356_v17  ;;  %1485 = vst [vmem:[%s4357_s10 + $0x180] sm:$0xff] %v4585_v22  ;;  %1487 = vst [vmem:[%s4357_s10 + $0x190] sm:$0xff] %v4587_v23  ;;  %v1734_v43 = vpack.c.bf16 %v4558_v45, %v1622_v19  ;;  %v892_v38 = vadd.f32 %v891_v52, %v4343_v30 }
 0x1dc   : > { %2099 = vmatprep.mubr.bf16.mxu0 %v1732_v16  ;;  %v1085_v41 = vadd.f32 %v1084_v55, %v4345_v0  ;;  %v1731_v39 = vpack.c.bf16 %v4547_v49, %v1619_v18  ;;  %v1733_v44 = vpack.c.bf16 %v1625_v13, %v1621_v32  ;;  %v894_v50 = vadd.f32 %v893_v62, %v4338_v28  ;;  %v903_v48 = vpop.f32.mrf.mxu0  ;;  %v1096_v6 = vpop.f32.mrf.mxu1 }
 0x1dd   : > { %2260 = vmatprep.mubr.bf16.mxu1 %v1734_v43  ;;  %v1230_v46 = vmax.f32 %v892_v38, 0.0  ;;  %v1087_v26 = vadd.f32 %v1086_v2, %v4340_v29  ;;  %v896_v47 = vadd.f32 %v895_v11, %v4343_v30  ;;  %v1089_v45 = vadd.f32 %v1088_v12, %v4345_v0 }
 0x1de   : > { %v1232_v52 = vmax.f32 %v1085_v41, 0.0  ;;  %2100 = vmatmul.mubr.bf16.gmra.mxu0 %v1731_v39  ;;  %2261 = vmatmul.mubr.bf16.gmra.mxu1 %v1733_v44  ;;  %v1233_v55 = vmax.f32 %v894_v50, 0.0  ;;  %v900_v49 = vadd.f32 %v899_v24, %v4338_v28  ;;  %v1093_v56 = vadd.f32 %v1092_v27, %v4340_v29  ;;  %v905_v61 = vpop.f32.mrf.mxu0  ;;  %v1098_v5 = vpop.f32.mrf.mxu1 }
 0x1df   : > { %v1358_v59 = vmin.f32 %v1230_v46, 6.0  ;;  %v1235_v57 = vmax.f32 %v1087_v26, 0.0  ;;  %v1234_v51 = vmax.f32 %v896_v47, 0.0  ;;  %v1236_v60 = vmax.f32 %v1089_v45, 0.0 }
 0x1e0   : > { %v4622_v21 = vmin.f32 %v1232_v52, 6.0  ;;  %v1361_v62 = vmin.f32 %v1233_v55, 6.0  ;;  %v1237_v2 = vmax.f32 %v900_v49, 0.0  ;;  %v1239_v20 = vmax.f32 %v1093_v56, 0.0  ;;  %v909_v9 = vpop.f32.mrf.mxu0  ;;  %v1102_v10 = vpop.f32.mrf.mxu1 }
 0x1e1   : > { %v1633_v3 = vmul.f32 %v4363_v54, %v1355_v14  ;;  %1486 = vst [vmem:[%s4357_s10 + $0x188] sm:$0xff] %v1358_v59  ;;  %v1363_v4 = vmin.f32 %v1235_v57, 6.0  ;;  %v1362_v7 = vmin.f32 %v1234_v51, 6.0  ;;  %v1364_v58 = vmin.f32 %v1236_v60, 6.0 }
 0x1e2   : > { %v1627_v11 = vmul.f32 %v4360_v53, %v4537_v36  ;;  %v1630_v12 = vmul.f32 %v4371_v1, %v4574_v8  ;;  %1488 = vst [vmem:[%s4357_s10 + $0x198] sm:$0xff] %v4622_v21  ;;  %1489 = vst [vmem:[%s4357_s10 + $0x1a0] sm:$0xff] %v1361_v62  ;;  %v4633_v13 = vmin.f32 %v1237_v2, 6.0  ;;  %v4635_v14 = vmin.f32 %v1239_v20, 6.0  ;;  %v4650_v18 = vpop.f32.mrf.mxu0  ;;  %v4652_v19 = vpop.f32.mrf.mxu1 }
 0x1e3   : > { %v1629_v15 = vmul.f32 %v4363_v54, %v4539_v37  ;;  %v4640_v17 = vmul.f32 %v4368_v63, %v1358_v59  ;;  %v4643_v36 = vmul.f32 %v4360_v53, %v1361_v62  ;;  %1491 = vst [vmem:[%s4357_s10 + $0x1b0] sm:$0xff] %v1363_v4  ;;  %1490 = vst [vmem:[%s4357_s10 + $0x1a8] sm:$0xff] %v1362_v7 }
 0x1e4   : > { %1492 = vst [vmem:[%s4357_s10 + $0x1b8] sm:$0xff] %v1364_v58  ;;  %v1736_v8 = vpack.c.bf16 %v4603_v34, %v4592_v33  ;;  %v4655_v24 = vmul.f32 %v4368_v63, %v1362_v7  ;;  %v4658_v37 = vmul.f32 %v4371_v1, %v1364_v58  ;;  %1493 = vst [vmem:[%s4357_s10 + $0x1c0] sm:$0xff] %v4633_v13  ;;  %v913_v38 = vpop.f32.mrf.mxu0  ;;  %v1106_v41 = vpop.f32.mrf.mxu1 }
 0x1e5   : > { %1495 = vst [vmem:[%s4357_s10 + $0x1d0] sm:$0xff] %v4635_v14  ;;  %v1738_v27 = vpack.c.bf16 %v4606_v35, %v1630_v12  ;;  %v902_v32 = vadd.f32 %v901_v25, %v4343_v30  ;;  %v1095_v33 = vadd.f32 %v1094_v40, %v4345_v0  ;;  %v1735_v16 = vpack.c.bf16 %v4595_v42, %v1627_v11 }
 0x1e6   : > { %2107 = vmatprep.mubr.bf16.mxu0 %v1736_v8  ;;  %v1737_v34 = vpack.c.bf16 %v1633_v3, %v1629_v15  ;;  %v904_v43 = vadd.f32 %v903_v48, %v4338_v28  ;;  %v1097_v44 = vadd.f32 %v1096_v6, %v4340_v29  ;;  %v906_v50 = vadd.f32 %v905_v61, %v4343_v30  ;;  %v915_v26 = vpop.f32.mrf.mxu0  ;;  %v1108_v47 = vpop.f32.mrf.mxu1 }
 0x1e7   : > { %2268 = vmatprep.mubr.bf16.mxu1 %v1738_v27  ;;  %v1238_v39 = vmax.f32 %v902_v32, 0.0  ;;  %v1099_v35 = vadd.f32 %v1098_v5, %v4345_v0  ;;  %v1240_v46 = vmax.f32 %v1095_v33, 0.0  ;;  %2108 = vmatmul.mubr.bf16.gmra.mxu0 %v1735_v16  ;;  %v910_v42 = vadd.f32 %v909_v9, %v4338_v28 }
 0x1e8   : > { %2269 = vmatmul.mubr.bf16.gmra.mxu1 %v1737_v34  ;;  %v1241_v25 = vmax.f32 %v904_v43, 0.0  ;;  %v1103_v40 = vadd.f32 %v1102_v10, %v4340_v29  ;;  %v1243_v48 = vmax.f32 %v1097_v44, 0.0  ;;  %v1242_v52 = vmax.f32 %v906_v50, 0.0  ;;  %v919_v57 = vpop.f32.mrf.mxu0  ;;  %v1112_v51 = vpop.f32.mrf.mxu1 }
 0x1e9   : > { %v1366_v45 = vmin.f32 %v1238_v39, 6.0  ;;  %v1244_v6 = vmax.f32 %v1099_v35, 0.0  ;;  %v4674_v55 = vmin.f32 %v1240_v46, 6.0  ;;  %v1245_v56 = vmax.f32 %v910_v42, 0.0 }
 0x1ea   : > { %v1369_v49 = vmin.f32 %v1241_v25, 6.0  ;;  %v1247_v59 = vmax.f32 %v1103_v40, 0.0  ;;  %v1641_v60 = vmul.f32 %v4363_v54, %v1363_v4  ;;  %v1371_v61 = vmin.f32 %v1243_v48, 6.0  ;;  %v4689_v7 = vpop.f32.mrf.mxu0  ;;  %v4691_v58 = vpop.f32.mrf.mxu1 }
 0x1eb   : > { %1494 = vst [vmem:[%s4357_s10 + $0x1c8] sm:$0xff] %v1366_v45  ;;  %v1370_v5 = vmin.f32 %v1242_v52, 6.0  ;;  %v1372_v62 = vmin.f32 %v1244_v6, 6.0  ;;  %v1635_v2 = vmul.f32 %v4360_v53, %v4585_v22  ;;  %v1638_v20 = vmul.f32 %v4371_v1, %v4622_v21  ;;  %1496 = vst [vmem:[%s4357_s10 + $0x1d8] sm:$0xff] %v4674_v55 }
 0x1ec   : > { %1497 = vst [vmem:[%s4357_s10 + $0x1e0] sm:$0xff] %v1369_v49  ;;  %v4685_v3 = vmin.f32 %v1245_v56, 6.0  ;;  %v4687_v4 = vmin.f32 %v1247_v59, 6.0  ;;  %v1637_v9 = vmul.f32 %v4363_v54, %v4587_v23  ;;  %v4696_v22 = vmul.f32 %v4368_v63, %v1366_v45  ;;  %1499 = vst [vmem:[%s4357_s10 + $0x1f0] sm:$0xff] %v1371_v61  ;;  %v923_v8 = vpop.f32.mrf.mxu0  ;;  %v4719_v27 = vpop.f32.mrf.mxu1 }
 0x1ed   : > { %v4699_v21 = vmul.f32 %v4360_v53, %v1369_v49  ;;  %1498 = vst [vmem:[%s4357_s10 + $0x1e8] sm:$0xff] %v1370_v5  ;;  %1500 = vst [vmem:[%s4357_s10 + $0x1f8] sm:$0xff] %v1372_v62  ;;  %v1740_v10 = vpack.c.bf16 %v4655_v24, %v4640_v17  ;;  %v4707_v11 = vmul.f32 %v4368_v63, %v1370_v5 }
 0x1ee   : > { %v4710_v12 = vmul.f32 %v4371_v1, %v1372_v62  ;;  %1501 = vst [vmem:[%s4357_s10 + $0x200] sm:$0xff] %v4685_v3  ;;  %1503 = vst [vmem:[%s4357_s10 + $0x210] sm:$0xff] %v4687_v4  ;;  %v1742_v23 = vpack.c.bf16 %v4658_v37, %v1638_v20  ;;  %v912_v15 = vadd.f32 %v4650_v18, %v4343_v30  ;;  %v925_v43 = vpop.f32.mrf.mxu0  ;;  %v1118_v39 = vpop.f32.mrf.mxu1 }
 0x1ef   : > { %2115 = vmatprep.mubr.bf16.mxu0 %v1740_v10  ;;  %v1105_v17 = vadd.f32 %v4652_v19, %v4345_v0  ;;  %v1739_v24 = vpack.c.bf16 %v4643_v36, %v1635_v2  ;;  %v1741_v32 = vpack.c.bf16 %v1641_v60, %v1637_v9  ;;  %v914_v33 = vadd.f32 %v913_v38, %v4338_v28 }
 0x1f0   : > { %2276 = vmatprep.mubr.bf16.mxu1 %v1742_v23  ;;  %v1246_v16 = vmax.f32 %v912_v15, 0.0  ;;  %v1107_v34 = vadd.f32 %v1106_v41, %v4340_v29  ;;  %v916_v37 = vadd.f32 %v915_v26, %v4343_v30  ;;  %v1109_v18 = vadd.f32 %v1108_v47, %v4345_v0  ;;  %v929_v41 = vpop.f32.mrf.mxu0  ;;  %v1122_v42 = vpop.f32.mrf.mxu1 }
 0x1f1   : > { %v1248_v44 = vmax.f32 %v1105_v17, 0.0  ;;  %2116 = vmatmul.mubr.bf16.gmra.mxu0 %v1739_v24  ;;  %2277 = vmatmul.mubr.bf16.gmra.mxu1 %v1741_v32  ;;  %v1249_v19 = vmax.f32 %v914_v33, 0.0  ;;  %v920_v36 = vadd.f32 %v919_v57, %v4338_v28  ;;  %v1113_v50 = vadd.f32 %v1112_v51, %v4340_v29 }
 0x1f2   : > { %v1374_v38 = vmin.f32 %v1246_v16, 6.0  ;;  %v1251_v35 = vmax.f32 %v1107_v34, 0.0  ;;  %v1250_v46 = vmax.f32 %v916_v37, 0.0  ;;  %v1252_v25 = vmax.f32 %v1109_v18, 0.0  ;;  %v4734_v56 = vpop.f32.mrf.mxu0  ;;  %v4736_v59 = vpop.f32.mrf.mxu1 }
 0x1f3   : > { %v4730_v40 = vmin.f32 %v1248_v44, 6.0  ;;  %v1377_v26 = vmin.f32 %v1249_v19, 6.0  ;;  %v1253_v47 = vmax.f32 %v920_v36, 0.0  ;;  %v1255_v45 = vmax.f32 %v1113_v50, 0.0 }
 0x1f4   : > { %v1649_v48 = vmul.f32 %v4363_v54, %v1371_v61  ;;  %1502 = vst [vmem:[%s4357_s10 + $0x208] sm:$0xff] %v1374_v38  ;;  %v1379_v52 = vmin.f32 %v1251_v35, 6.0  ;;  %v1378_v6 = vmin.f32 %v1250_v46, 6.0  ;;  %v1380_v49 = vmin.f32 %v1252_v25, 6.0  ;;  %v4762_v2 = vpop.f32.mrf.mxu0  ;;  %v4764_v20 = vpop.f32.mrf.mxu1 }
 0x1f5   : > { %v1643_v57 = vmul.f32 %v4360_v53, %v4633_v13  ;;  %v1646_v51 = vmul.f32 %v4371_v1, %v4674_v55  ;;  %1504 = vst [vmem:[%s4357_s10 + $0x218] sm:$0xff] %v4730_v40  ;;  %1505 = vst [vmem:[%s4357_s10 + $0x220] sm:$0xff] %v1377_v26  ;;  %v4745_v60 = vmin.f32 %v1253_v47, 6.0  ;;  %v4747_v61 = vmin.f32 %v1255_v45, 6.0 }
 0x1f6   : > { %v1645_v5 = vmul.f32 %v4363_v54, %v4635_v14  ;;  %v4752_v62 = vmul.f32 %v4368_v63, %v1374_v38  ;;  %v4755_v13 = vmul.f32 %v4360_v53, %v1377_v26  ;;  %1507 = vst [vmem:[%s4357_s10 + $0x230] sm:$0xff] %v1379_v52  ;;  %1506 = vst [vmem:[%s4357_s10 + $0x228] sm:$0xff] %v1378_v6  ;;  %v935_v24 = vpop.f32.mrf.mxu0  ;;  %v1128_v32 = vpop.f32.mrf.mxu1 }
 0x1f7   : > { %1508 = vst [vmem:[%s4357_s10 + $0x238] sm:$0xff] %v1380_v49  ;;  %v1744_v55 = vpack.c.bf16 %v4707_v11, %v4696_v22  ;;  %v4767_v9 = vmul.f32 %v4368_v63, %v1378_v6  ;;  %v4770_v14 = vmul.f32 %v4371_v1, %v1380_v49  ;;  %1509 = vst [vmem:[%s4357_s10 + $0x240] sm:$0xff] %v4745_v60 }
 0x1f8   : > { %1511 = vst [vmem:[%s4357_s10 + $0x250] sm:$0xff] %v4747_v61  ;;  %v1746_v10 = vpack.c.bf16 %v4710_v12, %v1646_v51  ;;  %v922_v23 = vadd.f32 %v4689_v7, %v4343_v30  ;;  %v1115_v22 = vadd.f32 %v4691_v58, %v4345_v0  ;;  %v1743_v11 = vpack.c.bf16 %v4699_v21, %v1643_v57  ;;  %v939_v37 = vpop.f32.mrf.mxu0  ;;  %v1132_v18 = vpop.f32.mrf.mxu1 }
 0x1f9   : > { %2123 = vmatprep.mubr.bf16.mxu0 %v1744_v55  ;;  %v1745_v15 = vpack.c.bf16 %v1649_v48, %v1645_v5  ;;  %v924_v17 = vadd.f32 %v923_v8, %v4338_v28  ;;  %v1117_v16 = vadd.f32 %v4719_v27, %v4340_v29  ;;  %v926_v12 = vadd.f32 %v925_v43, %v4343_v30 }
 0x1fa   : > { %2284 = vmatprep.mubr.bf16.mxu1 %v1746_v10  ;;  %v1254_v33 = vmax.f32 %v922_v23, 0.0  ;;  %v1119_v7 = vadd.f32 %v1118_v39, %v4345_v0  ;;  %v1256_v34 = vmax.f32 %v1115_v22, 0.0  ;;  %2124 = vmatmul.mubr.bf16.gmra.mxu0 %v1743_v11  ;;  %v930_v21 = vadd.f32 %v929_v41, %v4338_v28  ;;  %v4791_v35 = vpop.f32.mrf.mxu0  ;;  %v4793_v46 = vpop.f32.mrf.mxu1 }
 0x1fb   : > { %2285 = vmatmul.mubr.bf16.gmra.mxu1 %v1745_v15  ;;  %v1257_v58 = vmax.f32 %v924_v17, 0.0  ;;  %v1123_v8 = vadd.f32 %v1122_v42, %v4340_v29  ;;  %v1259_v19 = vmax.f32 %v1117_v16, 0.0  ;;  %v1258_v36 = vmax.f32 %v926_v12, 0.0 }
 0x1fc   : > { %v1382_v44 = vmin.f32 %v1254_v33, 6.0  ;;  %v1260_v27 = vmax.f32 %v1119_v7, 0.0  ;;  %v4789_v43 = vmin.f32 %v1256_v34, 6.0  ;;  %v1261_v50 = vmax.f32 %v930_v21, 0.0  ;;  %v4808_v6 = vpop.f32.mrf.mxu0  ;;  %v4810_v49 = vpop.f32.mrf.mxu1 }
 0x1fd   : > { %v1385_v39 = vmin.f32 %v1257_v58, 6.0  ;;  %v1263_v38 = vmax.f32 %v1123_v8, 0.0  ;;  %v1657_v25 = vmul.f32 %v4363_v54, %v1379_v52  ;;  %v1387_v41 = vmin.f32 %v1259_v19, 6.0 }
 0x1fe   : > { %1510 = vst [vmem:[%s4357_s10 + $0x248] sm:$0xff] %v1382_v44  ;;  %v1386_v42 = vmin.f32 %v1258_v36, 6.0  ;;  %v1388_v26 = vmin.f32 %v1260_v27, 6.0  ;;  %v1651_v47 = vmul.f32 %v4360_v53, %v4685_v3  ;;  %v1654_v45 = vmul.f32 %v4371_v1, %v4730_v40  ;;  %1512 = vst [vmem:[%s4357_s10 + $0x258] sm:$0xff] %v4789_v43  ;;  %v4838_v23 = vpop.f32.mrf.mxu0  ;;  %v4840_v22 = vpop.f32.mrf.mxu1 }
 0x1ff   : > { %1513 = vst [vmem:[%s4357_s10 + $0x260] sm:$0xff] %v1385_v39  ;;  %v4804_v48 = vmin.f32 %v1261_v50, 6.0  ;;  %v4806_v52 = vmin.f32 %v1263_v38, 6.0  ;;  %v1653_v57 = vmul.f32 %v4363_v54, %v4687_v4  ;;  %v4815_v3 = vmul.f32 %v4368_v63, %v1382_v44  ;;  %1515 = vst [vmem:[%s4357_s10 + $0x270] sm:$0xff] %v1387_v41 }
 0x200   : > { %v4818_v40 = vmul.f32 %v4360_v53, %v1385_v39  ;;  %1514 = vst [vmem:[%s4357_s10 + $0x268] sm:$0xff] %v1386_v42  ;;  %1516 = vst [vmem:[%s4357_s10 + $0x278] sm:$0xff] %v1388_v26  ;;  %v1748_v51 = vpack.c.bf16 %v4767_v9, %v4752_v62  ;;  %v4826_v5 = vmul.f32 %v4368_v63, %v1386_v42  ;;  %v949_v16 = vpop.f32.mrf.mxu0  ;;  %v1142_v12 = vpop.f32.mrf.mxu1 }
 0x201   : > { %v4829_v55 = vmul.f32 %v4371_v1, %v1388_v26  ;;  %1517 = vst [vmem:[%s4357_s10 + $0x280] sm:$0xff] %v4804_v48  ;;  %1519 = vst [vmem:[%s4357_s10 + $0x290] sm:$0xff] %v4806_v52  ;;  %v1750_v4 = vpack.c.bf16 %v4770_v14, %v1654_v45  ;;  %v932_v10 = vadd.f32 %v4734_v56, %v4343_v30 }
 0x202   : > { %2131 = vmatprep.mubr.bf16.mxu0 %v1748_v51  ;;  %v1125_v62 = vadd.f32 %v4736_v59, %v4345_v0  ;;  %v1747_v9 = vpack.c.bf16 %v4755_v13, %v1651_v47  ;;  %v1749_v11 = vpack.c.bf16 %v1657_v25, %v1653_v57  ;;  %v934_v15 = vadd.f32 %v4762_v2, %v4338_v28 }
 0x203   : > { %2292 = vmatprep.mubr.bf16.mxu1 %v1750_v4  ;;  %v1262_v17 = vmax.f32 %v932_v10, 0.0  ;;  %v1127_v14 = vadd.f32 %v4764_v20, %v4340_v29  ;;  %v936_v56 = vadd.f32 %v935_v24, %v4343_v30  ;;  %v1129_v33 = vadd.f32 %v1128_v32, %v4345_v0  ;;  %v4853_v20 = vpop.f32.mrf.mxu0  ;;  %v4855_v24 = vpop.f32.mrf.mxu1 }
 0x204   : > { %v1264_v7 = vmax.f32 %v1125_v62, 0.0  ;;  %2132 = vmatmul.mubr.bf16.gmra.mxu0 %v1747_v9  ;;  %2293 = vmatmul.mubr.bf16.gmra.mxu1 %v1749_v11  ;;  %v1265_v59 = vmax.f32 %v934_v15, 0.0  ;;  %v940_v13 = vadd.f32 %v939_v37, %v4338_v28  ;;  %v1133_v2 = vadd.f32 %v1132_v18, %v4340_v29 }
 0x205   : > { %v1390_v34 = vmin.f32 %v1262_v17, 6.0  ;;  %v1267_v58 = vmax.f32 %v1127_v14, 0.0  ;;  %v1266_v21 = vmax.f32 %v936_v56, 0.0  ;;  %v1268_v8 = vmax.f32 %v1129_v33, 0.0  ;;  %v4861_v50 = vpop.f32.mrf.mxu0  ;;  %v4863_v38 = vpop.f32.mrf.mxu1 }
 0x206   : > { %v4857_v32 = vmin.f32 %v1264_v7, 6.0  ;;  %v1393_v44 = vmin.f32 %v1265_v59, 6.0  ;;  %v1269_v19 = vmax.f32 %v940_v13, 0.0  ;;  %v1271_v36 = vmax.f32 %v1133_v2, 0.0 }
 0x207   : > { %v1665_v27 = vmul.f32 %v4363_v54, %v1387_v41  ;;  %1518 = vst [vmem:[%s4357_s10 + $0x288] sm:$0xff] %v1390_v34  ;;  %v1395_v37 = vmin.f32 %v1267_v58, 6.0  ;;  %v1394_v18 = vmin.f32 %v1266_v21, 6.0  ;;  %v1396_v39 = vmin.f32 %v1268_v8, 6.0  ;;  %v4889_v51 = vpop.f32.mrf.mxu1 }
 0x208   : > { %v1659_v25 = vmul.f32 %v4360_v53, %v4745_v60  ;;  %v1662_v42 = vmul.f32 %v4371_v1, %v4789_v43  ;;  %1520 = vst [vmem:[%s4357_s10 + $0x298] sm:$0xff] %v4857_v32  ;;  %1521 = vst [vmem:[%s4357_s10 + $0x2a0] sm:$0xff] %v1393_v44  ;;  %v1397_v41 = vmin.f32 %v1269_v19, 6.0  ;;  %v4872_v26 = vmin.f32 %v1271_v36, 6.0  ;;  %v4887_v43 = vpop.f32.mrf.mxu0 }
 0x209   : > { %v1661_v47 = vmul.f32 %v4363_v54, %v4747_v61  ;;  %v4877_v45 = vmul.f32 %v4368_v63, %v1390_v34  ;;  %v4880_v57 = vmul.f32 %v4360_v53, %v1393_v44  ;;  %1523 = vst [vmem:[%s4357_s10 + $0x2b0] sm:$0xff] %v1395_v37  ;;  %1522 = vst [vmem:[%s4357_s10 + $0x2a8] sm:$0xff] %v1394_v18  ;;  %v4910_v17 = vpop.f32.mrf.mxu1 }
 0x20a   : > { %1524 = vst [vmem:[%s4357_s10 + $0x2b8] sm:$0xff] %v1396_v39  ;;  %v1752_v60 = vpack.c.bf16 %v4826_v5, %v4815_v3  ;;  %v4892_v4 = vmul.f32 %v4368_v63, %v1394_v18  ;;  %v4895_v61 = vmul.f32 %v4371_v1, %v1396_v39  ;;  %1525 = vst [vmem:[%s4357_s10 + $0x2c0] sm:$0xff] %v1397_v41  ;;  %v4908_v15 = vpop.f32.mrf.mxu0 }
 0x20b   : > { %1527 = vst [vmem:[%s4357_s10 + $0x2d0] sm:$0xff] %v4872_v26  ;;  %v1754_v10 = vpack.c.bf16 %v4829_v55, %v1662_v42  ;;  %v942_v62 = vadd.f32 %v4791_v35, %v4343_v30  ;;  %v1135_v3 = vadd.f32 %v4793_v46, %v4345_v0  ;;  %v1751_v5 = vpack.c.bf16 %v4818_v40, %v1659_v25  ;;  %v4922_v59 = vpop.f32.mrf.mxu1 }
 0x20c   : > { %2139 = vmatprep.mubr.bf16.mxu0 %v1752_v60  ;;  %v1753_v9 = vpack.c.bf16 %v1665_v27, %v1661_v47  ;;  %v944_v11 = vadd.f32 %v4808_v6, %v4338_v28  ;;  %v1137_v55 = vadd.f32 %v4810_v49, %v4340_v29  ;;  %v946_v35 = vadd.f32 %v4838_v23, %v4343_v30  ;;  %v4920_v7 = vpop.f32.mrf.mxu0 }
 0x20d   : > { %2300 = vmatprep.mubr.bf16.mxu1 %v1754_v10  ;;  %v1270_v14 = vmax.f32 %v942_v62, 0.0  ;;  %v1139_v46 = vadd.f32 %v4840_v22, %v4345_v0  ;;  %v1272_v40 = vmax.f32 %v1135_v3, 0.0  ;;  %2140 = vmatmul.mubr.bf16.gmra.mxu0 %v1751_v5  ;;  %v950_v6 = vadd.f32 %v949_v16, %v4338_v28  ;;  %v4928_v16 = vpop.f32.mrf.mxu1 }
 0x20e   : > { %2301 = vmatmul.mubr.bf16.gmra.mxu1 %v1753_v9  ;;  %v1273_v56 = vmax.f32 %v944_v11, 0.0  ;;  %v1143_v33 = vadd.f32 %v1142_v12, %v4340_v29  ;;  %v1275_v13 = vmax.f32 %v1137_v55, 0.0  ;;  %v1274_v23 = vmax.f32 %v946_v35, 0.0  ;;  %v4926_v8 = vpop.f32.mrf.mxu0 }
 0x20f   : > { %v1398_v49 = vmin.f32 %v1270_v14, 6.0  ;;  %v1276_v2 = vmax.f32 %v1139_v46, 0.0  ;;  %v4924_v22 = vmin.f32 %v1272_v40, 6.0  ;;  %v1277_v58 = vmax.f32 %v950_v6, 0.0  ;;  %v4941_v42 = vpop.f32.mrf.mxu1 }
 0x210   : > { %v1401_v34 = vmin.f32 %v1273_v56, 6.0  ;;  %v1279_v21 = vmax.f32 %v1143_v33, 0.0  ;;  %v1673_v12 = vmul.f32 %v4363_v54, %v1395_v37  ;;  %v1403_v44 = vmin.f32 %v1275_v13, 6.0  ;;  %v4939_v25 = vpop.f32.mrf.mxu0 }
 0x211   : > { %1526 = vst [vmem:[%s4357_s10 + $0x2c8] sm:$0xff] %v1398_v49  ;;  %v1402_v19 = vmin.f32 %v1274_v23, 6.0  ;;  %v1404_v36 = vmin.f32 %v1276_v2, 6.0  ;;  %v1667_v27 = vmul.f32 %v4360_v53, %v4804_v48  ;;  %v1670_v18 = vmul.f32 %v4371_v1, %v4857_v32  ;;  %1528 = vst [vmem:[%s4357_s10 + $0x2d8] sm:$0xff] %v4924_v22  ;;  %v4967_v5 = vpop.f32.mrf.mxu1 }
 0x212   : > { %1529 = vst [vmem:[%s4357_s10 + $0x2e0] sm:$0xff] %v1401_v34  ;;  %v1405_v39 = vmin.f32 %v1277_v58, 6.0  ;;  %v1407_v37 = vmin.f32 %v1279_v21, 6.0  ;;  %v1669_v47 = vmul.f32 %v4363_v54, %v4806_v52  ;;  %v4946_v60 = vmul.f32 %v4360_v53, %v1397_v41  ;;  %1531 = vst [vmem:[%s4357_s10 + $0x2f0] sm:$0xff] %v1403_v44  ;;  %v4965_v3 = vpop.f32.mrf.mxu0 }
 0x213   : > { %v4949_v48 = vmul.f32 %v4368_v63, %v1398_v49  ;;  %1530 = vst [vmem:[%s4357_s10 + $0x2e8] sm:$0xff] %v1402_v19  ;;  %1532 = vst [vmem:[%s4357_s10 + $0x2f8] sm:$0xff] %v1404_v36  ;;  %v1756_v32 = vpack.c.bf16 %v4892_v4, %v4877_v45  ;;  %v1680_v10 = vmul.f32 %v4368_v63, %v1402_v19 }
 0x214   : > { %v4958_v62 = vmul.f32 %v4371_v1, %v1404_v36  ;;  %1533 = vst [vmem:[%s4357_s10 + $0x300] sm:$0xff] %v1405_v39  ;;  %1535 = vst [vmem:[%s4357_s10 + $0x310] sm:$0xff] %v1407_v37  ;;  %v1758_v52 = vpack.c.bf16 %v4895_v61, %v1670_v18  ;;  %v952_v41 = vadd.f32 %v4853_v20, %v4343_v30  ;;  %v4984_v46 = vpop.f32.mrf.mxu0 }
 0x215   : > { %2147 = vmatprep.mubr.bf16.mxu0 %v1756_v32  ;;  %v1145_v45 = vadd.f32 %v4855_v24, %v4345_v0  ;;  %v1755_v4 = vpack.c.bf16 %v4880_v57, %v1667_v27  ;;  %v1757_v9 = vpack.c.bf16 %v1673_v12, %v1669_v47  ;;  %v954_v11 = vadd.f32 %v4861_v50, %v4338_v28 }
 0x216   : > { %2308 = vmatprep.mubr.bf16.mxu1 %v1758_v52  ;;  %v1278_v14 = vmax.f32 %v952_v41, 0.0  ;;  %v1147_v61 = vadd.f32 %v4863_v38, %v4340_v29  ;;  %v956_v20 = vadd.f32 %v4887_v43, %v4343_v30  ;;  %v1149_v55 = vadd.f32 %v4889_v51, %v4345_v0  ;;  %v4986_v38 = vpop.f32.mrf.mxu1  ;;  %v5001_v19 = vpop.f32.mrf.mxu0 }
 0x217   : > { %v1280_v35 = vmax.f32 %v1145_v45, 0.0  ;;  %2148 = vmatmul.mubr.bf16.gmra.mxu0 %v1755_v4  ;;  %2309 = vmatmul.mubr.bf16.gmra.mxu1 %v1757_v9  ;;  %v1281_v24 = vmax.f32 %v954_v11, 0.0  ;;  %v960_v57 = vadd.f32 %v4908_v15, %v4338_v28  ;;  %v1153_v50 = vadd.f32 %v4910_v17, %v4340_v29 }
 0x218   : > { %v4988_v43 = vmin.f32 %v1278_v14, 6.0  ;;  %v1283_v51 = vmax.f32 %v1147_v61, 0.0  ;;  %v1282_v40 = vmax.f32 %v956_v20, 0.0  ;;  %v1284_v56 = vmax.f32 %v1149_v55, 0.0  ;;  %v5003_v36 = vpop.f32.mrf.mxu1  ;;  %v975_v9 = vpop.f32.mrf.mxu0 }
 0x219   : > { %v4990_v6 = vmin.f32 %v1280_v35, 6.0  ;;  %v1409_v33 = vmin.f32 %v1281_v24, 6.0  ;;  %v1285_v49 = vmax.f32 %v960_v57, 0.0  ;;  %v1287_v13 = vmax.f32 %v1153_v50, 0.0 }
 0x21a   : > { %v1679_v15 = vmul.f32 %v4360_v53, %v1401_v34  ;;  %1534 = vst [vmem:[%s4357_s10 + $0x308] sm:$0xff] %v4988_v43  ;;  %v1411_v17 = vmin.f32 %v1283_v51, 6.0  ;;  %v1410_v23 = vmin.f32 %v1282_v40, 6.0  ;;  %v1412_v2 = vmin.f32 %v1284_v56, 6.0  ;;  %v1168_v11 = vpop.f32.mrf.mxu1  ;;  %v979_v51 = vpop.f32.mrf.mxu0 }
 0x21b   : > { %v1678_v58 = vmul.f32 %v4371_v1, %v4924_v22  ;;  %v1681_v21 = vmul.f32 %v4363_v54, %v1403_v44  ;;  %1536 = vst [vmem:[%s4357_s10 + $0x318] sm:$0xff] %v4990_v6  ;;  %1537 = vst [vmem:[%s4357_s10 + $0x320] sm:$0xff] %v1409_v33  ;;  %v1413_v12 = vmin.f32 %v1285_v49, 6.0  ;;  %v1415_v34 = vmin.f32 %v1287_v13, 6.0 }
 0x21c   : > { %v1677_v27 = vmul.f32 %v4363_v54, %v4872_v26  ;;  %v5008_v18 = vmul.f32 %v4360_v53, %v1405_v39  ;;  %v5011_v22 = vmul.f32 %v4363_v54, %v1407_v37  ;;  %1539 = vst [vmem:[%s4357_s10 + $0x330] sm:$0xff] %v1411_v17  ;;  %1538 = vst [vmem:[%s4357_s10 + $0x328] sm:$0xff] %v1410_v23  ;;  %v1172_v40 = vpop.f32.mrf.mxu1 }
 0x21d   : > { %1540 = vst [vmem:[%s4357_s10 + $0x338] sm:$0xff] %v1412_v2  ;;  %v1760_v44 = vpack.c.bf16 %v1680_v10, %v4949_v48  ;;  %v5018_v47 = vmul.f32 %v4360_v53, %v1409_v33  ;;  %v5021_v32 = vmul.f32 %v4363_v54, %v1411_v17  ;;  %v1688_v52 = vmul.f32 %v4368_v63, %v1410_v23 }
 0x21e   : > { %1541 = vst [vmem:[%s4357_s10 + $0x340] sm:$0xff] %v1413_v12  ;;  %1543 = vst [vmem:[%s4357_s10 + $0x350] sm:$0xff] %v1415_v34  ;;  %v1762_v26 = vpack.c.bf16 %v4958_v62, %v1678_v58  ;;  %v1690_v39 = vmul.f32 %v4371_v1, %v1412_v2  ;;  %v962_v37 = vadd.f32 %v4920_v7, %v4343_v30 }
 0x21f   : > { %2155 = vmatprep.mubr.bf16.mxu0 %v1760_v44  ;;  %v1155_v48 = vadd.f32 %v4922_v59, %v4345_v0  ;;  %v1759_v10 = vpack.c.bf16 %v1679_v15, %v4946_v60  ;;  %v1761_v41 = vpack.c.bf16 %v1681_v21, %v1677_v27  ;;  %v964_v45 = vadd.f32 %v4926_v8, %v4338_v28 }
 0x220   : > { %2316 = vmatprep.mubr.bf16.mxu1 %v1762_v26  ;;  %v1157_v4 = vadd.f32 %v4928_v16, %v4340_v29  ;;  %v966_v62 = vadd.f32 %v4939_v25, %v4343_v30  ;;  %v1286_v14 = vmax.f32 %v962_v37, 0.0  ;;  %v1159_v59 = vadd.f32 %v4941_v42, %v4345_v0 }
 0x221   : > { %v1288_v7 = vmax.f32 %v1155_v48, 0.0  ;;  %2156 = vmatmul.mubr.bf16.gmra.mxu0 %v1759_v10  ;;  %v970_v60 = vadd.f32 %v4965_v3, %v4338_v28  ;;  %2317 = vmatmul.mubr.bf16.gmra.mxu1 %v1761_v41  ;;  %v1289_v61 = vmax.f32 %v964_v45, 0.0  ;;  %v1163_v25 = vadd.f32 %v4967_v5, %v4340_v29 }
 0x222   : > { %v1291_v8 = vmax.f32 %v1157_v4, 0.0  ;;  %v1290_v16 = vmax.f32 %v966_v62, 0.0  ;;  %v1414_v20 = vmin.f32 %v1286_v14, 6.0  ;;  %v1292_v35 = vmax.f32 %v1159_v59, 0.0 }
 0x223   : > { %v5045_v55 = vmin.f32 %v1288_v7, 6.0  ;;  %v1293_v24 = vmax.f32 %v970_v60, 0.0  ;;  %v1417_v57 = vmin.f32 %v1289_v61, 6.0  ;;  %v1295_v50 = vmax.f32 %v1163_v25, 0.0 }
 0x224   : > { %v1419_v42 = vmin.f32 %v1291_v8, 6.0  ;;  %v1418_v3 = vmin.f32 %v1290_v16, 6.0  ;;  %v1684_v56 = vmul.f32 %v4368_v63, %v4988_v43  ;;  %v1686_v5 = vmul.f32 %v4371_v1, %v4990_v6  ;;  %1542 = vst [vmem:[%s4357_s10 + $0x348] sm:$0xff] %v1414_v20 }
 0x225   : > { %1544 = vst [vmem:[%s4357_s10 + $0x358] sm:$0xff] %v5045_v55  ;;  %v1420_v33 = vmin.f32 %v1292_v35, 6.0  ;;  %v1421_v49 = vmin.f32 %v1293_v24, 6.0  ;;  %v1763_v13 = vpack.c.bf16 %v5018_v47, %v5008_v18  ;;  %v5057_v15 = vmul.f32 %v4360_v53, %v1413_v12  ;;  %1545 = vst [vmem:[%s4357_s10 + $0x360] sm:$0xff] %v1417_v57  ;;  %v981_v18 = vpop.f32.mrf.mxu0 }
 0x226   : > { %v5060_v17 = vmul.f32 %v4363_v54, %v1415_v34  ;;  %1547 = vst [vmem:[%s4357_s10 + $0x370] sm:$0xff] %v1419_v42  ;;  %1546 = vst [vmem:[%s4357_s10 + $0x368] sm:$0xff] %v1418_v3  ;;  %v5065_v43 = vmin.f32 %v1295_v50, 6.0  ;;  %v1765_v6 = vpack.c.bf16 %v5021_v32, %v5011_v22  ;;  %v5070_v23 = vmul.f32 %v4360_v53, %v1417_v57  ;;  %v1174_v22 = vpop.f32.mrf.mxu1 }
 0x227   : > { %1548 = vst [vmem:[%s4357_s10 + $0x378] sm:$0xff] %v1420_v33  ;;  %1549 = vst [vmem:[%s4357_s10 + $0x380] sm:$0xff] %v1421_v49  ;;  %v1764_v2 = vpack.c.bf16 %v1688_v52, %v1684_v56  ;;  %v1766_v58 = vpack.c.bf16 %v1690_v39, %v1686_v5  ;;  %v5075_v21 = vmul.f32 %v4363_v54, %v1419_v42  ;;  %v983_v4 = vpop.f32.mrf.mxu0 }
 0x228   : > { %v1696_v12 = vmul.f32 %v4368_v63, %v1418_v3  ;;  %v1698_v34 = vmul.f32 %v4371_v1, %v1420_v33  ;;  %1551 = vst [vmem:[%s4357_s10 + $0x390] sm:$0xff] %v5065_v43  ;;  %v972_v27 = vadd.f32 %v4984_v46, %v4343_v30  ;;  %v1165_v44 = vadd.f32 %v4986_v38, %v4345_v0  ;;  %v1176_v62 = vpop.f32.mrf.mxu1 }
 0x229   : > { %2163 = vmatprep.mubr.bf16.mxu0 %v1764_v2  ;;  %2324 = vmatprep.mubr.bf16.mxu1 %v1766_v58  ;;  %v974_v47 = vadd.f32 %v5001_v19, %v4338_v28  ;;  %v1167_v32 = vadd.f32 %v5003_v36, %v4340_v29  ;;  %v976_v26 = vadd.f32 %v975_v9, %v4343_v30  ;;  %v985_v3 = vpop.f32.mrf.mxu0 }
 0x22a   : > { %v1294_v52 = vmax.f32 %v972_v27, 0.0  ;;  %2164 = vmatmul.mubr.bf16.gmra.mxu0 %v1763_v13  ;;  %2325 = vmatmul.mubr.bf16.gmra.mxu1 %v1765_v6  ;;  %v1169_v46 = vadd.f32 %v1168_v11, %v4345_v0  ;;  %v980_v39 = vadd.f32 %v979_v51, %v4338_v28  ;;  %v1296_v37 = vmax.f32 %v1165_v44, 0.0  ;;  %v1178_v50 = vpop.f32.mrf.mxu1 }
 0x22b   : > { %v1297_v48 = vmax.f32 %v974_v47, 0.0  ;;  %v1299_v10 = vmax.f32 %v1167_v32, 0.0  ;;  %v1173_v38 = vadd.f32 %v1172_v40, %v4340_v29  ;;  %v1298_v19 = vmax.f32 %v976_v26, 0.0 }
 0x22c   : > { %v1422_v41 = vmin.f32 %v1294_v52, 6.0  ;;  %v1300_v45 = vmax.f32 %v1169_v46, 0.0  ;;  %v1301_v36 = vmax.f32 %v980_v39, 0.0  ;;  %v1424_v9 = vmin.f32 %v1296_v37, 6.0 }
 0x22d   : > { %v1425_v14 = vmin.f32 %v1297_v48, 6.0  ;;  %v1427_v11 = vmin.f32 %v1299_v10, 6.0  ;;  %v1303_v7 = vmax.f32 %v1173_v38, 0.0  ;;  %v1692_v59 = vmul.f32 %v4368_v63, %v1414_v20 }
 0x22e   : > { %1550 = vst [vmem:[%s4357_s10 + $0x388] sm:$0xff] %v1422_v41  ;;  %v1426_v60 = vmin.f32 %v1298_v19, 6.0  ;;  %v1428_v61 = vmin.f32 %v1300_v45, 6.0  ;;  %v5095_v8 = vmin.f32 %v1301_v36, 6.0  ;;  %v1694_v16 = vmul.f32 %v4371_v1, %v5045_v55  ;;  %1552 = vst [vmem:[%s4357_s10 + $0x398] sm:$0xff] %v1424_v9 }
 0x22f   : > { %v1767_v25 = vpack.c.bf16 %v5070_v23, %v5057_v15  ;;  %v1699_v35 = vmul.f32 %v4360_v53, %v1421_v49  ;;  %1553 = vst [vmem:[%s4357_s10 + $0x3a0] sm:$0xff] %v1425_v14  ;;  %1555 = vst [vmem:[%s4357_s10 + $0x3b0] sm:$0xff] %v1427_v11  ;;  %v5105_v20 = vmin.f32 %v1303_v7, 6.0  ;;  %v1769_v24 = vpack.c.bf16 %v5075_v21, %v5060_v17 }
 0x230   : > { %v1700_v57 = vmul.f32 %v4368_v63, %v1422_v41  ;;  %1554 = vst [vmem:[%s4357_s10 + $0x3a8] sm:$0xff] %v1426_v60  ;;  %v1704_v42 = vmul.f32 %v4368_v63, %v1426_v60  ;;  %1556 = vst [vmem:[%s4357_s10 + $0x3b8] sm:$0xff] %v1428_v61  ;;  %v1768_v55 = vpack.c.bf16 %v1696_v12, %v1692_v59 }
 0x231   : > { %1557 = vst [vmem:[%s4357_s10 + $0x3c0] sm:$0xff] %v5095_v8  ;;  %v1702_v51 = vmul.f32 %v4371_v1, %v1424_v9  ;;  %v1703_v40 = vmul.f32 %v4360_v53, %v1425_v14  ;;  %v1706_v56 = vmul.f32 %v4371_v1, %v1428_v61  ;;  %1559 = vst [vmem:[%s4357_s10 + $0x3d0] sm:$0xff] %v5105_v20 }
 0x232   : > { %v1770_v5 = vpack.c.bf16 %v1698_v34, %v1694_v16  ;;  %2171 = vmatprep.mubr.bf16.mxu0 %v1768_v55  ;;  %v982_v33 = vadd.f32 %v981_v18, %v4343_v30  ;;  %v1175_v49 = vadd.f32 %v1174_v22, %v4345_v0  ;;  %v984_v13 = vadd.f32 %v983_v4, %v4338_v28 }
 0x233   : > { %v1177_v15 = vadd.f32 %v1176_v62, %v4340_v29  ;;  %2172 = vmatmul.mubr.bf16.gmra.mxu0 %v1767_v25  ;;  %v986_v17 = vadd.f32 %v985_v3, %v4343_v30  ;;  %v1179_v6 = vadd.f32 %v1178_v50, %v4345_v0  ;;  %v1772_v23 = vpack.c.bf16 %v1704_v42, %v1700_v57 }
 0x234   : > { %2332 = vmatprep.mubr.bf16.mxu1 %v1770_v5  ;;  %v1302_v2 = vmax.f32 %v982_v33, 0.0  ;;  %v1304_v58 = vmax.f32 %v1175_v49, 0.0  ;;  %v1305_v21 = vmax.f32 %v984_v13, 0.0  ;;  %v1705_v34 = vmul.f32 %v4363_v54, %v1427_v11 }
 0x235   : > { %2333 = vmatmul.mubr.bf16.gmra.mxu1 %v1769_v24  ;;  %v1307_v12 = vmax.f32 %v1177_v15, 0.0  ;;  %v1306_v28 = vmax.f32 %v986_v17, 0.0  ;;  %v1308_v29 = vmax.f32 %v1179_v6, 0.0  ;;  %2179 = vmatprep.mubr.bf16.mxu0 %v1772_v23  ;;  %v1774_v27 = vpack.c.bf16 %v1706_v56, %v1702_v51 }
 0x236   : > { %v1430_v30 = vmin.f32 %v1302_v2, 6.0  ;;  %v1432_v18 = vmin.f32 %v1304_v58, 6.0  ;;  %v1433_v0 = vmin.f32 %v1305_v21, 6.0  ;;  %v1701_v32 = vmul.f32 %v4363_v54, %v5065_v43 }
 0x237   : > { %v1435_v22 = vmin.f32 %v1307_v12, 6.0  ;;  %v1434_v44 = vmin.f32 %v1306_v28, 6.0  ;;  %v1436_v47 = vmin.f32 %v1308_v29, 6.0  ;;  %2340 = vmatprep.mubr.bf16.mxu1 %v1774_v27  ;;  %v1771_v52 = vpack.c.bf16 %v1703_v40, %v1699_v35 }
 0x238   : > { %1558 = vst [vmem:[%s4357_s10 + $0x3c8] sm:$0xff] %v1430_v30  ;;  %1560 = vst [vmem:[%s4357_s10 + $0x3d8] sm:$0xff] %v1432_v18  ;;  %v1708_v26 = vmul.f32 %v4368_v63, %v1430_v30  ;;  %v1710_v46 = vmul.f32 %v4371_v1, %v1432_v18  ;;  %v1773_v48 = vpack.c.bf16 %v1705_v34, %v1701_v32 }
 0x239   : > { %1561 = vst [vmem:[%s4357_s10 + $0x3e0] sm:$0xff] %v1433_v0  ;;  %1563 = vst [vmem:[%s4357_s10 + $0x3f0] sm:$0xff] %v1435_v22  ;;  %v1712_v39 = vmul.f32 %v4368_v63, %v1434_v44  ;;  %v1714_v37 = vmul.f32 %v4371_v1, %v1436_v47  ;;  %v1711_v43 = vmul.f32 %v4360_v53, %v1433_v0 }
 0x23a   : > { %1562 = vst [vmem:[%s4357_s10 + $0x3e8] sm:$0xff] %v1434_v44  ;;  %1564 = vst [vmem:[%s4357_s10 + $0x3f8] sm:$0xff] %v1436_v47  ;;  %v1713_v41 = vmul.f32 %v4363_v54, %v1435_v22  ;;  %v1707_v19 = vmul.f32 %v4360_v53, %v5095_v8  ;;  %v1709_v63 = vmul.f32 %v4363_v54, %v5105_v20 }
 0x23b   : > { %2180 = vmatmul.mubr.bf16.gmra.mxu0 %v1771_v52  ;;  %v1776_v10 = vpack.c.bf16 %v1712_v39, %v1708_v26  ;;  %v1778_v38 = vpack.c.bf16 %v1714_v37, %v1710_v46 }
 0x23c   : > { %v1775_v45 = vpack.c.bf16 %v1711_v43, %v1707_v19  ;;  %v1777_v36 = vpack.c.bf16 %v1713_v41, %v1709_v63 }
 0x23d   : > { %2341 = vmatmul.mubr.bf16.gmra.mxu1 %v1773_v48  ;;  %2187 = vmatprep.mubr.bf16.mxu0 %v1776_v10 }
 0x23e   : > { %2348 = vmatprep.mubr.bf16.mxu1 %v1778_v38 }
 0x243   : > { %2188 = vmatmul.mubr.bf16.gmra.mxu0 %v1775_v45 }
 0x245   : > { %2349 = vmatmul.mubr.bf16.gmra.mxu1 %v1777_v36 }
 0x275   : > { %v2971_v1 = vpop.f32.mrf.mxu0 }
 0x276   : > { %v3083_v4 = vpop.f32.mrf.mxu1 }
 0x277   : > { %v2972_v62 = vpop.f32.mrf.mxu0 }
 0x278   : > { %v2973_v9 = vadd.f32 %v2972_v62, %v2971_v1  ;;  %v3084_v14 = vpop.f32.mrf.mxu1 }
 0x279   : > { %v3085_v11 = vadd.f32 %v3084_v14, %v3083_v4  ;;  %v2974_v7 = vpop.f32.mrf.mxu0 }
 0x27a   : > { %v3086_v59 = vpop.f32.mrf.mxu1 }
 0x27b   : > { %v5145_v60 = vadd.f32 %v3085_v11, %v2973_v9  ;;  %v2975_v61 = vpop.f32.mrf.mxu0 }
 0x27c   : > { %v2976_v16 = vadd.f32 %v2975_v61, %v2974_v7  ;;  %v3087_v53 = vpop.f32.mrf.mxu1 }
 0x27d   : > { %v3088_v8 = vadd.f32 %v3087_v53, %v3086_v59 }
 0x27f   : > { %v5147_v25 = vadd.f32 %v3088_v8, %v2976_v16 }
 0x281   : > { %v2977_v54 = vpop.f32.mrf.mxu0  ;;  %v3089_v35 = vpop.f32.mrf.mxu1 }
 0x283   : > { %v2978_v20 = vpop.f32.mrf.mxu0  ;;  %v3090_v24 = vpop.f32.mrf.mxu1 }
 0x284   : > { %v2979_v57 = vadd.f32 %v2978_v20, %v2977_v54  ;;  %v3091_v42 = vadd.f32 %v3090_v24, %v3089_v35 }
 0x285   : > { %v2980_v55 = vpop.f32.mrf.mxu0  ;;  %v3092_v3 = vpop.f32.mrf.mxu1 }
 0x286   : > { %v5149_v50 = vadd.f32 %v3091_v42, %v2979_v57 }
 0x287   : > { %v2981_v51 = vpop.f32.mrf.mxu0  ;;  %v3093_v40 = vpop.f32.mrf.mxu1 }
 0x288   : > { %v2982_v56 = vadd.f32 %v2981_v51, %v2980_v55  ;;  %v3094_v5 = vadd.f32 %v3093_v40, %v3092_v3 }
 0x28a   : > { %v5151_v33 = vadd.f32 %v3094_v5, %v2982_v56 }
 0x28b   : > { %v2983_v49 = vpop.f32.mrf.mxu0  ;;  %v3095_v13 = vpop.f32.mrf.mxu1 }
 0x28d   : > { %v2984_v15 = vpop.f32.mrf.mxu0  ;;  %v3096_v17 = vpop.f32.mrf.mxu1 }
 0x28e   : > { %v2985_v6 = vadd.f32 %v2984_v15, %v2983_v49  ;;  %v3097_v23 = vadd.f32 %v3096_v17, %v3095_v13 }
 0x28f   : > { %v2986_v2 = vpop.f32.mrf.mxu0  ;;  %v3098_v58 = vpop.f32.mrf.mxu1 }
 0x290   : > { %v5153_v21 = vadd.f32 %v3097_v23, %v2985_v6 }
 0x291   : > { %v2987_v12 = vpop.f32.mrf.mxu0  ;;  %v3099_v34 = vpop.f32.mrf.mxu1 }
 0x292   : > { %v2988_v28 = vadd.f32 %v2987_v12, %v2986_v2  ;;  %v3100_v29 = vadd.f32 %v3099_v34, %v3098_v58 }
 0x294   : > { %v5155_v27 = vadd.f32 %v3100_v29, %v2988_v28  ;;  %v2989_v30 = vpop.f32.mrf.mxu0 }
 0x295   : > { %v3101_v18 = vpop.f32.mrf.mxu1 }
 0x296   : > { %v2990_v0 = vpop.f32.mrf.mxu0 }
 0x297   : > { %v3102_v22 = vpop.f32.mrf.mxu1  ;;  %v2991_v44 = vadd.f32 %v2990_v0, %v2989_v30 }
 0x298   : > { %v3103_v47 = vadd.f32 %v3102_v22, %v3101_v18  ;;  %v2992_v32 = vpop.f32.mrf.mxu0 }
 0x299   : > { %v3104_v52 = vpop.f32.mrf.mxu1 }
 0x29a   : > { %v5157_v26 = vadd.f32 %v3103_v47, %v2991_v44  ;;  %v2993_v46 = vpop.f32.mrf.mxu0 }
 0x29b   : > { %v3105_v39 = vpop.f32.mrf.mxu1  ;;  %v2994_v37 = vadd.f32 %v2993_v46, %v2992_v32 }
 0x29c   : > { %v3106_v48 = vadd.f32 %v3105_v39, %v3104_v52 }
 0x29e   : > { %v5159_v10 = vadd.f32 %v3106_v48, %v2994_v37  ;;  %v2995_v38 = vpop.f32.mrf.mxu0  ;;  %v3107_v43 = vpop.f32.mrf.mxu1 }
 0x2a0   : > { %v2996_v41 = vpop.f32.mrf.mxu0  ;;  %v3108_v19 = vpop.f32.mrf.mxu1 }
 0x2a1   : > { %v2997_v63 = vadd.f32 %v2996_v41, %v2995_v38  ;;  %v3109_v45 = vadd.f32 %v3108_v19, %v3107_v43 }
 0x2a2   : > { %v2998_v36 = vpop.f32.mrf.mxu0  ;;  %v3110_v1 = vpop.f32.mrf.mxu1 }
 0x2a3   : > { %v5161_v4 = vadd.f32 %v3109_v45, %v2997_v63 }
 0x2a4   : > { %v2999_v62 = vpop.f32.mrf.mxu0  ;;  %v3111_v9 = vpop.f32.mrf.mxu1 }
 0x2a5   : > { %v3000_v14 = vadd.f32 %v2999_v62, %v2998_v36  ;;  %v3112_v11 = vadd.f32 %v3111_v9, %v3110_v1 }
 0x2a7   : > { %v5163_v7 = vadd.f32 %v3112_v11, %v3000_v14  ;;  %v3001_v59 = vpop.f32.mrf.mxu0 }
 0x2a8   : > { %v3113_v61 = vpop.f32.mrf.mxu1 }
 0x2a9   : > { %v3002_v16 = vpop.f32.mrf.mxu0 }
 0x2aa   : > { %v3114_v53 = vpop.f32.mrf.mxu1  ;;  %v3003_v8 = vadd.f32 %v3002_v16, %v3001_v59 }
 0x2ab   : > { %v3115_v54 = vadd.f32 %v3114_v53, %v3113_v61  ;;  %v3004_v35 = vpop.f32.mrf.mxu0 }
 0x2ac   : > { %v3116_v20 = vpop.f32.mrf.mxu1 }
 0x2ad   : > { %v5165_v24 = vadd.f32 %v3115_v54, %v3003_v8  ;;  %v3005_v57 = vpop.f32.mrf.mxu0 }
 0x2ae   : > { %v3117_v42 = vpop.f32.mrf.mxu1  ;;  %v3006_v55 = vadd.f32 %v3005_v57, %v3004_v35 }
 0x2af   : > { %v3118_v3 = vadd.f32 %v3117_v42, %v3116_v20 }
 0x2b1   : > { %v5167_v51 = vadd.f32 %v3118_v3, %v3006_v55  ;;  %v3007_v40 = vpop.f32.mrf.mxu0  ;;  %v3119_v56 = vpop.f32.mrf.mxu1 }
 0x2b3   : > { %v3008_v5 = vpop.f32.mrf.mxu0  ;;  %v3120_v49 = vpop.f32.mrf.mxu1 }
 0x2b4   : > { %v3009_v13 = vadd.f32 %v3008_v5, %v3007_v40  ;;  %v3121_v15 = vadd.f32 %v3120_v49, %v3119_v56 }
 0x2b5   : > { %v3010_v17 = vpop.f32.mrf.mxu0  ;;  %v3122_v6 = vpop.f32.mrf.mxu1 }
 0x2b6   : > { %v5169_v23 = vadd.f32 %v3121_v15, %v3009_v13 }
 0x2b7   : > { %v3011_v2 = vpop.f32.mrf.mxu0  ;;  %v3123_v58 = vpop.f32.mrf.mxu1 }
 0x2b8   : > { %v3012_v12 = vadd.f32 %v3011_v2, %v3010_v17  ;;  %v3124_v34 = vadd.f32 %v3123_v58, %v3122_v6 }
 0x2ba   : > { %v5171_v28 = vadd.f32 %v3124_v34, %v3012_v12  ;;  %v3013_v29 = vpop.f32.mrf.mxu0 }
 0x2bb   : > { %v3125_v30 = vpop.f32.mrf.mxu1 }
 0x2bc   : > { %v3014_v18 = vpop.f32.mrf.mxu0 }
 0x2bd   : > { %v3126_v0 = vpop.f32.mrf.mxu1  ;;  %v3015_v22 = vadd.f32 %v3014_v18, %v3013_v29 }
 0x2be   : > { %v3127_v44 = vadd.f32 %v3126_v0, %v3125_v30  ;;  %v3016_v47 = vpop.f32.mrf.mxu0 }
 0x2bf   : > { %v3128_v32 = vpop.f32.mrf.mxu1 }
 0x2c0   : > { %v5173_v52 = vadd.f32 %v3127_v44, %v3015_v22  ;;  %v3017_v46 = vpop.f32.mrf.mxu0 }
 0x2c1   : > { %v3129_v39 = vpop.f32.mrf.mxu1  ;;  %v3018_v37 = vadd.f32 %v3017_v46, %v3016_v47 }
 0x2c2   : > { %v3130_v48 = vadd.f32 %v3129_v39, %v3128_v32 }
 0x2c4   : > { %v5175_v38 = vadd.f32 %v3130_v48, %v3018_v37  ;;  %v3019_v43 = vpop.f32.mrf.mxu0  ;;  %v3131_v41 = vpop.f32.mrf.mxu1 }
 0x2c6   : > { %v3020_v19 = vpop.f32.mrf.mxu0  ;;  %v3132_v63 = vpop.f32.mrf.mxu1 }
 0x2c7   : > { %v3021_v45 = vadd.f32 %v3020_v19, %v3019_v43  ;;  %v3133_v36 = vadd.f32 %v3132_v63, %v3131_v41 }
 0x2c8   : > { %v3022_v1 = vpop.f32.mrf.mxu0  ;;  %v3134_v62 = vpop.f32.mrf.mxu1 }
 0x2c9   : > { %v5177_v9 = vadd.f32 %v3133_v36, %v3021_v45 }
 0x2ca   : > { %v3023_v14 = vpop.f32.mrf.mxu0  ;;  %v3135_v11 = vpop.f32.mrf.mxu1 }
 0x2cb   : > { %v3024_v59 = vadd.f32 %v3023_v14, %v3022_v1  ;;  %v3136_v61 = vadd.f32 %v3135_v11, %v3134_v62 }
 0x2cd   : > { %v5179_v16 = vadd.f32 %v3136_v61, %v3024_v59  ;;  %v3025_v53 = vpop.f32.mrf.mxu0 }
 0x2ce   : > { %v3137_v8 = vpop.f32.mrf.mxu1 }
 0x2cf   : > { %v3026_v54 = vpop.f32.mrf.mxu0 }
 0x2d0   : > { %v3138_v35 = vpop.f32.mrf.mxu1  ;;  %v3027_v20 = vadd.f32 %v3026_v54, %v3025_v53 }
 0x2d1   : > { %v3139_v57 = vadd.f32 %v3138_v35, %v3137_v8  ;;  %v3028_v42 = vpop.f32.mrf.mxu0 }
 0x2d2   : > { %v3140_v55 = vpop.f32.mrf.mxu1 }
 0x2d3   : > { %v5181_v3 = vadd.f32 %v3139_v57, %v3027_v20  ;;  %v3029_v40 = vpop.f32.mrf.mxu0 }
 0x2d4   : > { %v3141_v56 = vpop.f32.mrf.mxu1  ;;  %v3030_v5 = vadd.f32 %v3029_v40, %v3028_v42 }
 0x2d5   : > { %v3142_v49 = vadd.f32 %v3141_v56, %v3140_v55 }
 0x2d7   : > { %v5183_v13 = vadd.f32 %v3142_v49, %v3030_v5  ;;  %v3031_v15 = vpop.f32.mrf.mxu0  ;;  %v3143_v17 = vpop.f32.mrf.mxu1 }
 0x2d9   : > { %v3032_v6 = vpop.f32.mrf.mxu0  ;;  %v3144_v2 = vpop.f32.mrf.mxu1 }
 0x2da   : > { %v3033_v58 = vadd.f32 %v3032_v6, %v3031_v15  ;;  %v3145_v12 = vadd.f32 %v3144_v2, %v3143_v17 }
 0x2db   : > { %v3034_v34 = vpop.f32.mrf.mxu0  ;;  %v3146_v29 = vpop.f32.mrf.mxu1 }
 0x2dc   : > { %v5185_v30 = vadd.f32 %v3145_v12, %v3033_v58 }
 0x2dd   : > { %v3035_v18 = vpop.f32.mrf.mxu0  ;;  %v3147_v0 = vpop.f32.mrf.mxu1 }
 0x2de   : > { %v3036_v22 = vadd.f32 %v3035_v18, %v3034_v34  ;;  %v3148_v44 = vadd.f32 %v3147_v0, %v3146_v29 }
 0x2e0   : > { %v5187_v47 = vadd.f32 %v3148_v44, %v3036_v22 }
 0x2e1   : > { %v3037_v32 = vpop.f32.mrf.mxu0  ;;  %v3149_v46 = vpop.f32.mrf.mxu1 }
 0x2e3   : > { %v3038_v39 = vpop.f32.mrf.mxu0  ;;  %v3150_v48 = vpop.f32.mrf.mxu1 }
 0x2e4   : > { %v3039_v37 = vadd.f32 %v3038_v39, %v3037_v32  ;;  %v3151_v43 = vadd.f32 %v3150_v48, %v3149_v46 }
 0x2e5   : > { %v3040_v41 = vpop.f32.mrf.mxu0  ;;  %v3152_v19 = vpop.f32.mrf.mxu1 }
 0x2e6   : > { %v5189_v63 = vadd.f32 %v3151_v43, %v3039_v37 }
 0x2e7   : > { %v3041_v45 = vpop.f32.mrf.mxu0  ;;  %v3153_v1 = vpop.f32.mrf.mxu1 }
 0x2e8   : > { %v3042_v36 = vadd.f32 %v3041_v45, %v3040_v41  ;;  %v3154_v62 = vadd.f32 %v3153_v1, %v3152_v19 }
 0x2ea   : > { %v3043_v14 = vpop.f32.mrf.mxu0  ;;  %v3155_v11 = vpop.f32.mrf.mxu1  ;;  %v5191_v59 = vadd.f32 %v3154_v62, %v3042_v36 }
 0x2ec   : > { %v3044_v61 = vpop.f32.mrf.mxu0  ;;  %v3156_v53 = vpop.f32.mrf.mxu1 }
 0x2ed   : > { %v3045_v8 = vadd.f32 %v3044_v61, %v3043_v14  ;;  %v3157_v54 = vadd.f32 %v3156_v53, %v3155_v11 }
 0x2ee   : > { %v3046_v35 = vpop.f32.mrf.mxu0  ;;  %v3158_v20 = vpop.f32.mrf.mxu1 }
 0x2ef   : > { %v5193_v57 = vadd.f32 %v3157_v54, %v3045_v8 }
 0x2f0   : > { %v3047_v42 = vpop.f32.mrf.mxu0  ;;  %v3159_v55 = vpop.f32.mrf.mxu1 }
 0x2f1   : > { %v3048_v40 = vadd.f32 %v3047_v42, %v3046_v35  ;;  %v3160_v56 = vadd.f32 %v3159_v55, %v3158_v20 }
 0x2f3   : > { %v5195_v5 = vadd.f32 %v3160_v56, %v3048_v40  ;;  %v3049_v49 = vpop.f32.mrf.mxu0 }
 0x2f5   : > { %v3161_v15 = vpop.f32.mrf.mxu1  ;;  %v3050_v17 = vpop.f32.mrf.mxu0 }
 0x2f6   : > { %v3051_v6 = vadd.f32 %v3050_v17, %v3049_v49 }
 0x2f7   : > { %v3162_v2 = vpop.f32.mrf.mxu1  ;;  %v3052_v12 = vpop.f32.mrf.mxu0 }
 0x2f8   : > { %v3163_v58 = vadd.f32 %v3162_v2, %v3161_v15 }
 0x2f9   : > { %v3164_v34 = vpop.f32.mrf.mxu1  ;;  %v3053_v18 = vpop.f32.mrf.mxu0 }
 0x2fa   : > { %v5197_v29 = vadd.f32 %v3163_v58, %v3051_v6  ;;  %v3054_v0 = vadd.f32 %v3053_v18, %v3052_v12 }
 0x2fb   : > { %v3165_v22 = vpop.f32.mrf.mxu1  ;;  %v3055_v32 = vpop.f32.mrf.mxu0 }
 0x2fc   : > { %v3166_v44 = vadd.f32 %v3165_v22, %v3164_v34 }
 0x2fd   : > { %v3167_v46 = vpop.f32.mrf.mxu1  ;;  %v3056_v37 = vpop.f32.mrf.mxu0 }
 0x2fe   : > { %v5199_v39 = vadd.f32 %v3166_v44, %v3054_v0  ;;  %v3057_v48 = vadd.f32 %v3056_v37, %v3055_v32 }
 0x2ff   : > { %v3168_v43 = vpop.f32.mrf.mxu1  ;;  %v3058_v19 = vpop.f32.mrf.mxu0 }
 0x300   : > { %v3169_v41 = vadd.f32 %v3168_v43, %v3167_v46 }
 0x301   : > { %v3170_v45 = vpop.f32.mrf.mxu1  ;;  %v3059_v1 = vpop.f32.mrf.mxu0 }
 0x302   : > { %v5201_v36 = vadd.f32 %v3169_v41, %v3057_v48  ;;  %v3060_v62 = vadd.f32 %v3059_v1, %v3058_v19 }
 0x303   : > { %v3171_v14 = vpop.f32.mrf.mxu1  ;;  %v3061_v61 = vpop.f32.mrf.mxu0 }
 0x304   : > { %v3172_v11 = vadd.f32 %v3171_v14, %v3170_v45 }
 0x305   : > { %v3173_v53 = vpop.f32.mrf.mxu1  ;;  %v3062_v54 = vpop.f32.mrf.mxu0 }
 0x306   : > { %v5203_v8 = vadd.f32 %v3172_v11, %v3060_v62  ;;  %v3063_v35 = vadd.f32 %v3062_v54, %v3061_v61 }
 0x307   : > { %v3174_v20 = vpop.f32.mrf.mxu1  ;;  %v3064_v55 = vpop.f32.mrf.mxu0 }
 0x308   : > { %v3175_v42 = vadd.f32 %v3174_v20, %v3173_v53 }
 0x309   : > { %v3176_v40 = vpop.f32.mrf.mxu1  ;;  %v3065_v49 = vpop.f32.mrf.mxu0 }
 0x30a   : > { %v5205_v56 = vadd.f32 %v3175_v42, %v3063_v35  ;;  %v3066_v15 = vadd.f32 %v3065_v49, %v3064_v55  ;;  %2360 = sbr.rel (%p2936_p3) target bundleno = 800 (0x320), region = 72 }
 0x30b   : > { %v3177_v17 = vpop.f32.mrf.mxu1 }
 0x30c   : > { %v3178_v6 = vadd.f32 %v3177_v17, %v3176_v40 }
 0x30e   : > { %v5207_v2 = vadd.f32 %v3178_v6, %v3066_v15 }
 0x30f   : > { %v3803_v58 = vmov 0.0  }
 0x310   : > { %2361 = vst [vmem:[#allocation2 + $0xb0] sm:$0xff] %v3803_v58  ;;  %2362 = vst [vmem:[#allocation2] sm:$0xff] %v3803_v58 }
 0x311   : > { %2363 = vst [vmem:[#allocation2 + $0xd8] sm:$0xff] %v3803_v58  ;;  %2364 = vst [vmem:[#allocation2 + $0x18] sm:$0xff] %v3803_v58 }
 0x312   : > { %2365 = vst [vmem:[#allocation2 + $0x50] sm:$0xff] %v3803_v58  ;;  %2366 = vst [vmem:[#allocation2 + $0x68] sm:$0xff] %v3803_v58 }
 0x313   : > { %2367 = vst [vmem:[#allocation2 + $0x30] sm:$0xff] %v3803_v58  ;;  %2368 = vst [vmem:[#allocation2 + $0x48] sm:$0xff] %v3803_v58 }
 0x314   : > { %2369 = vst [vmem:[#allocation2 + $0x80] sm:$0xff] %v3803_v58  ;;  %2370 = vst [vmem:[#allocation2 + $0x88] sm:$0xff] %v3803_v58 }
 0x315   : > { %2371 = vst [vmem:[#allocation2 + $0xe8] sm:$0xff] %v3803_v58  ;;  %2372 = vst [vmem:[#allocation2 + $0xb8] sm:$0xff] %v3803_v58 }
 0x316   : > { %2373 = vst [vmem:[#allocation2 + $0x60] sm:$0xff] %v3803_v58  ;;  %2374 = vst [vmem:[#allocation2 + $0xf0] sm:$0xff] %v3803_v58 }
 0x317   : > { %2375 = vst [vmem:[#allocation2 + $0x8] sm:$0xff] %v3803_v58  ;;  %2376 = vst [vmem:[#allocation2 + $0x78] sm:$0xff] %v3803_v58 }
 0x318   : > { %2377 = vst [vmem:[#allocation2 + $0x38] sm:$0xff] %v3803_v58  ;;  %2378 = vst [vmem:[#allocation2 + $0x58] sm:$0xff] %v3803_v58 }
 0x319   : > { %2379 = vst [vmem:[#allocation2 + $0x40] sm:$0xff] %v3803_v58  ;;  %2380 = vst [vmem:[#allocation2 + $0xc8] sm:$0xff] %v3803_v58 }
 0x31a   : > { %2381 = vst [vmem:[#allocation2 + $0xe0] sm:$0xff] %v3803_v58  ;;  %2382 = vst [vmem:[#allocation2 + $0x90] sm:$0xff] %v3803_v58 }
 0x31b   : > { %2383 = vst [vmem:[#allocation2 + $0x70] sm:$0xff] %v3803_v58  ;;  %2384 = vst [vmem:[#allocation2 + $0xc0] sm:$0xff] %v3803_v58 }
 0x31c   : > { %2385 = vst [vmem:[#allocation2 + $0xa8] sm:$0xff] %v3803_v58  ;;  %2386 = vst [vmem:[#allocation2 + $0xd0] sm:$0xff] %v3803_v58 }
 0x31d   : > { %2387 = vst [vmem:[#allocation2 + $0x10] sm:$0xff] %v3803_v58  ;;  %2388 = vst [vmem:[#allocation2 + $0x28] sm:$0xff] %v3803_v58 }
 0x31e   : > { %2389 = vst [vmem:[#allocation2 + $0xa0] sm:$0xff] %v3803_v58  ;;  %2390 = vst [vmem:[#allocation2 + $0xf8] sm:$0xff] %v3803_v58 }
 0x31f   : > { %2391 = vst [vmem:[#allocation2 + $0x20] sm:$0xff] %v3803_v58  ;;  %2392 = vst [vmem:[#allocation2 + $0x98] sm:$0xff] %v3803_v58 }
 0x320 PF: > { %v2393_v12 = vld [vmem:[#allocation2 + $0xb0] sm:$0xff]  ;;  %v2394_v34 = vld [vmem:[#allocation2] sm:$0xff]  ;;  %v2395_v18 = vld [vmem:[#allocation2 + $0xd8] sm:$0xff]  ;;  %s5539_s27 = sld [smem:[#allocation27_spill]] }
 0x321   : > { %v2425_v0 = vadd.f32 %v2393_v12, %v5145_v60  ;;  %v2426_v22 = vadd.f32 %v2394_v34, %v5147_v25  ;;  %v2427_v44 = vadd.f32 %v2395_v18, %v5149_v50  ;;  %v2396_v32 = vld [vmem:[#allocation2 + $0x18] sm:$0xff]  ;;  %v2397_v46 = vld [vmem:[#allocation2 + $0x50] sm:$0xff]  ;;  %v2398_v37 = vld [vmem:[#allocation2 + $0x68] sm:$0xff] }
 0x322   : > { %v2428_v48 = vadd.f32 %v2396_v32, %v5151_v33  ;;  %v2429_v43 = vadd.f32 %v2397_v46, %v5153_v21  ;;  %v2430_v41 = vadd.f32 %v2398_v37, %v5155_v27  ;;  %v2399_v19 = vld [vmem:[#allocation2 + $0x30] sm:$0xff]  ;;  %v2400_v45 = vld [vmem:[#allocation2 + $0x48] sm:$0xff]  ;;  %v2401_v1 = vld [vmem:[#allocation2 + $0x80] sm:$0xff] }
 0x323   : > { %2457 = vst [vmem:[#allocation2 + $0xb0] sm:$0xff] %v2425_v0  ;;  %2458 = vst [vmem:[#allocation2] sm:$0xff] %v2426_v22  ;;  %v2431_v60 = vadd.f32 %v2399_v19, %v5157_v26  ;;  %v2432_v25 = vadd.f32 %v2400_v45, %v5159_v10  ;;  %v2433_v50 = vadd.f32 %v2401_v1, %v5161_v4  ;;  %v2402_v62 = vld [vmem:[#allocation2 + $0x88] sm:$0xff]  ;;  %v2404_v11 = vld [vmem:[#allocation2 + $0xb8] sm:$0xff] }
 0x324   : > { %2459 = vst [vmem:[#allocation2 + $0xd8] sm:$0xff] %v2427_v44  ;;  %v2403_v14 = vld [vmem:[#allocation2 + $0xe8] sm:$0xff]  ;;  %2460 = vst [vmem:[#allocation2 + $0x18] sm:$0xff] %v2428_v48  ;;  %v2434_v33 = vadd.f32 %v2402_v62, %v5163_v7  ;;  %v2436_v27 = vadd.f32 %v2404_v11, %v5167_v51  ;;  %v2405_v61 = vld [vmem:[#allocation2 + $0x60] sm:$0xff] }
 0x325   : > { %2461 = vst [vmem:[#allocation2 + $0x50] sm:$0xff] %v2429_v43  ;;  %2462 = vst [vmem:[#allocation2 + $0x68] sm:$0xff] %v2430_v41  ;;  %v2435_v21 = vadd.f32 %v2403_v14, %v5165_v24  ;;  %v2406_v53 = vld [vmem:[#allocation2 + $0xf0] sm:$0xff]  ;;  %v2407_v54 = vld [vmem:[#allocation2 + $0x8] sm:$0xff]  ;;  %v2437_v26 = vadd.f32 %v2405_v61, %v5169_v23 }
 0x326   : > { %2463 = vst [vmem:[#allocation2 + $0x30] sm:$0xff] %v2431_v60  ;;  %2464 = vst [vmem:[#allocation2 + $0x48] sm:$0xff] %v2432_v25  ;;  %v2438_v10 = vadd.f32 %v2406_v53, %v5171_v28  ;;  %v2439_v4 = vadd.f32 %v2407_v54, %v5173_v52  ;;  %v2408_v35 = vld [vmem:[#allocation2 + $0x78] sm:$0xff]  ;;  %v2411_v55 = vld [vmem:[#allocation2 + $0x40] sm:$0xff]  ;;  %p2937_p1 = scmp.ne.s32.totalorder %s5539_s27, 1 }
 0x327   : > { %2465 = vst [vmem:[#allocation2 + $0x80] sm:$0xff] %v2433_v50  ;;  %v2409_v20 = vld [vmem:[#allocation2 + $0x38] sm:$0xff]  ;;  %2466 = vst [vmem:[#allocation2 + $0x88] sm:$0xff] %v2434_v33  ;;  %v2440_v7 = vadd.f32 %v2408_v35, %v5175_v38  ;;  %v2412_v40 = vld [vmem:[#allocation2 + $0xc8] sm:$0xff]  ;;  %v2443_v23 = vadd.f32 %v2411_v55, %v5181_v3 }
 0x328   : > { %v2410_v42 = vld [vmem:[#allocation2 + $0x58] sm:$0xff]  ;;  %2467 = vst [vmem:[#allocation2 + $0xe8] sm:$0xff] %v2435_v21  ;;  %2468 = vst [vmem:[#allocation2 + $0xb8] sm:$0xff] %v2436_v27  ;;  %v2441_v24 = vadd.f32 %v2409_v20, %v5177_v9  ;;  %v2413_v49 = vld [vmem:[#allocation2 + $0xe0] sm:$0xff]  ;;  %v2444_v28 = vadd.f32 %v2412_v40, %v5183_v13 }
 0x329   : > { %v2442_v51 = vadd.f32 %v2410_v42, %v5179_v16  ;;  %2469 = vst [vmem:[#allocation2 + $0x60] sm:$0xff] %v2437_v26  ;;  %2470 = vst [vmem:[#allocation2 + $0xf0] sm:$0xff] %v2438_v10  ;;  %v2445_v52 = vadd.f32 %v2413_v49, %v5185_v30  ;;  %v2414_v15 = vld [vmem:[#allocation2 + $0x90] sm:$0xff]  ;;  %v2416_v6 = vld [vmem:[#allocation2 + $0xc0] sm:$0xff] }
 0x32a   : > { %2471 = vst [vmem:[#allocation2 + $0x8] sm:$0xff] %v2439_v4  ;;  %v2415_v17 = vld [vmem:[#allocation2 + $0x70] sm:$0xff]  ;;  %2472 = vst [vmem:[#allocation2 + $0x78] sm:$0xff] %v2440_v7  ;;  %v2446_v38 = vadd.f32 %v2414_v15, %v5187_v47  ;;  %v2448_v16 = vadd.f32 %v2416_v6, %v5191_v59  ;;  %v2417_v58 = vld [vmem:[#allocation2 + $0xa8] sm:$0xff] }
 0x32b   : > { %2473 = vst [vmem:[#allocation2 + $0x38] sm:$0xff] %v2441_v24  ;;  %2474 = vst [vmem:[#allocation2 + $0x58] sm:$0xff] %v2442_v51  ;;  %v2447_v9 = vadd.f32 %v2415_v17, %v5189_v63  ;;  %v2418_v12 = vld [vmem:[#allocation2 + $0xd0] sm:$0xff]  ;;  %v2449_v3 = vadd.f32 %v2417_v58, %v5193_v57  ;;  %v2420_v18 = vld [vmem:[#allocation2 + $0x28] sm:$0xff] }
 0x32c   : > { %v2419_v34 = vld [vmem:[#allocation2 + $0x10] sm:$0xff]  ;;  %2475 = vst [vmem:[#allocation2 + $0x40] sm:$0xff] %v2443_v23  ;;  %2476 = vst [vmem:[#allocation2 + $0xc8] sm:$0xff] %v2444_v28  ;;  %v2450_v13 = vadd.f32 %v2418_v12, %v5195_v5  ;;  %v2421_v0 = vld [vmem:[#allocation2 + $0xa0] sm:$0xff]  ;;  %v2452_v47 = vadd.f32 %v2420_v18, %v5199_v39 }
 0x32d   : > { %2477 = vst [vmem:[#allocation2 + $0xe0] sm:$0xff] %v2445_v52  ;;  %v2451_v30 = vadd.f32 %v2419_v34, %v5197_v29  ;;  %v2422_v22 = vld [vmem:[#allocation2 + $0xf8] sm:$0xff]  ;;  %2478 = vst [vmem:[#allocation2 + $0x90] sm:$0xff] %v2446_v38  ;;  %v2453_v63 = vadd.f32 %v2421_v0, %v5201_v36  ;;  %v2423_v44 = vld [vmem:[#allocation2 + $0x20] sm:$0xff] }
 0x32e   : > { %2479 = vst [vmem:[#allocation2 + $0x70] sm:$0xff] %v2447_v9  ;;  %2480 = vst [vmem:[#allocation2 + $0xc0] sm:$0xff] %v2448_v16  ;;  %v2454_v59 = vadd.f32 %v2422_v22, %v5203_v8  ;;  %v2424_v32 = vld [vmem:[#allocation2 + $0x98] sm:$0xff]  ;;  %v2455_v57 = vadd.f32 %v2423_v44, %v5205_v56  ;;  %2492 = sbr.rel (%p2937_p1) target bundleno = 838 (0x346), region = 76 }
 0x32f   : > { %2481 = vst [vmem:[#allocation2 + $0xa8] sm:$0xff] %v2449_v3  ;;  %2482 = vst [vmem:[#allocation2 + $0xd0] sm:$0xff] %v2450_v13  ;;  %v2456_v5 = vadd.f32 %v2424_v32, %v5207_v2 }
 0x330   : > { %2483 = vst [vmem:[#allocation2 + $0x10] sm:$0xff] %v2451_v30  ;;  %2484 = vst [vmem:[#allocation2 + $0x28] sm:$0xff] %v2452_v47 }
 0x331   : > { %2485 = vst [vmem:[#allocation2 + $0xa0] sm:$0xff] %v2453_v63  ;;  %2486 = vst [vmem:[#allocation2 + $0xf8] sm:$0xff] %v2454_v59 }
 0x332   : > { %2487 = vst [vmem:[#allocation2 + $0x20] sm:$0xff] %v2455_v57  ;;  %2488 = vst [vmem:[#allocation2 + $0x98] sm:$0xff] %v2456_v5 }
 0x333   : > { %v2493_v29 = vld [vmem:[#allocation2 + $0xb0] sm:$0xff]  ;;  %v2494_v39 = vld [vmem:[#allocation2] sm:$0xff]  ;;  %v2495_v36 = vld [vmem:[#allocation2 + $0xd8] sm:$0xff] }
 0x334   : > { %v2525_v8 = vadd.f32 %v4206_v31, %v2493_v29  ;;  %v2526_v56 = vadd.f32 %v4206_v31, %v2494_v39  ;;  %v2527_v2 = vadd.f32 %v4206_v31, %v2495_v36  ;;  %v2496_v46 = vld [vmem:[#allocation2 + $0x18] sm:$0xff]  ;;  %v2497_v37 = vld [vmem:[#allocation2 + $0x50] sm:$0xff]  ;;  %v2498_v48 = vld [vmem:[#allocation2 + $0x68] sm:$0xff] }
 0x335   : > { %v2528_v43 = vadd.f32 %v4206_v31, %v2496_v46  ;;  %v2529_v41 = vadd.f32 %v4206_v31, %v2497_v37  ;;  %v2530_v19 = vadd.f32 %v4206_v31, %v2498_v48  ;;  %v2499_v45 = vld [vmem:[#allocation2 + $0x30] sm:$0xff]  ;;  %v2500_v1 = vld [vmem:[#allocation2 + $0x48] sm:$0xff]  ;;  %v2501_v60 = vld [vmem:[#allocation2 + $0x80] sm:$0xff] }
 0x336   : > { %2557 = vst [vmem:[%s5211_s20] sm:$0xff] %v2525_v8  ;;  %2558 = vst [vmem:[%s5211_s20 + $0x8] sm:$0xff] %v2526_v56  ;;  %v2531_v25 = vadd.f32 %v4206_v31, %v2499_v45  ;;  %v2532_v50 = vadd.f32 %v4206_v31, %v2500_v1  ;;  %v2533_v62 = vadd.f32 %v4206_v31, %v2501_v60  ;;  %v2502_v14 = vld [vmem:[#allocation2 + $0x88] sm:$0xff]  ;;  %v2504_v33 = vld [vmem:[#allocation2 + $0xb8] sm:$0xff] }
 0x337   : > { %2559 = vst [vmem:[%s5211_s20 + $0x10] sm:$0xff] %v2527_v2  ;;  %v2503_v11 = vld [vmem:[#allocation2 + $0xe8] sm:$0xff]  ;;  %2560 = vst [vmem:[%s5211_s20 + $0x18] sm:$0xff] %v2528_v43  ;;  %v2534_v21 = vadd.f32 %v4206_v31, %v2502_v14  ;;  %v2536_v61 = vadd.f32 %v4206_v31, %v2504_v33  ;;  %v2505_v53 = vld [vmem:[#allocation2 + $0x60] sm:$0xff] }
 0x338   : > { %2561 = vst [vmem:[%s5211_s20 + $0x20] sm:$0xff] %v2529_v41  ;;  %2562 = vst [vmem:[%s5211_s20 + $0x28] sm:$0xff] %v2530_v19  ;;  %v2535_v27 = vadd.f32 %v4206_v31, %v2503_v11  ;;  %v2506_v54 = vld [vmem:[#allocation2 + $0xf0] sm:$0xff]  ;;  %v2507_v26 = vld [vmem:[#allocation2 + $0x8] sm:$0xff]  ;;  %v2537_v10 = vadd.f32 %v4206_v31, %v2505_v53 }
 0x339   : > { %2563 = vst [vmem:[%s5211_s20 + $0x30] sm:$0xff] %v2531_v25  ;;  %2564 = vst [vmem:[%s5211_s20 + $0x38] sm:$0xff] %v2532_v50  ;;  %v2538_v4 = vadd.f32 %v4206_v31, %v2506_v54  ;;  %v2539_v35 = vadd.f32 %v4206_v31, %v2507_v26  ;;  %v2508_v20 = vld [vmem:[#allocation2 + $0x78] sm:$0xff]  ;;  %v2511_v40 = vld [vmem:[#allocation2 + $0x40] sm:$0xff] }
 0x33a   : > { %2565 = vst [vmem:[%s5211_s20 + $0x40] sm:$0xff] %v2533_v62  ;;  %v2509_v42 = vld [vmem:[#allocation2 + $0x38] sm:$0xff]  ;;  %2566 = vst [vmem:[%s5211_s20 + $0x48] sm:$0xff] %v2534_v21  ;;  %v2540_v24 = vadd.f32 %v4206_v31, %v2508_v20  ;;  %v2512_v49 = vld [vmem:[#allocation2 + $0xc8] sm:$0xff]  ;;  %v2543_v28 = vadd.f32 %v4206_v31, %v2511_v40 }
 0x33b   : > { %v2510_v7 = vld [vmem:[#allocation2 + $0x58] sm:$0xff]  ;;  %2567 = vst [vmem:[%s5211_s20 + $0x50] sm:$0xff] %v2535_v27  ;;  %2568 = vst [vmem:[%s5211_s20 + $0x58] sm:$0xff] %v2536_v61  ;;  %v2541_v51 = vadd.f32 %v4206_v31, %v2509_v42  ;;  %v2513_v23 = vld [vmem:[#allocation2 + $0xe0] sm:$0xff]  ;;  %v2544_v52 = vadd.f32 %v4206_v31, %v2512_v49 }
 0x33c   : > { %v2542_v55 = vadd.f32 %v4206_v31, %v2510_v7  ;;  %2569 = vst [vmem:[%s5211_s20 + $0x60] sm:$0xff] %v2537_v10  ;;  %2570 = vst [vmem:[%s5211_s20 + $0x68] sm:$0xff] %v2538_v4  ;;  %v2545_v15 = vadd.f32 %v4206_v31, %v2513_v23  ;;  %v2514_v17 = vld [vmem:[#allocation2 + $0x90] sm:$0xff]  ;;  %v2516_v38 = vld [vmem:[#allocation2 + $0xc0] sm:$0xff] }
 0x33d   : > { %2571 = vst [vmem:[%s5211_s20 + $0x70] sm:$0xff] %v2539_v35  ;;  %v2515_v6 = vld [vmem:[#allocation2 + $0x70] sm:$0xff]  ;;  %2572 = vst [vmem:[%s5211_s20 + $0x78] sm:$0xff] %v2540_v24  ;;  %v2546_v9 = vadd.f32 %v4206_v31, %v2514_v17  ;;  %v2548_v58 = vadd.f32 %v4206_v31, %v2516_v38  ;;  %v2517_v12 = vld [vmem:[#allocation2 + $0xa8] sm:$0xff] }
 0x33e   : > { %2573 = vst [vmem:[%s5211_s20 + $0x80] sm:$0xff] %v2541_v51  ;;  %2574 = vst [vmem:[%s5211_s20 + $0x88] sm:$0xff] %v2542_v55  ;;  %v2547_v16 = vadd.f32 %v4206_v31, %v2515_v6  ;;  %v2518_v34 = vld [vmem:[#allocation2 + $0xd0] sm:$0xff]  ;;  %v2549_v13 = vadd.f32 %v4206_v31, %v2517_v12  ;;  %v2520_v0 = vld [vmem:[#allocation2 + $0x28] sm:$0xff] }
 0x33f   : > { %v2519_v3 = vld [vmem:[#allocation2 + $0x10] sm:$0xff]  ;;  %2575 = vst [vmem:[%s5211_s20 + $0x90] sm:$0xff] %v2543_v28  ;;  %2576 = vst [vmem:[%s5211_s20 + $0x98] sm:$0xff] %v2544_v52  ;;  %v2550_v30 = vadd.f32 %v4206_v31, %v2518_v34  ;;  %v2521_v22 = vld [vmem:[#allocation2 + $0xa0] sm:$0xff]  ;;  %v2552_v63 = vadd.f32 %v4206_v31, %v2520_v0 }
 0x340   : > { %2577 = vst [vmem:[%s5211_s20 + $0xa0] sm:$0xff] %v2545_v15  ;;  %v2551_v18 = vadd.f32 %v4206_v31, %v2519_v3  ;;  %v2522_v47 = vld [vmem:[#allocation2 + $0xf8] sm:$0xff]  ;;  %2578 = vst [vmem:[%s5211_s20 + $0xa8] sm:$0xff] %v2546_v9  ;;  %v2553_v59 = vadd.f32 %v4206_v31, %v2521_v22  ;;  %v2523_v32 = vld [vmem:[#allocation2 + $0x20] sm:$0xff] }
 0x341   : > { %2579 = vst [vmem:[%s5211_s20 + $0xb0] sm:$0xff] %v2547_v16  ;;  %2580 = vst [vmem:[%s5211_s20 + $0xb8] sm:$0xff] %v2548_v58  ;;  %v2554_v44 = vadd.f32 %v4206_v31, %v2522_v47  ;;  %v2524_v57 = vld [vmem:[#allocation2 + $0x98] sm:$0xff]  ;;  %v2555_v5 = vadd.f32 %v4206_v31, %v2523_v32 }
 0x342   : > { %2581 = vst [vmem:[%s5211_s20 + $0xc0] sm:$0xff] %v2549_v13  ;;  %2582 = vst [vmem:[%s5211_s20 + $0xc8] sm:$0xff] %v2550_v30  ;;  %v2556_v29 = vadd.f32 %v4206_v31, %v2524_v57 }
 0x343   : > { %2583 = vst [vmem:[%s5211_s20 + $0xd0] sm:$0xff] %v2551_v18  ;;  %2584 = vst [vmem:[%s5211_s20 + $0xd8] sm:$0xff] %v2552_v63 }
 0x344   : > { %2585 = vst [vmem:[%s5211_s20 + $0xe0] sm:$0xff] %v2553_v59  ;;  %2586 = vst [vmem:[%s5211_s20 + $0xe8] sm:$0xff] %v2554_v44 }
 0x345   : > { %2587 = vst [vmem:[%s5211_s20 + $0xf0] sm:$0xff] %v2555_v5  ;;  %2588 = vst [vmem:[%s5211_s20 + $0xf8] sm:$0xff] %v2556_v29 }
 0x346 PF: > { %s5540_s25 = sld [smem:[#allocation28_spill]]  ;;  %s2608_s4 = sshll.u32 %s5211_s20, 4  ;;  %s5318_s4 = int_to_ptr.vmem [resolvable:$true] %s2608_s4 }
 0x347   : > { %s5541_s23 = sld [smem:[#allocation34_spill]]  ;;  %s2590_s7 = scalar_lea.sflag [#allocation5], %s4140_s17 }
 0x348   : > { %s5542_s2 = sld [smem:[#allocation46_spill]]  ;;  %s3601_s0 = scalar_lea.vmem %s5318_s4, 4096 }
 0x349   : > { %p3602_p2 = scmp.ne.s32.totalorder %s5318_s4, %s3601_s0  ;;  %s3804_s30 = smov [#allocation14]  }
 0x34a   : > { %s3605_s18 = sshll.u32 %s3804_s30, 4  ;;  %s3606_s18 = int_to_ptr.vmem [resolvable:$false] %s3605_s18 }
 0x34b   : > { %s3607_s11 = scalar_lea.vmem %s3606_s18, 8192  ;;  %p3608_p9 = scmp.lt.s32.totalorder %s5318_s4, %s3606_s18 }
 0x34c   : > { %s2953_s16 = sshll.u32 %s5540_s25, 12  ;;  %p3609_p0 = scmp.lt.s32.totalorder %s3607_s11, %s3601_s0 }
 0x34d   : > { %p5543_p8 = scmp.ne.s32.totalorder %s5541_s23, 0 }
 0x34e   : > { %s5315_s28 = scalar_lea.hbm %s5542_s2, %s2953_s16  ;;  %p3610_p13 = por %p3609_p0, %p3608_p9 }
 0x34f   : > { %p3603_p5 = pnand %p3602_p2, %p5543_p8 }
 0x351   : > { %p3604_p12 = pneg %p3603_p5 }
 0x353   : > { %p3611_p10 = pnand %p3610_p13, %p3604_p12 }
 0x355   : > { %3614 = shalt.err (!%p3611_p10)
}
 0x356   : > { %s3615_s15 = scalar_lea.hbm %s5315_s28, 4096  ;;  %s3619_s13 = scalar_lea.hbm %s5542_s2, 8192 }
 0x357   : > { %p3616_p11 = scmp.ne.s32.totalorder %s5315_s28, %s3615_s15  ;;  %p3620_p7 = scmp.lt.s32.totalorder %s5315_s28, %s5542_s2 }
 0x358   : > { %p3621_p3 = scmp.lt.s32.totalorder %s3619_s13, %s3615_s15 }
 0x359   : > { %p3617_p4 = pnand %p3616_p11, %p5543_p8 }
 0x35a   : > { %p3622_p1 = por %p3621_p3, %p3620_p7 }
 0x35b   : > { %p3618_p6 = pneg %p3617_p4 }
 0x35d   : > { %p3623_p2 = pnand %p3622_p1, %p3618_p6 }
 0x35f   : > { %3626 = shalt.err (!%p3623_p2)
}
 0x360   : > { %s3805_s19 = smov 128   ;;  %s5544_s1 = sld [smem:[#allocation27_spill]] }
 0x361   : > { %s5545_s0 = sld [smem:[#allocation24_spill]]  ;;  %s3806_s18 = smov 8  }
 0x362   : > { %s5546_s30 = sld [smem:[#allocation36_spill]]  ;;  %s2954_s6 = sshll.u32 %s5540_s25, 8 }
 0x363   : > { %3193 = dma.vmem_to_hbm [thread:$0]  (%p5543_p8), %s5318_s4, 4096, %s5315_s28, %s2590_s7, %s3805_s19, %s3805_s19, %s3806_s18  }
 0x364   : > { %s2627_s20 = sshll.u32 %s4357_s10, 4  ;;  %s5547_s21 = sld [smem:[#allocation47_spill]]  ;;  %s5346_s20 = int_to_ptr.vmem [resolvable:$true] %s2627_s20 }
 0x365   : > { %s3627_s17 = scalar_lea.vmem %s5346_s20, 16384  ;;  %s3807_s10 = smov [#allocation15]  }
 0x366   : > { %s2943_s11 = sshll.u32 %s5544_s1, 2  ;;  %p3628_p8 = scmp.ne.s32.totalorder %s5346_s20, %s3627_s17 }
 0x367   : > { %s2624_s15 = sadd.s32 %s2954_s6, %s2943_s11  ;;  %s5548_s24 = sand.u32 1, %s5545_s0  }
 0x368   : > { %s2945_s13 = sshll.u32 %s2624_s15, 7  ;;  %s5355_s12 = scalar_lea.sflag [#allocation16], %s5548_s24 }
 0x369   : > { %p5549_p5 = scmp.ne.s32.totalorder %s5546_s30, 0  ;;  %s3631_s25 = sshll.u32 %s3807_s10, 4  ;;  %s3632_s25 = int_to_ptr.vmem [resolvable:$false] %s3631_s25 }
 0x36a   : > { %s5351_s2 = scalar_lea.hbm %s5547_s21, %s2945_s13  ;;  %s3633_s23 = scalar_lea.vmem %s3632_s25, 32768 }
 0x36b   : > { %p3629_p12 = pnand %p3628_p8, %p5549_p5  ;;  %p3634_p0 = scmp.lt.s32.totalorder %s5346_s20, %s3632_s25 }
 0x36c   : > { %p3635_p13 = scmp.lt.s32.totalorder %s3633_s23, %s3627_s17 }
 0x36d   : > { %p3630_p9 = pneg %p3629_p12 }
 0x36e   : > { %p3636_p10 = por %p3635_p13, %p3634_p0 }
 0x370   : > { %p3637_p11 = pnand %p3636_p10, %p3630_p9 }
 0x372   : > { %3640 = shalt.err (!%p3637_p11)
}
 0x373   : > { %s3641_s24 = scalar_lea.hbm %s5351_s2, 16384  ;;  %s3645_s7 = scalar_lea.hbm %s5547_s21, 65536 }
 0x374   : > { %p3642_p4 = scmp.ne.s32.totalorder %s5351_s2, %s3641_s24  ;;  %p3646_p3 = scmp.lt.s32.totalorder %s5351_s2, %s5547_s21 }
 0x375   : > { %p3647_p1 = scmp.lt.s32.totalorder %s3645_s7, %s3641_s24 }
 0x376   : > { %p3643_p6 = pnand %p3642_p4, %p5549_p5 }
 0x377   : > { %p3648_p2 = por %p3647_p1, %p3646_p3 }
 0x378   : > { %p3644_p7 = pneg %p3643_p6 }
 0x37a   : > { %p3649_p8 = pnand %p3648_p2, %p3644_p7 }
 0x37c   : > { %3652 = shalt.err (!%p3649_p8)
}
 0x37d   : > { %s3808_s0 = smov 512   ;;  %s3809_s18 = smov 1024  }
 0x37e   : > { %s3810_s11 = smov 32  }
 0x37f   : > { %3194 = dma.vmem_to_hbm [thread:$0]  (%p5549_p5), %s5346_s20, 16384, %s5351_s2, %s5355_s12, %s3808_s0, %s3809_s18, %s3810_s11  }
 0x380 PF: > { %s5550_s6 = sld [smem:[#allocation26_spill]]  ;;  %p3227_p12 = scmp.ge.s32.totalorder %s3787_s14, 2 }
 0x381   : > { %s5551_s15 = sld [smem:[#allocation35_spill]] }
 0x386   : > { %s2642_s13 = sand.u32 1, %s5550_s6  }
 0x387   : > { %p5552_p9 = scmp.ne.s32.totalorder %s5551_s15, 0  ;;  %s2643_s27 = scalar_lea.sflag [#allocation5], %s2642_s13 }
 0x389   : > { %p3218_p0 = pnand %p3227_p12, %p5552_p9 }
 0x38b   : > { %p3219_p13 = pneg %p3218_p0 }
 0x38d   : > { %3726 = dma.done.wait (%p3219_p13), %s2643_s27, 4096  }
 0x38e   : > { %3728 = vsyncadd (%p3219_p13), %s2643_s27, 4294963200  ;;  %s5553_s16 = sld [smem:[#allocation23_spill]] }
 0x38f   : > { %s5554_s17 = sld [smem:[#allocation37_spill]] }
 0x394   : > { %s2651_s10 = sand.u32 1, %s5553_s16  }
 0x395   : > { %p5555_p10 = scmp.ne.s32.totalorder %s5554_s17, 0  ;;  %s2652_s30 = scalar_lea.sflag [#allocation16], %s2651_s10 }
 0x397   : > { %p3221_p11 = pnand %p3227_p12, %p5555_p10 }
 0x399   : > { %p3222_p4 = pneg %p3221_p11 }
 0x39b   : > { %3730 = dma.done.wait (%p3222_p4), %s2652_s30, 16384  }
 0x39c   : > { %3732 = vsyncadd (%p3222_p4), %s2652_s30, 4294950912  ;;  %s34_s14 = sadd.s32 1, %s3787_s14   ;;  %s5557_s24 = sld [smem:[#allocation24_spill]] }
 0x39d   : > { %p5386_p5 = scmp.ge.s32.totalorder %s34_s14, 6   ;;  %s5558_s27 = sld [smem:[#allocation25_spill]] }
 0x39e   : > { %s5559_s10 = sld [smem:[#allocation29_spill]]  ;;  %s5564_s25 = smov %s3743_s26 }
 0x39f   : > { %s5560_s11 = sld [smem:[#allocation30_spill]]  ;;  %s5565_s26 = smov %s4095_s3 }
 0x3a0   : > { %s5561_s2 = sld [smem:[#allocation38_spill]]  ;;  %s5566_s28 = smov %s3755_s29 }
 0x3a1   : > { %s5562_s13 = sld [smem:[#allocation39_spill]]  ;;  %s5567_s29 = smov %s4083_s22 }
 0x3a2   : > { %s5568_s30 = smov %s3763_s8  ;;  %s5569_s8 = smov %s3767_s9 }
 0x3a3   : > { %s5570_s9 = smov %s4090_s5  ;;  %33 = sbr.rel (!%p5386_p5) target bundleno = 26 (0x1a), region = 166 }
 0x3a6   : > { %s5571_s12 = smov %s5561_s2 }
 0x3a8   :  { %2657 = vsyncpa [#allocation4], 1 }
 0x3a9   :  { %2659 = vsyncpa [#allocation4 + $0x1], 1 }
 0x3aa   :  { %2660 = vsyncpa [#allocation7], 1 }
 0x3ab   :  { %2662 = vsyncpa [#allocation7 + $0x1], 1 }
 0x3ac   :  { %2663 = vsyncpa [#allocation10], 1 }
 0x3ad   :  { %2665 = vsyncpa [#allocation10 + $0x1], 1 }
 0x3ae   :  { %2666 = vsyncpa [#allocation13], 1 }
 0x3af   :  { %2667 = vsyncpa [#allocation5], 1 }
 0x3b0   :  { %2669 = vsyncpa [#allocation5 + $0x1], 1 }
 0x3b1   :  { %2670 = vsyncpa [#allocation16], 1 }
 0x3b2   :  { %2672 = vsyncpa [#allocation16 + $0x1], 1 }

</bundles_post_ra>
